<compile_context>
chip_gen: v7x
topology: tpu7x:2x2x1
jax: 0.10.0
libtpu: 0.0.40
codegen_flags: <defaults>
</compile_context>

<pallas_src>
import functools

import jax
import jax.numpy as jnp
from jax import lax
from jax.experimental import pallas as pl
from jax.experimental.pallas import tpu as pltpu


# ----------------------------------------------------------------------------
# Hardware-generation helpers (static, trace-time)
# ----------------------------------------------------------------------------
def _device_kind():
    try:
        return jax.devices()[0].device_kind.lower()
    except Exception:
        return ""


def _bf16_transcendentals_ok():
    dk = _device_kind()
    return any(t in dk for t in ("v6", "v7", "7x"))     # bf16 EUP/VPU path


def _vmem_limit_bytes():
    dk = _device_kind()
    if "v7" in dk or "7x" in dk:
        return 48 * 1024 * 1024          # v7x: 64 MiB physical per TC
    if "v5" in dk or "v6" in dk:
        return 64 * 1024 * 1024          # v5e/v6e: 128 MiB physical
    return 32 * 1024 * 1024              # conservative fallback


# ----------------------------------------------------------------------------
# Kernel 1: CNN stand-in + fused layer-0 LSTM input projection.
#   x2d tile: (nt, C*H*W) -> relu(x @ W1e + b1) @ W2 + b2 -> @ W_ih0 + (b_ih0+b_hh0)
#   output tile: (nt, 4*H_pad) bf16 (lane-dense gates_x for LSTM layer 0)
# ----------------------------------------------------------------------------
def cnn_gates_kernel(x_ref, w1_ref, b1_ref, w2_ref, b2_ref, wih0_ref, bias0_ref, o_ref):
    x = x_ref[...].astype(jnp.bfloat16)                       # (nt, C*HW)
    feat = jnp.dot(x, w1_ref[...], preferred_element_type=jnp.float32) + b1_ref[...]
    feat = jnp.maximum(feat, 0.0)                             # ReLU
    cnnf = jnp.dot(feat.astype(jnp.bfloat16), w2_ref[...],
                   preferred_element_type=jnp.float32) + b2_ref[...]
    gx0 = jnp.dot(cnnf.astype(jnp.bfloat16), wih0_ref[...],
                  preferred_element_type=jnp.float32) + bias0_ref[...]
    o_ref[...] = gx0.astype(o_ref.dtype)                      # bf16, lane-dense


def _row_tile(n, kdim, gdim, vmem_budget):
    """Biggest >=16-row tile (bf16-tile aligned) whose double-buffered blocks fit the budget."""
    for t in (1024, 512, 256, 128, 64, 32, 16):
        if n % t == 0 and n > t and 2 * t * (kdim * 4 + gdim * 2) <= vmem_budget:
            return t
    return n


def cnn_gates_forward(x2d, kp):
    n, kdim = x2d.shape
    g = kp["wih0"].shape[1]
    vmem_limit = _vmem_limit_bytes()
    nt = _row_tile(n, kdim, g, vmem_limit // 2)

    def full_spec(arr):
        nd = arr.ndim
        return pl.BlockSpec(arr.shape, lambda i, nd=nd: (0,) * nd)

    return pl.pallas_call(
        cnn_gates_kernel,
        out_shape=jax.ShapeDtypeStruct((n, g), jnp.bfloat16),
        grid=(n // nt,),
        in_specs=[
            pl.BlockSpec((nt, kdim), lambda i: (i, 0)),
            full_spec(kp["cnn_w1e"]), full_spec(kp["cnn_b1"]),
            full_spec(kp["cnn_w2"]), full_spec(kp["cnn_b2"]),
            full_spec(kp["wih0"]), full_spec(kp["bias0"]),
        ],
        out_specs=pl.BlockSpec((nt, g), lambda i: (i, 0)),
        compiler_params=pltpu.CompilerParams(
            dimension_semantics=("parallel",),          # frame axis shards across TCs (v7x)
            vmem_limit_bytes=vmem_limit,
        ),
    )(x2d, kp["cnn_w1e"], kp["cnn_b1"], kp["cnn_w2"], kp["cnn_b2"],
      kp["wih0"], kp["bias0"])


# ----------------------------------------------------------------------------
# Kernel 2: fused LSTM stack (PyTorch gate order i,f,g,o) + FC head + LayerNorm.
#   Single invocation; the time loop is fully unrolled (T small & static); hidden size padded
#   to H_pad (multiple of 128) so all gate slices / stores are lane-aligned; inter-layer
#   activations live in flat 2-D t-major bf16 VMEM scratch (never hit HBM).
# ----------------------------------------------------------------------------
def lstm_fc_kernel(gx0_ref, *refs, seq_len, batch, h_pad, n_layers, bf16_gates):
    idx = 0
    whh0_ref = refs[idx]; idx += 1
    extra_layers = []                                          # layers 1..L-1: (wih, whh, bias)
    for _ in range(n_layers - 1):
        extra_layers.append((refs[idx], refs[idx + 1], refs[idx + 2]))
        idx += 3
    fc1_w, fc1_b, fc2_w, fc2_b, ln_g, ln_b = refs[idx:idx + 6]; idx += 6
    o_ref = refs[idx]; idx += 1
    gx_scr, hseq_scr = refs[idx], refs[idx + 1]

    gate_dt = jnp.bfloat16 if bf16_gates else jnp.float32
    # Independent batch streams give the scheduler ILP: one stream's (bs, H)@(H, 4H) MXU push
    # overlaps the other's sigmoid/tanh/VPU gate math.  Only worth it with >=8 rows per stream.
    n_streams = 2 if (batch % 2 == 0 and batch // 2 >= 8) else 1
    bs = batch // n_streams

    def run_layer(read_gx, whh_ref, write_hseq):
        whh = whh_ref[...]                                     # bf16, resident in VMEM
        hs = [jnp.zeros((bs, h_pad), jnp.float32) for _ in range(n_streams)]
        cs = [jnp.zeros((bs, h_pad), jnp.float32) for _ in range(n_streams)]
        # Fully static unrolled time loop (T is small); all slice offsets are compile-time.
        # TODO(synk): switch to a partially-unrolled lax.fori_loop once T grows past ~16-32.
        for t_step in range(seq_len):
            for s in range(n_streams):
                gx = read_gx(t_step, s).astype(jnp.float32)
                gates = gx + jnp.dot(hs[s].astype(jnp.bfloat16), whh,
                                     preferred_element_type=jnp.float32)
                ga = gates.astype(gate_dt)                     # bf16 EUP/VPU on v6e/v7x
                i_g = jax.nn.sigmoid(ga[:, 0 * h_pad:1 * h_pad]).astype(jnp.float32)
                f_g = jax.nn.sigmoid(ga[:, 1 * h_pad:2 * h_pad]).astype(jnp.float32)
                g_g = jnp.tanh(ga[:, 2 * h_pad:3 * h_pad]).astype(jnp.float32)
                o_g = jax.nn.sigmoid(ga[:, 3 * h_pad:4 * h_pad]).astype(jnp.float32)
                c_new = f_g * cs[s] + i_g * g_g                # carries stay f32
                h_new = o_g * jnp.tanh(c_new)
                if write_hseq:                                 # static per layer
                    hseq_scr[pl.ds(t_step * batch + s * bs, bs), :] = \
                        h_new.astype(hseq_scr.dtype)
                hs[s], cs[s] = h_new, c_new
        return hs[0] if n_streams == 1 else jnp.concatenate(hs, axis=0)

    # Layer 0: gates_x precomputed in the CNN kernel; gx0 is (B, T, 4*H_pad) so the per-step
    # read is a plain static slice along the sublane axis (no HBM relayout anywhere).
    def read_gx0(t_step, s):
        return gx0_ref[pl.ds(s * bs, bs), t_step, :]

    h_last = run_layer(read_gx0, whh0_ref, write_hseq=(n_layers > 1))

    # Deeper layers: hoist x@W_ih of the whole sequence into one flat (T*B, H_pad) GEMM.
    for li, (wih_ref, whh_ref, b_ref) in enumerate(extra_layers):
        gx_all = jnp.dot(hseq_scr[...], wih_ref[...],
                         preferred_element_type=jnp.float32) + b_ref[...]
        gx_scr[...] = gx_all.astype(gx_scr.dtype)
        is_last = (li == len(extra_layers) - 1)

        def read_gx(t_step, s):
            return gx_scr[pl.ds(t_step * batch + s * bs, bs), :]

        h_last = run_layer(read_gx, whh_ref, write_hseq=(not is_last))

    # FC head on the last timestep: Linear -> ReLU -> Linear -> LayerNorm (eps=1e-5).
    # Padded h lanes are exactly 0 and fc1_w's padded rows/cols are 0, so no slicing is needed.
    z = jnp.maximum(jnp.dot(h_last.astype(jnp.bfloat16), fc1_w[...],
                            preferred_element_type=jnp.float32) + fc1_b[...], 0.0)
    z = jnp.dot(z.astype(jnp.bfloat16), fc2_w[...],
                preferred_element_type=jnp.float32) + fc2_b[...]
    mu = jnp.mean(z, axis=-1, keepdims=True)
    var = jnp.mean((z - mu) ** 2, axis=-1, keepdims=True)
    o_ref[...] = ((z - mu) * lax.rsqrt(var + 1e-5)) * ln_g[...] + ln_b[...]


def lstm_fc_forward(gx0_btg, kp, *, bf16_gates):
    b, t, g = gx0_btg.shape
    h_pad = g // 4
    n_layers = 1 + len(kp["lstm_rest"])
    out_dims = kp["fc_w2"].shape[1]

    args = [gx0_btg, kp["whh0"]]
    for lyr in kp["lstm_rest"]:
        args += [lyr["wih"], lyr["whh"], lyr["bias"]]
    args += [kp["fc_w1"], kp["fc_b1"], kp["fc_w2"], kp["fc_b2"],
             kp["ln_gamma"], kp["ln_beta"]]

    vspec = pl.BlockSpec(memory_space=pltpu.MemorySpace.VMEM)
    kern = functools.partial(lstm_fc_kernel, seq_len=t, batch=b, h_pad=h_pad,
                             n_layers=n_layers, bf16_gates=bf16_gates)
    return pl.pallas_call(
        kern,
        out_shape=jax.ShapeDtypeStruct((b, out_dims), jnp.float32),
        in_specs=[vspec] * len(args),
        out_specs=vspec,
        scratch_shapes=[
            pltpu.VMEM((t * b, g), jnp.bfloat16),      # hoisted gates_x, flat t-major, bf16
            pltpu.VMEM((t * b, h_pad), jnp.bfloat16),  # inter-layer h sequence (never hits HBM)
        ],
        compiler_params=pltpu.CompilerParams(vmem_limit_bytes=_vmem_limit_bytes()),
    )(*args)


# ----------------------------------------------------------------------------
# Full VideoEncoder forward
# ----------------------------------------------------------------------------
def video_encoder_forward(video, kp, *, bf16_gates=None):
    if bf16_gates is None:
        bf16_gates = _bf16_transcendentals_ok()
    b, t = video.shape[0], video.shape[1]
    x2d = video.reshape(b * t, -1)                      # "video.flatten(0, 1)", spatial flattened
    gx0 = cnn_gates_forward(x2d, kp)                    # (B*T, 4*H_pad) bf16, frame(b)-major
    g = gx0.shape[-1]
    gx0_btg = gx0.reshape(b, t, g)                      # free reshape -- no transpose/relayout
    return lstm_fc_forward(gx0_btg, kp, bf16_gates=bf16_gates)   # (B, out_dims)


# ----------------------------------------------------------------------------
# Parameters: PyTorch-convention init + one-time conversion to the kernel layout
# (gate-blocked, all inner dims zero-padded to 128-lane multiples, bf16 matmul weights).
# ----------------------------------------------------------------------------
def init_params(key, *, in_channels, backbone_feat, lstm_input_dims, hidden_dims,
                num_lstm_layers, fc_dims, out_dims):
    ks = iter(jax.random.split(key, 8 + 4 * num_lstm_layers))

    def unif(rng, shape, fan_in):
        bound = 1.0 / jnp.sqrt(jnp.float32(fan_in))
        return jax.random.uniform(rng, shape, jnp.float32, -bound, bound)

    p = {
        # CNN stand-in: pooled(C) -> backbone_feat -> lstm_input_dims
        "cnn_w1": unif(next(ks), (in_channels, backbone_feat), in_channels),
        "cnn_b1": unif(next(ks), (backbone_feat,), in_channels),
        "cnn_w2": unif(next(ks), (backbone_feat, lstm_input_dims), backbone_feat),
        "cnn_b2": unif(next(ks), (lstm_input_dims,), backbone_feat),
        # fc head
        "fc_w1": unif(next(ks), (hidden_dims, fc_dims), hidden_dims),
        "fc_b1": unif(next(ks), (fc_dims,), hidden_dims),
        "fc_w2": unif(next(ks), (fc_dims, out_dims), fc_dims),
        "fc_b2": unif(next(ks), (out_dims,), fc_dims),
        "ln_gamma": jnp.ones((out_dims,), jnp.float32),
        "ln_beta": jnp.zeros((out_dims,), jnp.float32),
        "lstm": [],
    }
    for l in range(num_lstm_layers):
        d_in = lstm_input_dims if l == 0 else hidden_dims
        p["lstm"].append({
            "w_ih": unif(next(ks), (4 * hidden_dims, d_in), hidden_dims),   # torch (4H, D)
            "w_hh": unif(next(ks), (4 * hidden_dims, hidden_dims), hidden_dims),
            "b_ih": unif(next(ks), (4 * hidden_dims,), hidden_dims),
            "b_hh": unif(next(ks), (4 * hidden_dims,), hidden_dims),
        })
    return p


def _round_up(x, m=128):
    return ((x + m - 1) // m) * m


def _pad_axis(a, axis, new):
    pad = [(0, 0)] * a.ndim
    pad[axis] = (0, new - a.shape[axis])
    return jnp.pad(a, pad)


def _gate_blocked(w, h, h_pad):
    """torch (4H, K) -> kernel (K, 4*h_pad); gate g occupies columns [g*h_pad, g*h_pad+h)."""
    k = w.shape[1]
    wg = w.reshape(4, h, k)
    wp = jnp.zeros((4, h_pad, k), w.dtype).at[:, :h, :].set(wg)
    return wp.transpose(2, 0, 1).reshape(k, 4 * h_pad)


def _gate_blocked_bias(b, h, h_pad):
    bp = jnp.zeros((4, h_pad), b.dtype).at[:, :h].set(b.reshape(4, h))
    return bp.reshape(1, 4 * h_pad)


def prepare_kernel_params(tp, *, spatial, hidden, lane=128):
    h_pad = _round_up(hidden, lane)
    f_pad = _round_up(tp["cnn_w1"].shape[1], lane)     # backbone_feat
    d_pad = _round_up(tp["cnn_w2"].shape[1], lane)     # lstm_input_dims
    fc_pad = _round_up(tp["fc_w1"].shape[1], lane)     # fc_dims

    def bf(x):
        return x.astype(jnp.bfloat16)

    l0 = tp["lstm"][0]
    kp = {
        # mean over spatial folded into W1: x_flat @ (repeat(W1)/HW) == mean_pool(x) @ W1
        "cnn_w1e": bf(_pad_axis(jnp.repeat(tp["cnn_w1"], spatial, axis=0) / spatial, 1, f_pad)),
        "cnn_b1": _pad_axis(tp["cnn_b1"].reshape(1, -1), 1, f_pad),
        "cnn_w2": bf(_pad_axis(_pad_axis(tp["cnn_w2"], 0, f_pad), 1, d_pad)),
        "cnn_b2": _pad_axis(tp["cnn_b2"].reshape(1, -1), 1, d_pad),
        # layer-0 LSTM input projection (fused into the CNN kernel)
        "wih0": bf(_pad_axis(_gate_blocked(l0["w_ih"], hidden, h_pad), 0, d_pad)),
        "whh0": bf(_pad_axis(_gate_blocked(l0["w_hh"], hidden, h_pad), 0, h_pad)),
        "bias0": _gate_blocked_bias(l0["b_ih"] + l0["b_hh"], hidden, h_pad),
        "lstm_rest": [],
        "fc_w1": bf(_pad_axis(_pad_axis(tp["fc_w1"], 0, h_pad), 1, fc_pad)),
        "fc_b1": _pad_axis(tp["fc_b1"].reshape(1, -1), 1, fc_pad),
        "fc_w2": bf(_pad_axis(tp["fc_w2"], 0, fc_pad)),
        "fc_b2": tp["fc_b2"].reshape(1, -1),
        "ln_gamma": tp["ln_gamma"].reshape(1, -1),
        "ln_beta": tp["ln_beta"].reshape(1, -1),
    }
    for lyr in tp["lstm"][1:]:
        kp["lstm_rest"].append({
            "wih": bf(_pad_axis(_gate_blocked(lyr["w_ih"], hidden, h_pad), 0, h_pad)),
            "whh": bf(_pad_axis(_gate_blocked(lyr["w_hh"], hidden, h_pad), 0, h_pad)),
            "bias": _gate_blocked_bias(lyr["b_ih"] + lyr["b_hh"], hidden, h_pad),
        })
    return kp


# ----------------------------------------------------------------------------
# Pure-JAX f32 reference (torch semantics of the stand-in model) for validation.
# ----------------------------------------------------------------------------
def reference_forward(video, tp):
    b, t, c, hh, ww = video.shape
    x = video.reshape(b * t, c, hh * ww)
    pooled = jnp.mean(x, axis=-1)
    feat = jax.nn.relu(pooled @ tp["cnn_w1"] + tp["cnn_b1"])
    cnnf = feat @ tp["cnn_w2"] + tp["cnn_b2"]
    seq = cnnf.reshape(b, t, -1)
    for lyr in tp["lstm"]:
        w_ih, w_hh = lyr["w_ih"], lyr["w_hh"]
        bias = lyr["b_ih"] + lyr["b_hh"]
        hn = w_hh.shape[1]
        h = jnp.zeros((b, hn), jnp.float32)
        c_st = jnp.zeros((b, hn), jnp.float32)
        outs = []
        for step in range(t):
            g = seq[:, step] @ w_ih.T + h @ w_hh.T + bias
            i = jax.nn.sigmoid(g[:, :hn])
            f = jax.nn.sigmoid(g[:, hn:2 * hn])
            gg = jnp.tanh(g[:, 2 * hn:3 * hn])
            o = jax.nn.sigmoid(g[:, 3 * hn:])
            c_st = f * c_st + i * gg
            h = o * jnp.tanh(c_st)
            outs.append(h)
        seq = jnp.stack(outs, axis=1)
    h_last = seq[:, -1]
    z = jax.nn.relu(h_last @ tp["fc_w1"] + tp["fc_b1"])
    z = z @ tp["fc_w2"] + tp["fc_b2"]
    mu = jnp.mean(z, axis=-1, keepdims=True)
    var = jnp.mean((z - mu) ** 2, axis=-1, keepdims=True)
    return (z - mu) * lax.rsqrt(var + 1e-5) * tp["ln_gamma"] + tp["ln_beta"]


if __name__ == "__main__":
    # Small shapes consistent with the forward: video (B, T, C, H, W)
    B, T, C, IMG_H, IMG_W = 2, 8, 4, 16, 16
    LSTM_IN, HIDDEN, N_LAYERS = 32, 32, 2
    FC_DIMS, OUT_DIMS = 32, 32
    BACKBONE_FEAT = 64   # stand-in for regnet fc.in_features (=784 in the real model)

    root = jax.random.PRNGKey(0)
    k_vid, k_par = jax.random.split(root)
    video = jax.random.normal(k_vid, (B, T, C, IMG_H, IMG_W), jnp.float32)

    tparams = init_params(
        k_par,
        in_channels=C, backbone_feat=BACKBONE_FEAT,
        lstm_input_dims=LSTM_IN, hidden_dims=HIDDEN,
        num_lstm_layers=N_LAYERS, fc_dims=FC_DIMS, out_dims=OUT_DIMS,
    )
    kparams = prepare_kernel_params(tparams, spatial=IMG_H * IMG_W, hidden=HIDDEN)

    # Padded-lane invariant: the recurrence relies on padded weight rows being exactly zero
    # (so padded h/c lanes stay identically 0 through every layer).
    assert bool(jnp.all(kparams["whh0"][HIDDEN:, :] == 0))
    for _lyr in kparams["lstm_rest"]:
        assert bool(jnp.all(_lyr["wih"][HIDDEN:, :] == 0))
        assert bool(jnp.all(_lyr["whh"][HIDDEN:, :] == 0))

    out = jax.jit(video_encoder_forward)(video, kparams)
    out = jax.block_until_ready(out)

    ref = reference_forward(video, tparams)
    assert out.shape == (B, OUT_DIMS), out.shape
    assert bool(jnp.all(jnp.isfinite(out)))
    # bf16 MXU operands / bf16 gates_x storage (f32 accumulation & carries) => loose tolerance.
    assert bool(jnp.allclose(out, ref, atol=1.5e-1, rtol=1.5e-1)), \
        float(jnp.max(jnp.abs(out - ref)))
    print("KERNEL_OK")
</pallas_src>

<mosaic_0001>
module attributes {stable_mosaic.version = 11 : i64} {
  func.func @cnn_gates_kernel(%arg0: i32, %arg1: memref<16x1024xf32, #tpu.memory_space<vmem>>, %arg2: memref<1024x128xbf16, #tpu.memory_space<vmem>>, %arg3: memref<1x128xf32, #tpu.memory_space<vmem>>, %arg4: memref<128x128xbf16, #tpu.memory_space<vmem>>, %arg5: memref<1x128xf32, #tpu.memory_space<vmem>>, %arg6: memref<128x512xbf16, #tpu.memory_space<vmem>>, %arg7: memref<1x512xf32, #tpu.memory_space<vmem>>, %arg8: memref<16x512xbf16, #tpu.memory_space<vmem>>) attributes {dimension_semantics = [#tpu.dimension_semantics<parallel>], iteration_bounds = array<i64: 1>, scalar_prefetch = 0 : i64, scratch_operands = 0 : i64, tpu.core_type = #tpu.core_type<tc>, window_params = [{transform_indices = @transform_0, window_bounds = array<i64: 16, 1024>}, {pipeline_mode = #tpu.pipeline_mode<synchronous>, transform_indices = @transform_1, window_bounds = array<i64: 1024, 128>}, {pipeline_mode = #tpu.pipeline_mode<synchronous>, transform_indices = @transform_2, window_bounds = array<i64: 1, 128>}, {pipeline_mode = #tpu.pipeline_mode<synchronous>, transform_indices = @transform_3, window_bounds = array<i64: 128, 128>}, {pipeline_mode = #tpu.pipeline_mode<synchronous>, transform_indices = @transform_4, window_bounds = array<i64: 1, 128>}, {pipeline_mode = #tpu.pipeline_mode<synchronous>, transform_indices = @transform_5, window_bounds = array<i64: 128, 512>}, {pipeline_mode = #tpu.pipeline_mode<synchronous>, transform_indices = @transform_6, window_bounds = array<i64: 1, 512>}, {transform_indices = @transform_7, window_bounds = array<i64: 16, 512>}]} {
    %c0 = arith.constant 0 : index
    %c0_0 = arith.constant 0 : index
    %0 = vector.load %arg1[%c0, %c0_0] : memref<16x1024xf32, #tpu.memory_space<vmem>>, vector<16x1024xf32>
    %1 = arith.truncf %0 : vector<16x1024xf32> to vector<16x1024xbf16>
    %c0_1 = arith.constant 0 : index
    %c0_2 = arith.constant 0 : index
    %2 = vector.load %arg2[%c0_1, %c0_2] : memref<1024x128xbf16, #tpu.memory_space<vmem>>, vector<1024x128xbf16>
    %cst = arith.constant dense<0.000000e+00> : vector<16x128xf32>
    %3 = tpu.matmul %1, %2, %cst {dimension_numbers = #tpu.dot_dimension_numbers<[1], [0], [0], [1], [0, 0, 1, 1], [], []>} : vector<16x1024xbf16>, vector<1024x128xbf16>, vector<16x128xf32> -> vector<16x128xf32>
    %c0_3 = arith.constant 0 : index
    %c0_4 = arith.constant 0 : index
    %4 = vector.load %arg3[%c0_3, %c0_4] : memref<1x128xf32, #tpu.memory_space<vmem>>, vector<1x128xf32>
    %5 = vector.broadcast %4 : vector<1x128xf32> to vector<16x128xf32>
    %6 = arith.addf %3, %5 : vector<16x128xf32>
    %cst_5 = arith.constant 0.000000e+00 : f32
    %7 = vector.broadcast %cst_5 : f32 to vector<16x128xf32>
    %8 = arith.maximumf %6, %7 : vector<16x128xf32>
    %9 = arith.truncf %8 : vector<16x128xf32> to vector<16x128xbf16>
    %c0_6 = arith.constant 0 : index
    %c0_7 = arith.constant 0 : index
    %10 = vector.load %arg4[%c0_6, %c0_7] : memref<128x128xbf16, #tpu.memory_space<vmem>>, vector<128x128xbf16>
    %cst_8 = arith.constant dense<0.000000e+00> : vector<16x128xf32>
    %11 = tpu.matmul %9, %10, %cst_8 {dimension_numbers = #tpu.dot_dimension_numbers<[1], [0], [0], [1], [0, 0, 1, 1], [], []>} : vector<16x128xbf16>, vector<128x128xbf16>, vector<16x128xf32> -> vector<16x128xf32>
    %c0_9 = arith.constant 0 : index
    %c0_10 = arith.constant 0 : index
    %12 = vector.load %arg5[%c0_9, %c0_10] : memref<1x128xf32, #tpu.memory_space<vmem>>, vector<1x128xf32>
    %13 = vector.broadcast %12 : vector<1x128xf32> to vector<16x128xf32>
    %14 = arith.addf %11, %13 : vector<16x128xf32>
    %15 = arith.truncf %14 : vector<16x128xf32> to vector<16x128xbf16>
    %c0_11 = arith.constant 0 : index
    %c0_12 = arith.constant 0 : index
    %16 = vector.load %arg6[%c0_11, %c0_12] : memref<128x512xbf16, #tpu.memory_space<vmem>>, vector<128x512xbf16>
    %cst_13 = arith.constant dense<0.000000e+00> : vector<16x512xf32>
    %17 = tpu.matmul %15, %16, %cst_13 {dimension_numbers = #tpu.dot_dimension_numbers<[1], [0], [0], [1], [0, 0, 1, 1], [], []>} : vector<16x128xbf16>, vector<128x512xbf16>, vector<16x512xf32> -> vector<16x512xf32>
    %c0_14 = arith.constant 0 : index
    %c0_15 = arith.constant 0 : index
    %18 = vector.load %arg7[%c0_14, %c0_15] : memref<1x512xf32, #tpu.memory_space<vmem>>, vector<1x512xf32>
    %19 = vector.broadcast %18 : vector<1x512xf32> to vector<16x512xf32>
    %20 = arith.addf %17, %19 : vector<16x512xf32>
    %21 = arith.truncf %20 : vector<16x512xf32> to vector<16x512xbf16>
    %c0_16 = arith.constant 0 : index
    %c0_17 = arith.constant 0 : index
    %22 = vector.load %arg8[%c0_16, %c0_17] : memref<16x512xbf16, #tpu.memory_space<vmem>>, vector<16x512xbf16>
    tpu.vector_store %arg8[%c0_16, %c0_17], %21 {strides = array<i32>} : memref<16x512xbf16, #tpu.memory_space<vmem>>, vector<16x512xbf16>,
    return
  }
  func.func @transform_0(%arg0: i32) -> (i32, i32) {
    %c0_i32 = arith.constant 0 : i32
    %c0_i32_0 = arith.constant 0 : i32
    return %arg0, %c0_i32 : i32, i32
  }
  func.func @transform_1(%arg0: i32) -> (i32, i32) {
    %c0_i32 = arith.constant 0 : i32
    %c0_i32_0 = arith.constant 0 : i32
    %c0_i32_1 = arith.constant 0 : i32
    return %c0_i32, %c0_i32_0 : i32, i32
  }
  func.func @transform_2(%arg0: i32) -> (i32, i32) {
    %c0_i32 = arith.constant 0 : i32
    %c0_i32_0 = arith.constant 0 : i32
    %c0_i32_1 = arith.constant 0 : i32
    return %c0_i32, %c0_i32_0 : i32, i32
  }
  func.func @transform_3(%arg0: i32) -> (i32, i32) {
    %c0_i32 = arith.constant 0 : i32
    %c0_i32_0 = arith.constant 0 : i32
    %c0_i32_1 = arith.constant 0 : i32
    return %c0_i32, %c0_i32_0 : i32, i32
  }
  func.func @transform_4(%arg0: i32) -> (i32, i32) {
    %c0_i32 = arith.constant 0 : i32
    %c0_i32_0 = arith.constant 0 : i32
    %c0_i32_1 = arith.constant 0 : i32
    return %c0_i32, %c0_i32_0 : i32, i32
  }
  func.func @transform_5(%arg0: i32) -> (i32, i32) {
    %c0_i32 = arith.constant 0 : i32
    %c0_i32_0 = arith.constant 0 : i32
    %c0_i32_1 = arith.constant 0 : i32
    return %c0_i32, %c0_i32_0 : i32, i32
  }
  func.func @transform_6(%arg0: i32) -> (i32, i32) {
    %c0_i32 = arith.constant 0 : i32
    %c0_i32_0 = arith.constant 0 : i32
    %c0_i32_1 = arith.constant 0 : i32
    return %c0_i32, %c0_i32_0 : i32, i32
  }
  func.func @transform_7(%arg0: i32) -> (i32, i32) {
    %c0_i32 = arith.constant 0 : i32
    %c0_i32_0 = arith.constant 0 : i32
    return %arg0, %c0_i32 : i32, i32
  }
}

module attributes {stable_mosaic.version = 11 : i64} {
  func.func @lstm_fc_kernel(%arg0: memref<2x8x512xbf16, #tpu.memory_space<vmem>>, %arg1: memref<128x512xbf16, #tpu.memory_space<vmem>>, %arg2: memref<128x512xbf16, #tpu.memory_space<vmem>>, %arg3: memref<128x512xbf16, #tpu.memory_space<vmem>>, %arg4: memref<1x512xf32, #tpu.memory_space<vmem>>, %arg5: memref<128x128xbf16, #tpu.memory_space<vmem>>, %arg6: memref<1x128xf32, #tpu.memory_space<vmem>>, %arg7: memref<128x32xbf16, #tpu.memory_space<vmem>>, %arg8: memref<1x32xf32, #tpu.memory_space<vmem>>, %arg9: memref<1x32xf32, #tpu.memory_space<vmem>>, %arg10: memref<1x32xf32, #tpu.memory_space<vmem>>, %arg11: memref<2x32xf32, #tpu.memory_space<vmem>>, %arg12: memref<16x512xbf16, #tpu.memory_space<vmem>>, %arg13: memref<16x128xbf16, #tpu.memory_space<vmem>>) attributes {dimension_semantics = [], scalar_prefetch = 0 : i64, scratch_operands = 2 : i64, tpu.core_type = #tpu.core_type<tc>} {
    %c0 = arith.constant 0 : index
    %c0_0 = arith.constant 0 : index
    %0 = vector.load %arg1[%c0, %c0_0] : memref<128x512xbf16, #tpu.memory_space<vmem>>, vector<128x512xbf16>
    %cst = arith.constant 0.000000e+00 : f32
    %1 = vector.broadcast %cst : f32 to vector<2x128xf32>
    %cst_1 = arith.constant 0.000000e+00 : f32
    %2 = vector.broadcast %cst_1 : f32 to vector<2x128xf32>
    %c0_2 = arith.constant 0 : index
    %c0_3 = arith.constant 0 : index
    %c0_4 = arith.constant 0 : index
    %3 = vector.load %arg0[%c0_2, %c0_3, %c0_4] : memref<2x8x512xbf16, #tpu.memory_space<vmem>>, vector<2x1x512xbf16>
    %4 = vector.shape_cast %3 : vector<2x1x512xbf16> to vector<2x512xbf16>
    %5 = arith.extf %4 : vector<2x512xbf16> to vector<2x512xf32>
    %6 = arith.truncf %1 : vector<2x128xf32> to vector<2x128xbf16>
    %cst_5 = arith.constant dense<0.000000e+00> : vector<2x512xf32>
    %7 = tpu.matmul %6, %0, %cst_5 {dimension_numbers = #tpu.dot_dimension_numbers<[1], [0], [0], [1], [0, 0, 1, 1], [], []>} : vector<2x128xbf16>, vector<128x512xbf16>, vector<2x512xf32> -> vector<2x512xf32>
    %8 = arith.addf %5, %7 : vector<2x512xf32>
    %9 = vector.extract_strided_slice %8 {offsets = [0, 0], sizes = [2, 128], strides = [1, 1]} : vector<2x512xf32> to vector<2x128xf32>
    %10 = arith.negf %9 : vector<2x128xf32>
    %11 = math.exp %10 : vector<2x128xf32>
    %cst_6 = arith.constant 1.000000e+00 : f32
    %12 = vector.broadcast %cst_6 : f32 to vector<2x128xf32>
    %13 = arith.addf %12, %11 : vector<2x128xf32>
    %14 = arith.divf %12, %13 : vector<2x128xf32>
    %15 = vector.extract_strided_slice %8 {offsets = [0, 128], sizes = [2, 128], strides = [1, 1]} : vector<2x512xf32> to vector<2x128xf32>
    %16 = arith.negf %15 : vector<2x128xf32>
    %17 = math.exp %16 : vector<2x128xf32>
    %cst_7 = arith.constant 1.000000e+00 : f32
    %18 = vector.broadcast %cst_7 : f32 to vector<2x128xf32>
    %19 = arith.addf %18, %17 : vector<2x128xf32>
    %20 = arith.divf %18, %19 : vector<2x128xf32>
    %21 = vector.extract_strided_slice %8 {offsets = [0, 256], sizes = [2, 128], strides = [1, 1]} : vector<2x512xf32> to vector<2x128xf32>
    %22 = math.tanh %21 : vector<2x128xf32>
    %23 = vector.extract_strided_slice %8 {offsets = [0, 384], sizes = [2, 128], strides = [1, 1]} : vector<2x512xf32> to vector<2x128xf32>
    %24 = arith.negf %23 : vector<2x128xf32>
    %25 = math.exp %24 : vector<2x128xf32>
    %cst_8 = arith.constant 1.000000e+00 : f32
    %26 = vector.broadcast %cst_8 : f32 to vector<2x128xf32>
    %27 = arith.addf %26, %25 : vector<2x128xf32>
    %28 = arith.divf %26, %27 : vector<2x128xf32>
    %29 = arith.mulf %20, %2 : vector<2x128xf32>
    %30 = arith.mulf %14, %22 : vector<2x128xf32>
    %31 = arith.addf %29, %30 : vector<2x128xf32>
    %32 = math.tanh %31 : vector<2x128xf32>
    %33 = arith.mulf %28, %32 : vector<2x128xf32>
    %34 = arith.truncf %33 : vector<2x128xf32> to vector<2x128xbf16>
    %c0_9 = arith.constant 0 : index
    %c0_10 = arith.constant 0 : index
    %35 = vector.load %arg13[%c0_9, %c0_10] : memref<16x128xbf16, #tpu.memory_space<vmem>>, vector<2x128xbf16>
    tpu.vector_store %arg13[%c0_9, %c0_10], %34 {strides = array<i32>} : memref<16x128xbf16, #tpu.memory_space<vmem>>, vector<2x128xbf16>,
    %c0_11 = arith.constant 0 : index
    %c1 = arith.constant 1 : index
    %c0_12 = arith.constant 0 : index
    %36 = vector.load %arg0[%c0_11, %c1, %c0_12] : memref<2x8x512xbf16, #tpu.memory_space<vmem>>, vector<2x1x512xbf16>
    %37 = vector.shape_cast %36 : vector<2x1x512xbf16> to vector<2x512xbf16>
    %38 = arith.extf %37 : vector<2x512xbf16> to vector<2x512xf32>
    %39 = arith.truncf %33 : vector<2x128xf32> to vector<2x128xbf16>
    %cst_13 = arith.constant dense<0.000000e+00> : vector<2x512xf32>
    %40 = tpu.matmul %39, %0, %cst_13 {dimension_numbers = #tpu.dot_dimension_numbers<[1], [0], [0], [1], [0, 0, 1, 1], [], []>} : vector<2x128xbf16>, vector<128x512xbf16>, vector<2x512xf32> -> vector<2x512xf32>
    %41 = arith.addf %38, %40 : vector<2x512xf32>
    %42 = vector.extract_strided_slice %41 {offsets = [0, 0], sizes = [2, 128], strides = [1, 1]} : vector<2x512xf32> to vector<2x128xf32>
    %43 = arith.negf %42 : vector<2x128xf32>
    %44 = math.exp %43 : vector<2x128xf32>
    %cst_14 = arith.constant 1.000000e+00 : f32
    %45 = vector.broadcast %cst_14 : f32 to vector<2x128xf32>
    %46 = arith.addf %45, %44 : vector<2x128xf32>
    %47 = arith.divf %45, %46 : vector<2x128xf32>
    %48 = vector.extract_strided_slice %41 {offsets = [0, 128], sizes = [2, 128], strides = [1, 1]} : vector<2x512xf32> to vector<2x128xf32>
    %49 = arith.negf %48 : vector<2x128xf32>
    %50 = math.exp %49 : vector<2x128xf32>
    %cst_15 = arith.constant 1.000000e+00 : f32
    %51 = vector.broadcast %cst_15 : f32 to vector<2x128xf32>
    %52 = arith.addf %51, %50 : vector<2x128xf32>
    %53 = arith.divf %51, %52 : vector<2x128xf32>
    %54 = vector.extract_strided_slice %41 {offsets = [0, 256], sizes = [2, 128], strides = [1, 1]} : vector<2x512xf32> to vector<2x128xf32>
    %55 = math.tanh %54 : vector<2x128xf32>
    %56 = vector.extract_strided_slice %41 {offsets = [0, 384], sizes = [2, 128], strides = [1, 1]} : vector<2x512xf32> to vector<2x128xf32>
    %57 = arith.negf %56 : vector<2x128xf32>
    %58 = math.exp %57 : vector<2x128xf32>
    %cst_16 = arith.constant 1.000000e+00 : f32
    %59 = vector.broadcast %cst_16 : f32 to vector<2x128xf32>
    %60 = arith.addf %59, %58 : vector<2x128xf32>
    %61 = arith.divf %59, %60 : vector<2x128xf32>
    %62 = arith.mulf %53, %31 : vector<2x128xf32>
    %63 = arith.mulf %47, %55 : vector<2x128xf32>
    %64 = arith.addf %62, %63 : vector<2x128xf32>
    %65 = math.tanh %64 : vector<2x128xf32>
    %66 = arith.mulf %61, %65 : vector<2x128xf32>
    %67 = arith.truncf %66 : vector<2x128xf32> to vector<2x128xbf16>
    %c2 = arith.constant 2 : index
    %c0_17 = arith.constant 0 : index
    %68 = vector.load %arg13[%c2, %c0_17] : memref<16x128xbf16, #tpu.memory_space<vmem>>, vector<2x128xbf16>
    tpu.vector_store %arg13[%c2, %c0_17], %67 {strides = array<i32>} : memref<16x128xbf16, #tpu.memory_space<vmem>>, vector<2x128xbf16>,
    %c0_18 = arith.constant 0 : index
    %c2_19 = arith.constant 2 : index
    %c0_20 = arith.constant 0 : index
    %69 = vector.load %arg0[%c0_18, %c2_19, %c0_20] : memref<2x8x512xbf16, #tpu.memory_space<vmem>>, vector<2x1x512xbf16>
    %70 = vector.shape_cast %69 : vector<2x1x512xbf16> to vector<2x512xbf16>
    %71 = arith.extf %70 : vector<2x512xbf16> to vector<2x512xf32>
    %72 = arith.truncf %66 : vector<2x128xf32> to vector<2x128xbf16>
    %cst_21 = arith.constant dense<0.000000e+00> : vector<2x512xf32>
    %73 = tpu.matmul %72, %0, %cst_21 {dimension_numbers = #tpu.dot_dimension_numbers<[1], [0], [0], [1], [0, 0, 1, 1], [], []>} : vector<2x128xbf16>, vector<128x512xbf16>, vector<2x512xf32> -> vector<2x512xf32>
    %74 = arith.addf %71, %73 : vector<2x512xf32>
    %75 = vector.extract_strided_slice %74 {offsets = [0, 0], sizes = [2, 128], strides = [1, 1]} : vector<2x512xf32> to vector<2x128xf32>
    %76 = arith.negf %75 : vector<2x128xf32>
    %77 = math.exp %76 : vector<2x128xf32>
    %cst_22 = arith.constant 1.000000e+00 : f32
    %78 = vector.broadcast %cst_22 : f32 to vector<2x128xf32>
    %79 = arith.addf %78, %77 : vector<2x128xf32>
    %80 = arith.divf %78, %79 : vector<2x128xf32>
    %81 = vector.extract_strided_slice %74 {offsets = [0, 128], sizes = [2, 128], strides = [1, 1]} : vector<2x512xf32> to vector<2x128xf32>
    %82 = arith.negf %81 : vector<2x128xf32>
    %83 = math.exp %82 : vector<2x128xf32>
    %cst_23 = arith.constant 1.000000e+00 : f32
    %84 = vector.broadcast %cst_23 : f32 to vector<2x128xf32>
    %85 = arith.addf %84, %83 : vector<2x128xf32>
    %86 = arith.divf %84, %85 : vector<2x128xf32>
    %87 = vector.extract_strided_slice %74 {offsets = [0, 256], sizes = [2, 128], strides = [1, 1]} : vector<2x512xf32> to vector<2x128xf32>
    %88 = math.tanh %87 : vector<2x128xf32>
    %89 = vector.extract_strided_slice %74 {offsets = [0, 384], sizes = [2, 128], strides = [1, 1]} : vector<2x512xf32> to vector<2x128xf32>
    %90 = arith.negf %89 : vector<2x128xf32>
    %91 = math.exp %90 : vector<2x128xf32>
    %cst_24 = arith.constant 1.000000e+00 : f32
    %92 = vector.broadcast %cst_24 : f32 to vector<2x128xf32>
    %93 = arith.addf %92, %91 : vector<2x128xf32>
    %94 = arith.divf %92, %93 : vector<2x128xf32>
    %95 = arith.mulf %86, %64 : vector<2x128xf32>
    %96 = arith.mulf %80, %88 : vector<2x128xf32>
    %97 = arith.addf %95, %96 : vector<2x128xf32>
    %98 = math.tanh %97 : vector<2x128xf32>
    %99 = arith.mulf %94, %98 : vector<2x128xf32>
    %100 = arith.truncf %99 : vector<2x128xf32> to vector<2x128xbf16>
    %c4 = arith.constant 4 : index
    %c0_25 = arith.constant 0 : index
    %101 = vector.load %arg13[%c4, %c0_25] : memref<16x128xbf16, #tpu.memory_space<vmem>>, vector<2x128xbf16>
    tpu.vector_store %arg13[%c4, %c0_25], %100 {strides = array<i32>} : memref<16x128xbf16, #tpu.memory_space<vmem>>, vector<2x128xbf16>,
    %c0_26 = arith.constant 0 : index
    %c3 = arith.constant 3 : index
    %c0_27 = arith.constant 0 : index
    %102 = vector.load %arg0[%c0_26, %c3, %c0_27] : memref<2x8x512xbf16, #tpu.memory_space<vmem>>, vector<2x1x512xbf16>
    %103 = vector.shape_cast %102 : vector<2x1x512xbf16> to vector<2x512xbf16>
    %104 = arith.extf %103 : vector<2x512xbf16> to vector<2x512xf32>
    %105 = arith.truncf %99 : vector<2x128xf32> to vector<2x128xbf16>
    %cst_28 = arith.constant dense<0.000000e+00> : vector<2x512xf32>
    %106 = tpu.matmul %105, %0, %cst_28 {dimension_numbers = #tpu.dot_dimension_numbers<[1], [0], [0], [1], [0, 0, 1, 1], [], []>} : vector<2x128xbf16>, vector<128x512xbf16>, vector<2x512xf32> -> vector<2x512xf32>
    %107 = arith.addf %104, %106 : vector<2x512xf32>
    %108 = vector.extract_strided_slice %107 {offsets = [0, 0], sizes = [2, 128], strides = [1, 1]} : vector<2x512xf32> to vector<2x128xf32>
    %109 = arith.negf %108 : vector<2x128xf32>
    %110 = math.exp %109 : vector<2x128xf32>
    %cst_29 = arith.constant 1.000000e+00 : f32
    %111 = vector.broadcast %cst_29 : f32 to vector<2x128xf32>
    %112 = arith.addf %111, %110 : vector<2x128xf32>
    %113 = arith.divf %111, %112 : vector<2x128xf32>
    %114 = vector.extract_strided_slice %107 {offsets = [0, 128], sizes = [2, 128], strides = [1, 1]} : vector<2x512xf32> to vector<2x128xf32>
    %115 = arith.negf %114 : vector<2x128xf32>
    %116 = math.exp %115 : vector<2x128xf32>
    %cst_30 = arith.constant 1.000000e+00 : f32
    %117 = vector.broadcast %cst_30 : f32 to vector<2x128xf32>
    %118 = arith.addf %117, %116 : vector<2x128xf32>
    %119 = arith.divf %117, %118 : vector<2x128xf32>
    %120 = vector.extract_strided_slice %107 {offsets = [0, 256], sizes = [2, 128], strides = [1, 1]} : vector<2x512xf32> to vector<2x128xf32>
    %121 = math.tanh %120 : vector<2x128xf32>
    %122 = vector.extract_strided_slice %107 {offsets = [0, 384], sizes = [2, 128], strides = [1, 1]} : vector<2x512xf32> to vector<2x128xf32>
    %123 = arith.negf %122 : vector<2x128xf32>
    %124 = math.exp %123 : vector<2x128xf32>
    %cst_31 = arith.constant 1.000000e+00 : f32
    %125 = vector.broadcast %cst_31 : f32 to vector<2x128xf32>
    %126 = arith.addf %125, %124 : vector<2x128xf32>
    %127 = arith.divf %125, %126 : vector<2x128xf32>
    %128 = arith.mulf %119, %97 : vector<2x128xf32>
    %129 = arith.mulf %113, %121 : vector<2x128xf32>
    %130 = arith.addf %128, %129 : vector<2x128xf32>
    %131 = math.tanh %130 : vector<2x128xf32>
    %132 = arith.mulf %127, %131 : vector<2x128xf32>
    %133 = arith.truncf %132 : vector<2x128xf32> to vector<2x128xbf16>
    %c6 = arith.constant 6 : index
    %c0_32 = arith.constant 0 : index
    %134 = vector.load %arg13[%c6, %c0_32] : memref<16x128xbf16, #tpu.memory_space<vmem>>, vector<2x128xbf16>
    tpu.vector_store %arg13[%c6, %c0_32], %133 {strides = array<i32>} : memref<16x128xbf16, #tpu.memory_space<vmem>>, vector<2x128xbf16>,
    %c0_33 = arith.constant 0 : index
    %c4_34 = arith.constant 4 : index
    %c0_35 = arith.constant 0 : index
    %135 = vector.load %arg0[%c0_33, %c4_34, %c0_35] : memref<2x8x512xbf16, #tpu.memory_space<vmem>>, vector<2x1x512xbf16>
    %136 = vector.shape_cast %135 : vector<2x1x512xbf16> to vector<2x512xbf16>
    %137 = arith.extf %136 : vector<2x512xbf16> to vector<2x512xf32>
    %138 = arith.truncf %132 : vector<2x128xf32> to vector<2x128xbf16>
    %cst_36 = arith.constant dense<0.000000e+00> : vector<2x512xf32>
    %139 = tpu.matmul %138, %0, %cst_36 {dimension_numbers = #tpu.dot_dimension_numbers<[1], [0], [0], [1], [0, 0, 1, 1], [], []>} : vector<2x128xbf16>, vector<128x512xbf16>, vector<2x512xf32> -> vector<2x512xf32>
    %140 = arith.addf %137, %139 : vector<2x512xf32>
    %141 = vector.extract_strided_slice %140 {offsets = [0, 0], sizes = [2, 128], strides = [1, 1]} : vector<2x512xf32> to vector<2x128xf32>
    %142 = arith.negf %141 : vector<2x128xf32>
    %143 = math.exp %142 : vector<2x128xf32>
    %cst_37 = arith.constant 1.000000e+00 : f32
    %144 = vector.broadcast %cst_37 : f32 to vector<2x128xf32>
    %145 = arith.addf %144, %143 : vector<2x128xf32>
    %146 = arith.divf %144, %145 : vector<2x128xf32>
    %147 = vector.extract_strided_slice %140 {offsets = [0, 128], sizes = [2, 128], strides = [1, 1]} : vector<2x512xf32> to vector<2x128xf32>
    %148 = arith.negf %147 : vector<2x128xf32>
    %149 = math.exp %148 : vector<2x128xf32>
    %cst_38 = arith.constant 1.000000e+00 : f32
    %150 = vector.broadcast %cst_38 : f32 to vector<2x128xf32>
    %151 = arith.addf %150, %149 : vector<2x128xf32>
    %152 = arith.divf %150, %151 : vector<2x128xf32>
    %153 = vector.extract_strided_slice %140 {offsets = [0, 256], sizes = [2, 128], strides = [1, 1]} : vector<2x512xf32> to vector<2x128xf32>
    %154 = math.tanh %153 : vector<2x128xf32>
    %155 = vector.extract_strided_slice %140 {offsets = [0, 384], sizes = [2, 128], strides = [1, 1]} : vector<2x512xf32> to vector<2x128xf32>
    %156 = arith.negf %155 : vector<2x128xf32>
    %157 = math.exp %156 : vector<2x128xf32>
    %cst_39 = arith.constant 1.000000e+00 : f32
    %158 = vector.broadcast %cst_39 : f32 to vector<2x128xf32>
    %159 = arith.addf %158, %157 : vector<2x128xf32>
    %160 = arith.divf %158, %159 : vector<2x128xf32>
    %161 = arith.mulf %152, %130 : vector<2x128xf32>
    %162 = arith.mulf %146, %154 : vector<2x128xf32>
    %163 = arith.addf %161, %162 : vector<2x128xf32>
    %164 = math.tanh %163 : vector<2x128xf32>
    %165 = arith.mulf %160, %164 : vector<2x128xf32>
    %166 = arith.truncf %165 : vector<2x128xf32> to vector<2x128xbf16>
    %c8 = arith.constant 8 : index
    %c0_40 = arith.constant 0 : index
    %167 = vector.load %arg13[%c8, %c0_40] : memref<16x128xbf16, #tpu.memory_space<vmem>>, vector<2x128xbf16>
    tpu.vector_store %arg13[%c8, %c0_40], %166 {strides = array<i32>} : memref<16x128xbf16, #tpu.memory_space<vmem>>, vector<2x128xbf16>,
    %c0_41 = arith.constant 0 : index
    %c5 = arith.constant 5 : index
    %c0_42 = arith.constant 0 : index
    %168 = vector.load %arg0[%c0_41, %c5, %c0_42] : memref<2x8x512xbf16, #tpu.memory_space<vmem>>, vector<2x1x512xbf16>
    %169 = vector.shape_cast %168 : vector<2x1x512xbf16> to vector<2x512xbf16>
    %170 = arith.extf %169 : vector<2x512xbf16> to vector<2x512xf32>
    %171 = arith.truncf %165 : vector<2x128xf32> to vector<2x128xbf16>
    %cst_43 = arith.constant dense<0.000000e+00> : vector<2x512xf32>
    %172 = tpu.matmul %171, %0, %cst_43 {dimension_numbers = #tpu.dot_dimension_numbers<[1], [0], [0], [1], [0, 0, 1, 1], [], []>} : vector<2x128xbf16>, vector<128x512xbf16>, vector<2x512xf32> -> vector<2x512xf32>
    %173 = arith.addf %170, %172 : vector<2x512xf32>
    %174 = vector.extract_strided_slice %173 {offsets = [0, 0], sizes = [2, 128], strides = [1, 1]} : vector<2x512xf32> to vector<2x128xf32>
    %175 = arith.negf %174 : vector<2x128xf32>
    %176 = math.exp %175 : vector<2x128xf32>
    %cst_44 = arith.constant 1.000000e+00 : f32
    %177 = vector.broadcast %cst_44 : f32 to vector<2x128xf32>
    %178 = arith.addf %177, %176 : vector<2x128xf32>
    %179 = arith.divf %177, %178 : vector<2x128xf32>
    %180 = vector.extract_strided_slice %173 {offsets = [0, 128], sizes = [2, 128], strides = [1, 1]} : vector<2x512xf32> to vector<2x128xf32>
    %181 = arith.negf %180 : vector<2x128xf32>
    %182 = math.exp %181 : vector<2x128xf32>
    %cst_45 = arith.constant 1.000000e+00 : f32
    %183 = vector.broadcast %cst_45 : f32 to vector<2x128xf32>
    %184 = arith.addf %183, %182 : vector<2x128xf32>
    %185 = arith.divf %183, %184 : vector<2x128xf32>
    %186 = vector.extract_strided_slice %173 {offsets = [0, 256], sizes = [2, 128], strides = [1, 1]} : vector<2x512xf32> to vector<2x128xf32>
    %187 = math.tanh %186 : vector<2x128xf32>
    %188 = vector.extract_strided_slice %173 {offsets = [0, 384], sizes = [2, 128], strides = [1, 1]} : vector<2x512xf32> to vector<2x128xf32>
    %189 = arith.negf %188 : vector<2x128xf32>
    %190 = math.exp %189 : vector<2x128xf32>
    %cst_46 = arith.constant 1.000000e+00 : f32
    %191 = vector.broadcast %cst_46 : f32 to vector<2x128xf32>
    %192 = arith.addf %191, %190 : vector<2x128xf32>
    %193 = arith.divf %191, %192 : vector<2x128xf32>
    %194 = arith.mulf %185, %163 : vector<2x128xf32>
    %195 = arith.mulf %179, %187 : vector<2x128xf32>
    %196 = arith.addf %194, %195 : vector<2x128xf32>
    %197 = math.tanh %196 : vector<2x128xf32>
    %198 = arith.mulf %193, %197 : vector<2x128xf32>
    %199 = arith.truncf %198 : vector<2x128xf32> to vector<2x128xbf16>
    %c10 = arith.constant 10 : index
    %c0_47 = arith.constant 0 : index
    %200 = vector.load %arg13[%c10, %c0_47] : memref<16x128xbf16, #tpu.memory_space<vmem>>, vector<2x128xbf16>
    tpu.vector_store %arg13[%c10, %c0_47], %199 {strides = array<i32>} : memref<16x128xbf16, #tpu.memory_space<vmem>>, vector<2x128xbf16>,
    %c0_48 = arith.constant 0 : index
    %c6_49 = arith.constant 6 : index
    %c0_50 = arith.constant 0 : index
    %201 = vector.load %arg0[%c0_48, %c6_49, %c0_50] : memref<2x8x512xbf16, #tpu.memory_space<vmem>>, vector<2x1x512xbf16>
    %202 = vector.shape_cast %201 : vector<2x1x512xbf16> to vector<2x512xbf16>
    %203 = arith.extf %202 : vector<2x512xbf16> to vector<2x512xf32>
    %204 = arith.truncf %198 : vector<2x128xf32> to vector<2x128xbf16>
    %cst_51 = arith.constant dense<0.000000e+00> : vector<2x512xf32>
    %205 = tpu.matmul %204, %0, %cst_51 {dimension_numbers = #tpu.dot_dimension_numbers<[1], [0], [0], [1], [0, 0, 1, 1], [], []>} : vector<2x128xbf16>, vector<128x512xbf16>, vector<2x512xf32> -> vector<2x512xf32>
    %206 = arith.addf %203, %205 : vector<2x512xf32>
    %207 = vector.extract_strided_slice %206 {offsets = [0, 0], sizes = [2, 128], strides = [1, 1]} : vector<2x512xf32> to vector<2x128xf32>
    %208 = arith.negf %207 : vector<2x128xf32>
    %209 = math.exp %208 : vector<2x128xf32>
    %cst_52 = arith.constant 1.000000e+00 : f32
    %210 = vector.broadcast %cst_52 : f32 to vector<2x128xf32>
    %211 = arith.addf %210, %209 : vector<2x128xf32>
    %212 = arith.divf %210, %211 : vector<2x128xf32>
    %213 = vector.extract_strided_slice %206 {offsets = [0, 128], sizes = [2, 128], strides = [1, 1]} : vector<2x512xf32> to vector<2x128xf32>
    %214 = arith.negf %213 : vector<2x128xf32>
    %215 = math.exp %214 : vector<2x128xf32>
    %cst_53 = arith.constant 1.000000e+00 : f32
    %216 = vector.broadcast %cst_53 : f32 to vector<2x128xf32>
    %217 = arith.addf %216, %215 : vector<2x128xf32>
    %218 = arith.divf %216, %217 : vector<2x128xf32>
    %219 = vector.extract_strided_slice %206 {offsets = [0, 256], sizes = [2, 128], strides = [1, 1]} : vector<2x512xf32> to vector<2x128xf32>
    %220 = math.tanh %219 : vector<2x128xf32>
    %221 = vector.extract_strided_slice %206 {offsets = [0, 384], sizes = [2, 128], strides = [1, 1]} : vector<2x512xf32> to vector<2x128xf32>
    %222 = arith.negf %221 : vector<2x128xf32>
    %223 = math.exp %222 : vector<2x128xf32>
    %cst_54 = arith.constant 1.000000e+00 : f32
    %224 = vector.broadcast %cst_54 : f32 to vector<2x128xf32>
    %225 = arith.addf %224, %223 : vector<2x128xf32>
    %226 = arith.divf %224, %225 : vector<2x128xf32>
    %227 = arith.mulf %218, %196 : vector<2x128xf32>
    %228 = arith.mulf %212, %220 : vector<2x128xf32>
    %229 = arith.addf %227, %228 : vector<2x128xf32>
    %230 = math.tanh %229 : vector<2x128xf32>
    %231 = arith.mulf %226, %230 : vector<2x128xf32>
    %232 = arith.truncf %231 : vector<2x128xf32> to vector<2x128xbf16>
    %c12 = arith.constant 12 : index
    %c0_55 = arith.constant 0 : index
    %233 = vector.load %arg13[%c12, %c0_55] : memref<16x128xbf16, #tpu.memory_space<vmem>>, vector<2x128xbf16>
    tpu.vector_store %arg13[%c12, %c0_55], %232 {strides = array<i32>} : memref<16x128xbf16, #tpu.memory_space<vmem>>, vector<2x128xbf16>,
    %c0_56 = arith.constant 0 : index
    %c7 = arith.constant 7 : index
    %c0_57 = arith.constant 0 : index
    %234 = vector.load %arg0[%c0_56, %c7, %c0_57] : memref<2x8x512xbf16, #tpu.memory_space<vmem>>, vector<2x1x512xbf16>
    %235 = vector.shape_cast %234 : vector<2x1x512xbf16> to vector<2x512xbf16>
    %236 = arith.extf %235 : vector<2x512xbf16> to vector<2x512xf32>
    %237 = arith.truncf %231 : vector<2x128xf32> to vector<2x128xbf16>
    %cst_58 = arith.constant dense<0.000000e+00> : vector<2x512xf32>
    %238 = tpu.matmul %237, %0, %cst_58 {dimension_numbers = #tpu.dot_dimension_numbers<[1], [0], [0], [1], [0, 0, 1, 1], [], []>} : vector<2x128xbf16>, vector<128x512xbf16>, vector<2x512xf32> -> vector<2x512xf32>
    %239 = arith.addf %236, %238 : vector<2x512xf32>
    %240 = vector.extract_strided_slice %239 {offsets = [0, 0], sizes = [2, 128], strides = [1, 1]} : vector<2x512xf32> to vector<2x128xf32>
    %241 = arith.negf %240 : vector<2x128xf32>
    %242 = math.exp %241 : vector<2x128xf32>
    %cst_59 = arith.constant 1.000000e+00 : f32
    %243 = vector.broadcast %cst_59 : f32 to vector<2x128xf32>
    %244 = arith.addf %243, %242 : vector<2x128xf32>
    %245 = arith.divf %243, %244 : vector<2x128xf32>
    %246 = vector.extract_strided_slice %239 {offsets = [0, 128], sizes = [2, 128], strides = [1, 1]} : vector<2x512xf32> to vector<2x128xf32>
    %247 = arith.negf %246 : vector<2x128xf32>
    %248 = math.exp %247 : vector<2x128xf32>
    %cst_60 = arith.constant 1.000000e+00 : f32
    %249 = vector.broadcast %cst_60 : f32 to vector<2x128xf32>
    %250 = arith.addf %249, %248 : vector<2x128xf32>
    %251 = arith.divf %249, %250 : vector<2x128xf32>
    %252 = vector.extract_strided_slice %239 {offsets = [0, 256], sizes = [2, 128], strides = [1, 1]} : vector<2x512xf32> to vector<2x128xf32>
    %253 = math.tanh %252 : vector<2x128xf32>
    %254 = vector.extract_strided_slice %239 {offsets = [0, 384], sizes = [2, 128], strides = [1, 1]} : vector<2x512xf32> to vector<2x128xf32>
    %255 = arith.negf %254 : vector<2x128xf32>
    %256 = math.exp %255 : vector<2x128xf32>
    %cst_61 = arith.constant 1.000000e+00 : f32
    %257 = vector.broadcast %cst_61 : f32 to vector<2x128xf32>
    %258 = arith.addf %257, %256 : vector<2x128xf32>
    %259 = arith.divf %257, %258 : vector<2x128xf32>
    %260 = arith.mulf %251, %229 : vector<2x128xf32>
    %261 = arith.mulf %245, %253 : vector<2x128xf32>
    %262 = arith.addf %260, %261 : vector<2x128xf32>
    %263 = math.tanh %262 : vector<2x128xf32>
    %264 = arith.mulf %259, %263 : vector<2x128xf32>
    %265 = arith.truncf %264 : vector<2x128xf32> to vector<2x128xbf16>
    %c14 = arith.constant 14 : index
    %c0_62 = arith.constant 0 : index
    %266 = vector.load %arg13[%c14, %c0_62] : memref<16x128xbf16, #tpu.memory_space<vmem>>, vector<2x128xbf16>
    tpu.vector_store %arg13[%c14, %c0_62], %265 {strides = array<i32>} : memref<16x128xbf16, #tpu.memory_space<vmem>>, vector<2x128xbf16>,
    %c0_63 = arith.constant 0 : index
    %c0_64 = arith.constant 0 : index
    %267 = vector.load %arg13[%c0_63, %c0_64] : memref<16x128xbf16, #tpu.memory_space<vmem>>, vector<16x128xbf16>
    %c0_65 = arith.constant 0 : index
    %c0_66 = arith.constant 0 : index
    %268 = vector.load %arg2[%c0_65, %c0_66] : memref<128x512xbf16, #tpu.memory_space<vmem>>, vector<128x512xbf16>
    %cst_67 = arith.constant dense<0.000000e+00> : vector<16x512xf32>
    %269 = tpu.matmul %267, %268, %cst_67 {dimension_numbers = #tpu.dot_dimension_numbers<[1], [0], [0], [1], [0, 0, 1, 1], [], []>} : vector<16x128xbf16>, vector<128x512xbf16>, vector<16x512xf32> -> vector<16x512xf32>
    %c0_68 = arith.constant 0 : index
    %c0_69 = arith.constant 0 : index
    %270 = vector.load %arg4[%c0_68, %c0_69] : memref<1x512xf32, #tpu.memory_space<vmem>>, vector<1x512xf32>
    %271 = vector.broadcast %270 : vector<1x512xf32> to vector<16x512xf32>
    %272 = arith.addf %269, %271 : vector<16x512xf32>
    %273 = arith.truncf %272 : vector<16x512xf32> to vector<16x512xbf16>
    %c0_70 = arith.constant 0 : index
    %c0_71 = arith.constant 0 : index
    %274 = vector.load %arg12[%c0_70, %c0_71] : memref<16x512xbf16, #tpu.memory_space<vmem>>, vector<16x512xbf16>
    tpu.vector_store %arg12[%c0_70, %c0_71], %273 {strides = array<i32>} : memref<16x512xbf16, #tpu.memory_space<vmem>>, vector<16x512xbf16>,
    %c0_72 = arith.constant 0 : index
    %c0_73 = arith.constant 0 : index
    %275 = vector.load %arg3[%c0_72, %c0_73] : memref<128x512xbf16, #tpu.memory_space<vmem>>, vector<128x512xbf16>
    %cst_74 = arith.constant 0.000000e+00 : f32
    %276 = vector.broadcast %cst_74 : f32 to vector<2x128xf32>
    %cst_75 = arith.constant 0.000000e+00 : f32
    %277 = vector.broadcast %cst_75 : f32 to vector<2x128xf32>
    %c0_76 = arith.constant 0 : index
    %c0_77 = arith.constant 0 : index
    %278 = vector.load %arg12[%c0_76, %c0_77] : memref<16x512xbf16, #tpu.memory_space<vmem>>, vector<2x512xbf16>
    %279 = arith.extf %278 : vector<2x512xbf16> to vector<2x512xf32>
    %280 = arith.truncf %276 : vector<2x128xf32> to vector<2x128xbf16>
    %cst_78 = arith.constant dense<0.000000e+00> : vector<2x512xf32>
    %281 = tpu.matmul %280, %275, %cst_78 {dimension_numbers = #tpu.dot_dimension_numbers<[1], [0], [0], [1], [0, 0, 1, 1], [], []>} : vector<2x128xbf16>, vector<128x512xbf16>, vector<2x512xf32> -> vector<2x512xf32>
    %282 = arith.addf %279, %281 : vector<2x512xf32>
    %283 = vector.extract_strided_slice %282 {offsets = [0, 0], sizes = [2, 128], strides = [1, 1]} : vector<2x512xf32> to vector<2x128xf32>
    %284 = arith.negf %283 : vector<2x128xf32>
    %285 = math.exp %284 : vector<2x128xf32>
    %cst_79 = arith.constant 1.000000e+00 : f32
    %286 = vector.broadcast %cst_79 : f32 to vector<2x128xf32>
    %287 = arith.addf %286, %285 : vector<2x128xf32>
    %288 = arith.divf %286, %287 : vector<2x128xf32>
    %289 = vector.extract_strided_slice %282 {offsets = [0, 128], sizes = [2, 128], strides = [1, 1]} : vector<2x512xf32> to vector<2x128xf32>
    %290 = arith.negf %289 : vector<2x128xf32>
    %291 = math.exp %290 : vector<2x128xf32>
    %cst_80 = arith.constant 1.000000e+00 : f32
    %292 = vector.broadcast %cst_80 : f32 to vector<2x128xf32>
    %293 = arith.addf %292, %291 : vector<2x128xf32>
    %294 = arith.divf %292, %293 : vector<2x128xf32>
    %295 = vector.extract_strided_slice %282 {offsets = [0, 256], sizes = [2, 128], strides = [1, 1]} : vector<2x512xf32> to vector<2x128xf32>
    %296 = math.tanh %295 : vector<2x128xf32>
    %297 = vector.extract_strided_slice %282 {offsets = [0, 384], sizes = [2, 128], strides = [1, 1]} : vector<2x512xf32> to vector<2x128xf32>
    %298 = arith.negf %297 : vector<2x128xf32>
    %299 = math.exp %298 : vector<2x128xf32>
    %cst_81 = arith.constant 1.000000e+00 : f32
    %300 = vector.broadcast %cst_81 : f32 to vector<2x128xf32>
    %301 = arith.addf %300, %299 : vector<2x128xf32>
    %302 = arith.divf %300, %301 : vector<2x128xf32>
    %303 = arith.mulf %294, %277 : vector<2x128xf32>
    %304 = arith.mulf %288, %296 : vector<2x128xf32>
    %305 = arith.addf %303, %304 : vector<2x128xf32>
    %306 = math.tanh %305 : vector<2x128xf32>
    %307 = arith.mulf %302, %306 : vector<2x128xf32>
    %c2_82 = arith.constant 2 : index
    %c0_83 = arith.constant 0 : index
    %308 = vector.load %arg12[%c2_82, %c0_83] : memref<16x512xbf16, #tpu.memory_space<vmem>>, vector<2x512xbf16>
    %309 = arith.extf %308 : vector<2x512xbf16> to vector<2x512xf32>
    %310 = arith.truncf %307 : vector<2x128xf32> to vector<2x128xbf16>
    %cst_84 = arith.constant dense<0.000000e+00> : vector<2x512xf32>
    %311 = tpu.matmul %310, %275, %cst_84 {dimension_numbers = #tpu.dot_dimension_numbers<[1], [0], [0], [1], [0, 0, 1, 1], [], []>} : vector<2x128xbf16>, vector<128x512xbf16>, vector<2x512xf32> -> vector<2x512xf32>
    %312 = arith.addf %309, %311 : vector<2x512xf32>
    %313 = vector.extract_strided_slice %312 {offsets = [0, 0], sizes = [2, 128], strides = [1, 1]} : vector<2x512xf32> to vector<2x128xf32>
    %314 = arith.negf %313 : vector<2x128xf32>
    %315 = math.exp %314 : vector<2x128xf32>
    %cst_85 = arith.constant 1.000000e+00 : f32
    %316 = vector.broadcast %cst_85 : f32 to vector<2x128xf32>
    %317 = arith.addf %316, %315 : vector<2x128xf32>
    %318 = arith.divf %316, %317 : vector<2x128xf32>
    %319 = vector.extract_strided_slice %312 {offsets = [0, 128], sizes = [2, 128], strides = [1, 1]} : vector<2x512xf32> to vector<2x128xf32>
    %320 = arith.negf %319 : vector<2x128xf32>
    %321 = math.exp %320 : vector<2x128xf32>
    %cst_86 = arith.constant 1.000000e+00 : f32
    %322 = vector.broadcast %cst_86 : f32 to vector<2x128xf32>
    %323 = arith.addf %322, %321 : vector<2x128xf32>
    %324 = arith.divf %322, %323 : vector<2x128xf32>
    %325 = vector.extract_strided_slice %312 {offsets = [0, 256], sizes = [2, 128], strides = [1, 1]} : vector<2x512xf32> to vector<2x128xf32>
    %326 = math.tanh %325 : vector<2x128xf32>
    %327 = vector.extract_strided_slice %312 {offsets = [0, 384], sizes = [2, 128], strides = [1, 1]} : vector<2x512xf32> to vector<2x128xf32>
    %328 = arith.negf %327 : vector<2x128xf32>
    %329 = math.exp %328 : vector<2x128xf32>
    %cst_87 = arith.constant 1.000000e+00 : f32
    %330 = vector.broadcast %cst_87 : f32 to vector<2x128xf32>
    %331 = arith.addf %330, %329 : vector<2x128xf32>
    %332 = arith.divf %330, %331 : vector<2x128xf32>
    %333 = arith.mulf %324, %305 : vector<2x128xf32>
    %334 = arith.mulf %318, %326 : vector<2x128xf32>
    %335 = arith.addf %333, %334 : vector<2x128xf32>
    %336 = math.tanh %335 : vector<2x128xf32>
    %337 = arith.mulf %332, %336 : vector<2x128xf32>
    %c4_88 = arith.constant 4 : index
    %c0_89 = arith.constant 0 : index
    %338 = vector.load %arg12[%c4_88, %c0_89] : memref<16x512xbf16, #tpu.memory_space<vmem>>, vector<2x512xbf16>
    %339 = arith.extf %338 : vector<2x512xbf16> to vector<2x512xf32>
    %340 = arith.truncf %337 : vector<2x128xf32> to vector<2x128xbf16>
    %cst_90 = arith.constant dense<0.000000e+00> : vector<2x512xf32>
    %341 = tpu.matmul %340, %275, %cst_90 {dimension_numbers = #tpu.dot_dimension_numbers<[1], [0], [0], [1], [0, 0, 1, 1], [], []>} : vector<2x128xbf16>, vector<128x512xbf16>, vector<2x512xf32> -> vector<2x512xf32>
    %342 = arith.addf %339, %341 : vector<2x512xf32>
    %343 = vector.extract_strided_slice %342 {offsets = [0, 0], sizes = [2, 128], strides = [1, 1]} : vector<2x512xf32> to vector<2x128xf32>
    %344 = arith.negf %343 : vector<2x128xf32>
    %345 = math.exp %344 : vector<2x128xf32>
    %cst_91 = arith.constant 1.000000e+00 : f32
    %346 = vector.broadcast %cst_91 : f32 to vector<2x128xf32>
    %347 = arith.addf %346, %345 : vector<2x128xf32>
    %348 = arith.divf %346, %347 : vector<2x128xf32>
    %349 = vector.extract_strided_slice %342 {offsets = [0, 128], sizes = [2, 128], strides = [1, 1]} : vector<2x512xf32> to vector<2x128xf32>
    %350 = arith.negf %349 : vector<2x128xf32>
    %351 = math.exp %350 : vector<2x128xf32>
    %cst_92 = arith.constant 1.000000e+00 : f32
    %352 = vector.broadcast %cst_92 : f32 to vector<2x128xf32>
    %353 = arith.addf %352, %351 : vector<2x128xf32>
    %354 = arith.divf %352, %353 : vector<2x128xf32>
    %355 = vector.extract_strided_slice %342 {offsets = [0, 256], sizes = [2, 128], strides = [1, 1]} : vector<2x512xf32> to vector<2x128xf32>
    %356 = math.tanh %355 : vector<2x128xf32>
    %357 = vector.extract_strided_slice %342 {offsets = [0, 384], sizes = [2, 128], strides = [1, 1]} : vector<2x512xf32> to vector<2x128xf32>
    %358 = arith.negf %357 : vector<2x128xf32>
    %359 = math.exp %358 : vector<2x128xf32>
    %cst_93 = arith.constant 1.000000e+00 : f32
    %360 = vector.broadcast %cst_93 : f32 to vector<2x128xf32>
    %361 = arith.addf %360, %359 : vector<2x128xf32>
    %362 = arith.divf %360, %361 : vector<2x128xf32>
    %363 = arith.mulf %354, %335 : vector<2x128xf32>
    %364 = arith.mulf %348, %356 : vector<2x128xf32>
    %365 = arith.addf %363, %364 : vector<2x128xf32>
    %366 = math.tanh %365 : vector<2x128xf32>
    %367 = arith.mulf %362, %366 : vector<2x128xf32>
    %c6_94 = arith.constant 6 : index
    %c0_95 = arith.constant 0 : index
    %368 = vector.load %arg12[%c6_94, %c0_95] : memref<16x512xbf16, #tpu.memory_space<vmem>>, vector<2x512xbf16>
    %369 = arith.extf %368 : vector<2x512xbf16> to vector<2x512xf32>
    %370 = arith.truncf %367 : vector<2x128xf32> to vector<2x128xbf16>
    %cst_96 = arith.constant dense<0.000000e+00> : vector<2x512xf32>
    %371 = tpu.matmul %370, %275, %cst_96 {dimension_numbers = #tpu.dot_dimension_numbers<[1], [0], [0], [1], [0, 0, 1, 1], [], []>} : vector<2x128xbf16>, vector<128x512xbf16>, vector<2x512xf32> -> vector<2x512xf32>
    %372 = arith.addf %369, %371 : vector<2x512xf32>
    %373 = vector.extract_strided_slice %372 {offsets = [0, 0], sizes = [2, 128], strides = [1, 1]} : vector<2x512xf32> to vector<2x128xf32>
    %374 = arith.negf %373 : vector<2x128xf32>
    %375 = math.exp %374 : vector<2x128xf32>
    %cst_97 = arith.constant 1.000000e+00 : f32
    %376 = vector.broadcast %cst_97 : f32 to vector<2x128xf32>
    %377 = arith.addf %376, %375 : vector<2x128xf32>
    %378 = arith.divf %376, %377 : vector<2x128xf32>
    %379 = vector.extract_strided_slice %372 {offsets = [0, 128], sizes = [2, 128], strides = [1, 1]} : vector<2x512xf32> to vector<2x128xf32>
    %380 = arith.negf %379 : vector<2x128xf32>
    %381 = math.exp %380 : vector<2x128xf32>
    %cst_98 = arith.constant 1.000000e+00 : f32
    %382 = vector.broadcast %cst_98 : f32 to vector<2x128xf32>
    %383 = arith.addf %382, %381 : vector<2x128xf32>
    %384 = arith.divf %382, %383 : vector<2x128xf32>
    %385 = vector.extract_strided_slice %372 {offsets = [0, 256], sizes = [2, 128], strides = [1, 1]} : vector<2x512xf32> to vector<2x128xf32>
    %386 = math.tanh %385 : vector<2x128xf32>
    %387 = vector.extract_strided_slice %372 {offsets = [0, 384], sizes = [2, 128], strides = [1, 1]} : vector<2x512xf32> to vector<2x128xf32>
    %388 = arith.negf %387 : vector<2x128xf32>
    %389 = math.exp %388 : vector<2x128xf32>
    %cst_99 = arith.constant 1.000000e+00 : f32
    %390 = vector.broadcast %cst_99 : f32 to vector<2x128xf32>
    %391 = arith.addf %390, %389 : vector<2x128xf32>
    %392 = arith.divf %390, %391 : vector<2x128xf32>
    %393 = arith.mulf %384, %365 : vector<2x128xf32>
    %394 = arith.mulf %378, %386 : vector<2x128xf32>
    %395 = arith.addf %393, %394 : vector<2x128xf32>
    %396 = math.tanh %395 : vector<2x128xf32>
    %397 = arith.mulf %392, %396 : vector<2x128xf32>
    %c8_100 = arith.constant 8 : index
    %c0_101 = arith.constant 0 : index
    %398 = vector.load %arg12[%c8_100, %c0_101] : memref<16x512xbf16, #tpu.memory_space<vmem>>, vector<2x512xbf16>
    %399 = arith.extf %398 : vector<2x512xbf16> to vector<2x512xf32>
    %400 = arith.truncf %397 : vector<2x128xf32> to vector<2x128xbf16>
    %cst_102 = arith.constant dense<0.000000e+00> : vector<2x512xf32>
    %401 = tpu.matmul %400, %275, %cst_102 {dimension_numbers = #tpu.dot_dimension_numbers<[1], [0], [0], [1], [0, 0, 1, 1], [], []>} : vector<2x128xbf16>, vector<128x512xbf16>, vector<2x512xf32> -> vector<2x512xf32>
    %402 = arith.addf %399, %401 : vector<2x512xf32>
    %403 = vector.extract_strided_slice %402 {offsets = [0, 0], sizes = [2, 128], strides = [1, 1]} : vector<2x512xf32> to vector<2x128xf32>
    %404 = arith.negf %403 : vector<2x128xf32>
    %405 = math.exp %404 : vector<2x128xf32>
    %cst_103 = arith.constant 1.000000e+00 : f32
    %406 = vector.broadcast %cst_103 : f32 to vector<2x128xf32>
    %407 = arith.addf %406, %405 : vector<2x128xf32>
    %408 = arith.divf %406, %407 : vector<2x128xf32>
    %409 = vector.extract_strided_slice %402 {offsets = [0, 128], sizes = [2, 128], strides = [1, 1]} : vector<2x512xf32> to vector<2x128xf32>
    %410 = arith.negf %409 : vector<2x128xf32>
    %411 = math.exp %410 : vector<2x128xf32>
    %cst_104 = arith.constant 1.000000e+00 : f32
    %412 = vector.broadcast %cst_104 : f32 to vector<2x128xf32>
    %413 = arith.addf %412, %411 : vector<2x128xf32>
    %414 = arith.divf %412, %413 : vector<2x128xf32>
    %415 = vector.extract_strided_slice %402 {offsets = [0, 256], sizes = [2, 128], strides = [1, 1]} : vector<2x512xf32> to vector<2x128xf32>
    %416 = math.tanh %415 : vector<2x128xf32>
    %417 = vector.extract_strided_slice %402 {offsets = [0, 384], sizes = [2, 128], strides = [1, 1]} : vector<2x512xf32> to vector<2x128xf32>
    %418 = arith.negf %417 : vector<2x128xf32>
    %419 = math.exp %418 : vector<2x128xf32>
    %cst_105 = arith.constant 1.000000e+00 : f32
    %420 = vector.broadcast %cst_105 : f32 to vector<2x128xf32>
    %421 = arith.addf %420, %419 : vector<2x128xf32>
    %422 = arith.divf %420, %421 : vector<2x128xf32>
    %423 = arith.mulf %414, %395 : vector<2x128xf32>
    %424 = arith.mulf %408, %416 : vector<2x128xf32>
    %425 = arith.addf %423, %424 : vector<2x128xf32>
    %426 = math.tanh %425 : vector<2x128xf32>
    %427 = arith.mulf %422, %426 : vector<2x128xf32>
    %c10_106 = arith.constant 10 : index
    %c0_107 = arith.constant 0 : index
    %428 = vector.load %arg12[%c10_106, %c0_107] : memref<16x512xbf16, #tpu.memory_space<vmem>>, vector<2x512xbf16>
    %429 = arith.extf %428 : vector<2x512xbf16> to vector<2x512xf32>
    %430 = arith.truncf %427 : vector<2x128xf32> to vector<2x128xbf16>
    %cst_108 = arith.constant dense<0.000000e+00> : vector<2x512xf32>
    %431 = tpu.matmul %430, %275, %cst_108 {dimension_numbers = #tpu.dot_dimension_numbers<[1], [0], [0], [1], [0, 0, 1, 1], [], []>} : vector<2x128xbf16>, vector<128x512xbf16>, vector<2x512xf32> -> vector<2x512xf32>
    %432 = arith.addf %429, %431 : vector<2x512xf32>
    %433 = vector.extract_strided_slice %432 {offsets = [0, 0], sizes = [2, 128], strides = [1, 1]} : vector<2x512xf32> to vector<2x128xf32>
    %434 = arith.negf %433 : vector<2x128xf32>
    %435 = math.exp %434 : vector<2x128xf32>
    %cst_109 = arith.constant 1.000000e+00 : f32
    %436 = vector.broadcast %cst_109 : f32 to vector<2x128xf32>
    %437 = arith.addf %436, %435 : vector<2x128xf32>
    %438 = arith.divf %436, %437 : vector<2x128xf32>
    %439 = vector.extract_strided_slice %432 {offsets = [0, 128], sizes = [2, 128], strides = [1, 1]} : vector<2x512xf32> to vector<2x128xf32>
    %440 = arith.negf %439 : vector<2x128xf32>
    %441 = math.exp %440 : vector<2x128xf32>
    %cst_110 = arith.constant 1.000000e+00 : f32
    %442 = vector.broadcast %cst_110 : f32 to vector<2x128xf32>
    %443 = arith.addf %442, %441 : vector<2x128xf32>
    %444 = arith.divf %442, %443 : vector<2x128xf32>
    %445 = vector.extract_strided_slice %432 {offsets = [0, 256], sizes = [2, 128], strides = [1, 1]} : vector<2x512xf32> to vector<2x128xf32>
    %446 = math.tanh %445 : vector<2x128xf32>
    %447 = vector.extract_strided_slice %432 {offsets = [0, 384], sizes = [2, 128], strides = [1, 1]} : vector<2x512xf32> to vector<2x128xf32>
    %448 = arith.negf %447 : vector<2x128xf32>
    %449 = math.exp %448 : vector<2x128xf32>
    %cst_111 = arith.constant 1.000000e+00 : f32
    %450 = vector.broadcast %cst_111 : f32 to vector<2x128xf32>
    %451 = arith.addf %450, %449 : vector<2x128xf32>
    %452 = arith.divf %450, %451 : vector<2x128xf32>
    %453 = arith.mulf %444, %425 : vector<2x128xf32>
    %454 = arith.mulf %438, %446 : vector<2x128xf32>
    %455 = arith.addf %453, %454 : vector<2x128xf32>
    %456 = math.tanh %455 : vector<2x128xf32>
    %457 = arith.mulf %452, %456 : vector<2x128xf32>
    %c12_112 = arith.constant 12 : index
    %c0_113 = arith.constant 0 : index
    %458 = vector.load %arg12[%c12_112, %c0_113] : memref<16x512xbf16, #tpu.memory_space<vmem>>, vector<2x512xbf16>
    %459 = arith.extf %458 : vector<2x512xbf16> to vector<2x512xf32>
    %460 = arith.truncf %457 : vector<2x128xf32> to vector<2x128xbf16>
    %cst_114 = arith.constant dense<0.000000e+00> : vector<2x512xf32>
    %461 = tpu.matmul %460, %275, %cst_114 {dimension_numbers = #tpu.dot_dimension_numbers<[1], [0], [0], [1], [0, 0, 1, 1], [], []>} : vector<2x128xbf16>, vector<128x512xbf16>, vector<2x512xf32> -> vector<2x512xf32>
    %462 = arith.addf %459, %461 : vector<2x512xf32>
    %463 = vector.extract_strided_slice %462 {offsets = [0, 0], sizes = [2, 128], strides = [1, 1]} : vector<2x512xf32> to vector<2x128xf32>
    %464 = arith.negf %463 : vector<2x128xf32>
    %465 = math.exp %464 : vector<2x128xf32>
    %cst_115 = arith.constant 1.000000e+00 : f32
    %466 = vector.broadcast %cst_115 : f32 to vector<2x128xf32>
    %467 = arith.addf %466, %465 : vector<2x128xf32>
    %468 = arith.divf %466, %467 : vector<2x128xf32>
    %469 = vector.extract_strided_slice %462 {offsets = [0, 128], sizes = [2, 128], strides = [1, 1]} : vector<2x512xf32> to vector<2x128xf32>
    %470 = arith.negf %469 : vector<2x128xf32>
    %471 = math.exp %470 : vector<2x128xf32>
    %cst_116 = arith.constant 1.000000e+00 : f32
    %472 = vector.broadcast %cst_116 : f32 to vector<2x128xf32>
    %473 = arith.addf %472, %471 : vector<2x128xf32>
    %474 = arith.divf %472, %473 : vector<2x128xf32>
    %475 = vector.extract_strided_slice %462 {offsets = [0, 256], sizes = [2, 128], strides = [1, 1]} : vector<2x512xf32> to vector<2x128xf32>
    %476 = math.tanh %475 : vector<2x128xf32>
    %477 = vector.extract_strided_slice %462 {offsets = [0, 384], sizes = [2, 128], strides = [1, 1]} : vector<2x512xf32> to vector<2x128xf32>
    %478 = arith.negf %477 : vector<2x128xf32>
    %479 = math.exp %478 : vector<2x128xf32>
    %cst_117 = arith.constant 1.000000e+00 : f32
    %480 = vector.broadcast %cst_117 : f32 to vector<2x128xf32>
    %481 = arith.addf %480, %479 : vector<2x128xf32>
    %482 = arith.divf %480, %481 : vector<2x128xf32>
    %483 = arith.mulf %474, %455 : vector<2x128xf32>
    %484 = arith.mulf %468, %476 : vector<2x128xf32>
    %485 = arith.addf %483, %484 : vector<2x128xf32>
    %486 = math.tanh %485 : vector<2x128xf32>
    %487 = arith.mulf %482, %486 : vector<2x128xf32>
    %c14_118 = arith.constant 14 : index
    %c0_119 = arith.constant 0 : index
    %488 = vector.load %arg12[%c14_118, %c0_119] : memref<16x512xbf16, #tpu.memory_space<vmem>>, vector<2x512xbf16>
    %489 = arith.extf %488 : vector<2x512xbf16> to vector<2x512xf32>
    %490 = arith.truncf %487 : vector<2x128xf32> to vector<2x128xbf16>
    %cst_120 = arith.constant dense<0.000000e+00> : vector<2x512xf32>
    %491 = tpu.matmul %490, %275, %cst_120 {dimension_numbers = #tpu.dot_dimension_numbers<[1], [0], [0], [1], [0, 0, 1, 1], [], []>} : vector<2x128xbf16>, vector<128x512xbf16>, vector<2x512xf32> -> vector<2x512xf32>
    %492 = arith.addf %489, %491 : vector<2x512xf32>
    %493 = vector.extract_strided_slice %492 {offsets = [0, 0], sizes = [2, 128], strides = [1, 1]} : vector<2x512xf32> to vector<2x128xf32>
    %494 = arith.negf %493 : vector<2x128xf32>
    %495 = math.exp %494 : vector<2x128xf32>
    %cst_121 = arith.constant 1.000000e+00 : f32
    %496 = vector.broadcast %cst_121 : f32 to vector<2x128xf32>
    %497 = arith.addf %496, %495 : vector<2x128xf32>
    %498 = arith.divf %496, %497 : vector<2x128xf32>
    %499 = vector.extract_strided_slice %492 {offsets = [0, 128], sizes = [2, 128], strides = [1, 1]} : vector<2x512xf32> to vector<2x128xf32>
    %500 = arith.negf %499 : vector<2x128xf32>
    %501 = math.exp %500 : vector<2x128xf32>
    %cst_122 = arith.constant 1.000000e+00 : f32
    %502 = vector.broadcast %cst_122 : f32 to vector<2x128xf32>
    %503 = arith.addf %502, %501 : vector<2x128xf32>
    %504 = arith.divf %502, %503 : vector<2x128xf32>
    %505 = vector.extract_strided_slice %492 {offsets = [0, 256], sizes = [2, 128], strides = [1, 1]} : vector<2x512xf32> to vector<2x128xf32>
    %506 = math.tanh %505 : vector<2x128xf32>
    %507 = vector.extract_strided_slice %492 {offsets = [0, 384], sizes = [2, 128], strides = [1, 1]} : vector<2x512xf32> to vector<2x128xf32>
    %508 = arith.negf %507 : vector<2x128xf32>
    %509 = math.exp %508 : vector<2x128xf32>
    %cst_123 = arith.constant 1.000000e+00 : f32
    %510 = vector.broadcast %cst_123 : f32 to vector<2x128xf32>
    %511 = arith.addf %510, %509 : vector<2x128xf32>
    %512 = arith.divf %510, %511 : vector<2x128xf32>
    %513 = arith.mulf %504, %485 : vector<2x128xf32>
    %514 = arith.mulf %498, %506 : vector<2x128xf32>
    %515 = arith.addf %513, %514 : vector<2x128xf32>
    %516 = math.tanh %515 : vector<2x128xf32>
    %517 = arith.mulf %512, %516 : vector<2x128xf32>
    %518 = arith.truncf %517 : vector<2x128xf32> to vector<2x128xbf16>
    %c0_124 = arith.constant 0 : index
    %c0_125 = arith.constant 0 : index
    %519 = vector.load %arg5[%c0_124, %c0_125] : memref<128x128xbf16, #tpu.memory_space<vmem>>, vector<128x128xbf16>
    %cst_126 = arith.constant dense<0.000000e+00> : vector<2x128xf32>
    %520 = tpu.matmul %518, %519, %cst_126 {dimension_numbers = #tpu.dot_dimension_numbers<[1], [0], [0], [1], [0, 0, 1, 1], [], []>} : vector<2x128xbf16>, vector<128x128xbf16>, vector<2x128xf32> -> vector<2x128xf32>
    %c0_127 = arith.constant 0 : index
    %c0_128 = arith.constant 0 : index
    %521 = vector.load %arg6[%c0_127, %c0_128] : memref<1x128xf32, #tpu.memory_space<vmem>>, vector<1x128xf32>
    %522 = vector.broadcast %521 : vector<1x128xf32> to vector<2x128xf32>
    %523 = arith.addf %520, %522 : vector<2x128xf32>
    %cst_129 = arith.constant 0.000000e+00 : f32
    %524 = vector.broadcast %cst_129 : f32 to vector<2x128xf32>
    %525 = arith.maximumf %523, %524 : vector<2x128xf32>
    %526 = arith.truncf %525 : vector<2x128xf32> to vector<2x128xbf16>
    %c0_130 = arith.constant 0 : index
    %c0_131 = arith.constant 0 : index
    %527 = vector.load %arg7[%c0_130, %c0_131] : memref<128x32xbf16, #tpu.memory_space<vmem>>, vector<128x32xbf16>
    %cst_132 = arith.constant dense<0.000000e+00> : vector<2x32xf32>
    %528 = tpu.matmul %526, %527, %cst_132 {dimension_numbers = #tpu.dot_dimension_numbers<[1], [0], [0], [1], [0, 0, 1, 1], [], []>} : vector<2x128xbf16>, vector<128x32xbf16>, vector<2x32xf32> -> vector<2x32xf32>
    %c0_133 = arith.constant 0 : index
    %c0_134 = arith.constant 0 : index
    %529 = vector.load %arg8[%c0_133, %c0_134] : memref<1x32xf32, #tpu.memory_space<vmem>>, vector<1x32xf32>
    %530 = vector.broadcast %529 : vector<1x32xf32> to vector<2x32xf32>
    %531 = arith.addf %528, %530 : vector<2x32xf32>
    %cst_135 = arith.constant dense<0.000000e+00> : vector<2xf32>
    %532 = vector.multi_reduction <add>, %531, %cst_135 [1] : vector<2x32xf32> to vector<2xf32>
    %533 = vector.shape_cast %532 : vector<2xf32> to vector<2x1xf32>
    %cst_136 = arith.constant 3.200000e+01 : f32
    %534 = vector.broadcast %cst_136 : f32 to vector<2x1xf32>
    %535 = arith.divf %533, %534 : vector<2x1xf32>
    %536 = vector.broadcast %535 : vector<2x1xf32> to vector<2x32xf32>
    %537 = arith.subf %531, %536 : vector<2x32xf32>
    %538 = arith.mulf %537, %537 : vector<2x32xf32>
    %cst_137 = arith.constant dense<0.000000e+00> : vector<2xf32>
    %539 = vector.multi_reduction <add>, %538, %cst_137 [1] : vector<2x32xf32> to vector<2xf32>
    %540 = vector.shape_cast %539 : vector<2xf32> to vector<2x1xf32>
    %cst_138 = arith.constant 3.200000e+01 : f32
    %541 = vector.broadcast %cst_138 : f32 to vector<2x1xf32>
    %542 = arith.divf %540, %541 : vector<2x1xf32>
    %543 = vector.broadcast %535 : vector<2x1xf32> to vector<2x32xf32>
    %544 = arith.subf %531, %543 : vector<2x32xf32>
    %cst_139 = arith.constant 9.99999974E-6 : f32
    %545 = vector.broadcast %cst_139 : f32 to vector<2x1xf32>
    %546 = arith.addf %542, %545 : vector<2x1xf32>
    %547 = math.rsqrt %546 : vector<2x1xf32>
    %548 = vector.broadcast %547 : vector<2x1xf32> to vector<2x32xf32>
    %549 = arith.mulf %544, %548 : vector<2x32xf32>
    %c0_140 = arith.constant 0 : index
    %c0_141 = arith.constant 0 : index
    %550 = vector.load %arg9[%c0_140, %c0_141] : memref<1x32xf32, #tpu.memory_space<vmem>>, vector<1x32xf32>
    %551 = vector.broadcast %550 : vector<1x32xf32> to vector<2x32xf32>
    %552 = arith.mulf %549, %551 : vector<2x32xf32>
    %c0_142 = arith.constant 0 : index
    %c0_143 = arith.constant 0 : index
    %553 = vector.load %arg10[%c0_142, %c0_143] : memref<1x32xf32, #tpu.memory_space<vmem>>, vector<1x32xf32>
    %554 = vector.broadcast %553 : vector<1x32xf32> to vector<2x32xf32>
    %555 = arith.addf %552, %554 : vector<2x32xf32>
    %c0_144 = arith.constant 0 : index
    %c0_145 = arith.constant 0 : index
    %556 = vector.load %arg11[%c0_144, %c0_145] : memref<2x32xf32, #tpu.memory_space<vmem>>, vector<2x32xf32>
    tpu.vector_store %arg11[%c0_144, %c0_145], %555 {strides = array<i32>} : memref<2x32xf32, #tpu.memory_space<vmem>>, vector<2x32xf32>,
    return
  }
}

</mosaic_0001>

<bundles_post_ra>
// kernel: video_encoder_forward.2
= control target key start
LH: loop header
LB: loop body
LE: loop exit
PB: predicated region body
PF: predicated region fallthrough
CT: control target
= control target key end

     0   :  { %vm1537_vm0 = vmmov 0   ;;  %s1960_s1 = inlined_call_operand.vmem [shape: bf16[1024,128], index: 1, kind: input, shape index: {}]   ;;  %s1961_s0 = inlined_call_operand.vmem [shape: f32[16,1024], index: 0, kind: input, shape index: {}]   ;;  %s1962_s3 = inlined_call_operand.vmem [shape: bf16[128,128], index: 3, kind: input, shape index: {}]   ;;  %s1963_s5 = inlined_call_operand.vmem [shape: bf16[128,512], index: 5, kind: input, shape index: {}]   ;;  %s1964_s2 = inlined_call_operand.vmem [shape: f32[1,128], index: 2, kind: input, shape index: {}]   ;;  %s1965_s4 = inlined_call_operand.vmem [shape: f32[1,128], index: 4, kind: input, shape index: {}]   ;;  %s1966_s6 = inlined_call_operand.vmem [shape: f32[1,512], index: 6, kind: input, shape index: {}]   ;;  %s1967_s7 = inlined_call_operand.vmem [shape: bf16[16,512], index: 7, kind: output, shape index: {}]  }
   0x1   :  { %v1416_v0 = vld [vmem:[%s1960_s1 + $0x40] sm:$0xff]   ;;  %v1420_v4 = vld [vmem:[%s1960_s1 + $0x48] sm:$0xff]   ;;  %v1424_v8 = vld [vmem:[%s1960_s1 + $0x50] sm:$0xff]  }
   0x2   :  { %v1417_v1 = vld [vmem:[%s1960_s1 + $0xc0] sm:$0xff]   ;;  %1296 = vmatprep.subr.bf16.mxu0 %v1416_v0  ;;  %v1421_v5 = vld [vmem:[%s1960_s1 + $0xc8] sm:$0xff]   ;;  %v1425_v9 = vld [vmem:[%s1960_s1 + $0xd0] sm:$0xff]  }
   0x3   :  { %v1418_v2 = vld [vmem:[%s1960_s1] sm:$0xff]   ;;  %1318 = vmatprep.subr.bf16.mxu1 %v1417_v1  ;;  %v1422_v6 = vld [vmem:[%s1960_s1 + $0x8] sm:$0xff]   ;;  %v1426_v10 = vld [vmem:[%s1960_s1 + $0x10] sm:$0xff]  }
   0x4   :  { %v1419_v3 = vld [vmem:[%s1960_s1 + $0x80] sm:$0xff]   ;;  %1297 = vmatpush3.bf16.msra.mxu0 %v1418_v2  ;;  %v1423_v7 = vld [vmem:[%s1960_s1 + $0x88] sm:$0xff]   ;;  %v1427_v11 = vld [vmem:[%s1960_s1 + $0x90] sm:$0xff]  }
   0x5   :  { %1319 = vmatpush3.bf16.msra.mxu1 %v1419_v3  ;;  %1298 = vmatprep.subr.bf16.mxu0 %v1420_v4  ;;  %v1428_v12 = vld [vmem:[%s1960_s1 + $0x58] sm:$0xff]   ;;  %v1432_v16 = vld [vmem:[%s1960_s1 + $0x60] sm:$0xff]   ;;  %v1436_v20 = vld [vmem:[%s1960_s1 + $0x68] sm:$0xff]  }
   0x6   :  { %1320 = vmatprep.subr.bf16.mxu1 %v1421_v5  ;;  %v1429_v13 = vld [vmem:[%s1960_s1 + $0xd8] sm:$0xff]   ;;  %v1433_v17 = vld [vmem:[%s1960_s1 + $0xe0] sm:$0xff]   ;;  %v1437_v21 = vld [vmem:[%s1960_s1 + $0xe8] sm:$0xff]  }
   0x7   :  { %v1430_v14 = vld [vmem:[%s1960_s1 + $0x18] sm:$0xff]   ;;  %v1434_v18 = vld [vmem:[%s1960_s1 + $0x20] sm:$0xff]   ;;  %v1438_v22 = vld [vmem:[%s1960_s1 + $0x28] sm:$0xff]  }
   0x8   :  { %1299 = vmatpush3.bf16.msra.mxu0 %v1422_v6  ;;  %v1431_v15 = vld [vmem:[%s1960_s1 + $0x98] sm:$0xff]   ;;  %v1435_v19 = vld [vmem:[%s1960_s1 + $0xa0] sm:$0xff]   ;;  %v1439_v23 = vld [vmem:[%s1960_s1 + $0xa8] sm:$0xff]  }
   0x9   :  { %1321 = vmatpush3.bf16.msra.mxu1 %v1423_v7  ;;  %1300 = vmatprep.subr.bf16.mxu0 %v1424_v8  ;;  %v1440_v24 = vld [vmem:[%s1960_s1 + $0x70] sm:$0xff]   ;;  %v1444_v28 = vld [vmem:[%s1960_s1 + $0x78] sm:$0xff]   ;;  %v28_v32 = vld [vmem:[%s1961_s0 + $0x8] sm:$0xff] }
   0xa   :  { %1322 = vmatprep.subr.bf16.mxu1 %v1425_v9  ;;  %v1441_v25 = vld [vmem:[%s1960_s1 + $0xf0] sm:$0xff]   ;;  %v1445_v29 = vld [vmem:[%s1960_s1 + $0xf8] sm:$0xff]   ;;  %v36_v33 = vld [vmem:[%s1961_s0 + $0x48] sm:$0xff] }
   0xb   :  { %v1442_v26 = vld [vmem:[%s1960_s1 + $0x30] sm:$0xff]   ;;  %v1446_v30 = vld [vmem:[%s1960_s1 + $0x38] sm:$0xff]   ;;  %v44_v35 = vpack.c.bf16 %v36_v33, %v28_v32  ;;  %v27_v37 = vld [vmem:[%s1961_s0] sm:$0xff] }
   0xc   :  { %1301 = vmatpush3.bf16.msra.mxu0 %v1426_v10  ;;  %v1443_v27 = vld [vmem:[%s1960_s1 + $0xb0] sm:$0xff]   ;;  %v1447_v31 = vld [vmem:[%s1960_s1 + $0xb8] sm:$0xff]   ;;  %v35_v38 = vld [vmem:[%s1961_s0 + $0x40] sm:$0xff] }
   0xd   :  { %1323 = vmatpush3.bf16.msra.mxu1 %v1427_v11  ;;  %1302 = vmatprep.subr.bf16.mxu0 %v1428_v12  ;;  %v30_v34 = vld [vmem:[%s1961_s0 + $0x18] sm:$0xff]  ;;  %v43_v40 = vpack.c.bf16 %v35_v38, %v27_v37  ;;  %v29_v41 = vld [vmem:[%s1961_s0 + $0x10] sm:$0xff]  ;;  %v1448_v44 = vld [vmem:[%s1960_s1 + $0x140] sm:$0xff]  }
   0xe   :  { %1324 = vmatprep.subr.bf16.mxu1 %v1429_v13  ;;  %v38_v36 = vld [vmem:[%s1961_s0 + $0x58] sm:$0xff]  ;;  %v37_v42 = vld [vmem:[%s1961_s0 + $0x50] sm:$0xff]  ;;  %602 = vmatprep.mubr.bf16.mxu0 %v44_v35  ;;  %v1449_v45 = vld [vmem:[%s1960_s1 + $0x1c0] sm:$0xff]  }
   0xf   :  { %v46_v39 = vpack.c.bf16 %v38_v36, %v30_v34  ;;  %v45_v43 = vpack.c.bf16 %v37_v42, %v29_v41  ;;  %v1450_v46 = vld [vmem:[%s1960_s1 + $0x100] sm:$0xff]   ;;  %v1452_v48 = vld [vmem:[%s1960_s1 + $0x148] sm:$0xff]   ;;  %v1456_v52 = vld [vmem:[%s1960_s1 + $0x150] sm:$0xff]  }
  0x10   :  { %1303 = vmatpush3.bf16.msra.mxu0 %v1430_v14  ;;  %v1451_v47 = vld [vmem:[%s1960_s1 + $0x180] sm:$0xff]   ;;  %v1453_v49 = vld [vmem:[%s1960_s1 + $0x1c8] sm:$0xff]   ;;  %v1457_v53 = vld [vmem:[%s1960_s1 + $0x1d0] sm:$0xff]  }
  0x11   :  { %1325 = vmatpush3.bf16.msra.mxu1 %v1431_v15  ;;  %1304 = vmatprep.subr.bf16.mxu0 %v1432_v16  ;;  %v1454_v50 = vld [vmem:[%s1960_s1 + $0x108] sm:$0xff]   ;;  %v1458_v54 = vld [vmem:[%s1960_s1 + $0x110] sm:$0xff]   ;;  %v1460_v56 = vld [vmem:[%s1960_s1 + $0x158] sm:$0xff]  }
  0x12   :  { %1326 = vmatprep.subr.bf16.mxu1 %v1433_v17  ;;  %643 = vmatprep.mubr.bf16.mxu1 %v46_v39  ;;  %v1455_v51 = vld [vmem:[%s1960_s1 + $0x188] sm:$0xff]   ;;  %v1459_v55 = vld [vmem:[%s1960_s1 + $0x190] sm:$0xff]   ;;  %v1461_v57 = vld [vmem:[%s1960_s1 + $0x1d8] sm:$0xff]  }
  0x13   :  { %v1462_v58 = vld [vmem:[%s1960_s1 + $0x118] sm:$0xff]   ;;  %v1464_v60 = vld [vmem:[%s1960_s1 + $0x160] sm:$0xff]   ;;  %v1468_v0 = vld [vmem:[%s1960_s1 + $0x168] sm:$0xff]  }
  0x14   :  { %1305 = vmatpush3.bf16.msra.mxu0 %v1434_v18  ;;  %v1463_v59 = vld [vmem:[%s1960_s1 + $0x198] sm:$0xff]   ;;  %v1465_v61 = vld [vmem:[%s1960_s1 + $0x1e0] sm:$0xff]   ;;  %v1469_v1 = vld [vmem:[%s1960_s1 + $0x1e8] sm:$0xff]  }
  0x15   :  { %1327 = vmatpush3.bf16.msra.mxu1 %v1435_v19  ;;  %1306 = vmatprep.subr.bf16.mxu0 %v1436_v20  ;;  %v1466_v62 = vld [vmem:[%s1960_s1 + $0x120] sm:$0xff]   ;;  %v1470_v2 = vld [vmem:[%s1960_s1 + $0x128] sm:$0xff]   ;;  %v1472_v4 = vld [vmem:[%s1960_s1 + $0x170] sm:$0xff]  }
  0x16   :  { %1328 = vmatprep.subr.bf16.mxu1 %v1437_v21  ;;  %v1467_v63 = vld [vmem:[%s1960_s1 + $0x1a0] sm:$0xff]   ;;  %v1471_v3 = vld [vmem:[%s1960_s1 + $0x1a8] sm:$0xff]   ;;  %v1473_v5 = vld [vmem:[%s1960_s1 + $0x1f0] sm:$0xff]  }
  0x17   :  { %v1474_v6 = vld [vmem:[%s1960_s1 + $0x130] sm:$0xff]   ;;  %v1476_v8 = vld [vmem:[%s1960_s1 + $0x178] sm:$0xff]   ;;  %v32_v12 = vld [vmem:[%s1961_s0 + $0x28] sm:$0xff] }
  0x18   :  { %1307 = vmatpush3.bf16.msra.mxu0 %v1438_v22  ;;  %v1475_v7 = vld [vmem:[%s1960_s1 + $0x1b0] sm:$0xff]   ;;  %v1477_v9 = vld [vmem:[%s1960_s1 + $0x1f8] sm:$0xff]   ;;  %v40_v13 = vld [vmem:[%s1961_s0 + $0x68] sm:$0xff] }
  0x19   :  { %1329 = vmatpush3.bf16.msra.mxu1 %v1439_v23  ;;  %1308 = vmatprep.subr.bf16.mxu0 %v1440_v24  ;;  %v1478_v10 = vld [vmem:[%s1960_s1 + $0x138] sm:$0xff]   ;;  %v48_v16 = vpack.c.bf16 %v40_v13, %v32_v12  ;;  %v31_v18 = vld [vmem:[%s1961_s0 + $0x20] sm:$0xff]  ;;  %v33_v20 = vld [vmem:[%s1961_s0 + $0x30] sm:$0xff]  ;;  %v1536_v24 = vmov 0.0  }
  0x1a   :  { %1330 = vmatprep.subr.bf16.mxu1 %v1441_v25  ;;  %v1479_v11 = vld [vmem:[%s1960_s1 + $0x1b8] sm:$0xff]   ;;  %v39_v19 = vld [vmem:[%s1961_s0 + $0x60] sm:$0xff]  ;;  %v41_v22 = vld [vmem:[%s1961_s0 + $0x70] sm:$0xff] }
  0x1b   :  { %v34_v14 = vld [vmem:[%s1961_s0 + $0x38] sm:$0xff]  ;;  %v47_v21 = vpack.c.bf16 %v39_v19, %v31_v18  ;;  %v49_v23 = vpack.c.bf16 %v41_v22, %v33_v20  ;;  %v1480_v25 = vld [vmem:[%s1962_s3] sm:$0xff]  }
  0x1c   :  { %1309 = vmatpush3.bf16.msra.mxu0 %v1442_v26  ;;  %v42_v15 = vld [vmem:[%s1961_s0 + $0x78] sm:$0xff]  ;;  %v1481_v26 = vld [vmem:[%s1962_s3 + $0x8] sm:$0xff]   ;;  %v1488_v33 = vld [vmem:[%s1963_s5] ss:$16 sps:$4 sm:$0xff]  }
  0x1d   :  { %1331 = vmatpush3.bf16.msra.mxu1 %v1443_v27  ;;  %1310 = vmatprep.subr.bf16.mxu0 %v1444_v28  ;;  %v50_v17 = vpack.c.bf16 %v42_v15, %v34_v14  ;;  %v1482_v27 = vld [vmem:[%s1962_s3 + $0x10] sm:$0xff]   ;;  %v1483_v28 = vld [vmem:[%s1962_s3 + $0x18] sm:$0xff]  }
  0x1e   :  { %1332 = vmatprep.subr.bf16.mxu1 %v1445_v29  ;;  %v1484_v29 = vld [vmem:[%s1962_s3 + $0x20] sm:$0xff]   ;;  %v1487_v32 = vld [vmem:[%s1962_s3 + $0x38] sm:$0xff]  }
  0x1f   :  { %v1490_v34 = vld [vmem:[%s1963_s5 + $0x4] ss:$16 sps:$4 sm:$0xff]   ;;  %v1493_v35 = vld [vmem:[%s1963_s5 + $0xc] ss:$16 sps:$4 sm:$0xff]   ;;  %v1494_v37 = vld [vmem:[%s1963_s5 + $0x20] ss:$16 sps:$4 sm:$0xff]  }
  0x20   :  { %1311 = vmatpush3.bf16.msra.mxu0 %v1446_v30  ;;  %v1485_v30 = vld [vmem:[%s1962_s3 + $0x28] sm:$0xff]   ;;  %v1496_v36 = vld [vmem:[%s1963_s5 + $0x24] ss:$16 sps:$4 sm:$0xff]   ;;  %v1500_v39 = vld [vmem:[%s1963_s5 + $0x40] ss:$16 sps:$4 sm:$0xff]  }
  0x21   :  { %1333 = vmatpush3.bf16.msra.mxu1 %v1447_v31  ;;  %1340 = vmatprep.subr.bf16.mxu0 %v1448_v44  ;;  %v1486_v31 = vld [vmem:[%s1962_s3 + $0x30] sm:$0xff]   ;;  %v1491_v19 = vld [vmem:[%s1963_s5 + $0x8] ss:$16 sps:$4 sm:$0xff]  }
  0x22   :  { %1362 = vmatprep.subr.bf16.mxu1 %v1449_v45  ;;  %v1502_v38 = vld [vmem:[%s1963_s5 + $0x44] ss:$16 sps:$4 sm:$0xff]   ;;  %v1506_v41 = vld [vmem:[%s1963_s5 + $0x60] ss:$16 sps:$4 sm:$0xff]   ;;  %v1497_v22 = vld [vmem:[%s1963_s5 + $0x28] ss:$16 sps:$4 sm:$0xff]  }
  0x23   :  { %603 = vmatmul.mubr.bf16.vlgmr.msra.gmra.mrb[0].mxu0 %v43_v40  ;;  %v1508_v40 = vld [vmem:[%s1963_s5 + $0x64] ss:$16 sps:$4 sm:$0xff]   ;;  %v1518_v45 = vld [vmem:[%s1963_s5 + $0xa0] ss:$16 sps:$4 sm:$0xff]  }
  0x24   :  { %644 = vmatmul.mubr.bf16.vlgmr.msra.gmra.mrb[0].mxu1 %v45_v43  ;;  %1341 = vmatpush3.bf16.msra.mxu0 %v1450_v46  ;;  %v1514_v42 = vld [vmem:[%s1963_s5 + $0x84] ss:$16 sps:$4 sm:$0xff]   ;;  %v1512_v43 = vld [vmem:[%s1963_s5 + $0x80] ss:$16 sps:$4 sm:$0xff]  }
  0x25   :  { %1363 = vmatpush3.bf16.msra.mxu1 %v1451_v47  ;;  %1342 = vmatprep.subr.bf16.mxu0 %v1452_v48  ;;  %v1520_v44 = vld [vmem:[%s1963_s5 + $0xa4] ss:$16 sps:$4 sm:$0xff]   ;;  %v1524_v47 = vld [vmem:[%s1963_s5 + $0xc0] ss:$16 sps:$4 sm:$0xff]  }
  0x26   :  { %1364 = vmatprep.subr.bf16.mxu1 %v1453_v49  ;;  %684 = vmatprep.mubr.bf16.mxu0 %v48_v16  ;;  %v1526_v46 = vld [vmem:[%s1963_s5 + $0xc4] ss:$16 sps:$4 sm:$0xff]  }
  0x27   :  { %725 = vmatprep.mubr.bf16.mxu1 %v50_v17 }
  0x28   :  { %1343 = vmatpush3.bf16.msra.mxu0 %v1454_v50  ;;  %v1182_v50 = vld [vmem:[%s1964_s2] ss:$0 sm:$0xff] }
  0x29   :  { %1365 = vmatpush3.bf16.msra.mxu1 %v1455_v51  ;;  %1344 = vmatprep.subr.bf16.mxu0 %v1456_v52 }
  0x2a   :  { %1366 = vmatprep.subr.bf16.mxu1 %v1457_v53 }
  0x2c   :  { %1345 = vmatpush3.bf16.msra.mxu0 %v1458_v54 }
  0x2d   :  { %1367 = vmatpush3.bf16.msra.mxu1 %v1459_v55  ;;  %1346 = vmatprep.subr.bf16.mxu0 %v1460_v56 }
  0x2e   :  { %1368 = vmatprep.subr.bf16.mxu1 %v1461_v57 }
  0x30   :  { %1347 = vmatpush3.bf16.msra.mxu0 %v1462_v58 }
  0x31   :  { %1369 = vmatpush3.bf16.msra.mxu1 %v1463_v59  ;;  %1348 = vmatprep.subr.bf16.mxu0 %v1464_v60 }
  0x32   :  { %1370 = vmatprep.subr.bf16.mxu1 %v1465_v61 }
  0x34   :  { %1349 = vmatpush3.bf16.msra.mxu0 %v1466_v62 }
  0x35   :  { %1371 = vmatpush3.bf16.msra.mxu1 %v1467_v63  ;;  %1350 = vmatprep.subr.bf16.mxu0 %v1468_v0 }
  0x36   :  { %1372 = vmatprep.subr.bf16.mxu1 %v1469_v1 }
  0x38   :  { %1351 = vmatpush3.bf16.msra.mxu0 %v1470_v2 }
  0x39   :  { %1373 = vmatpush3.bf16.msra.mxu1 %v1471_v3  ;;  %1352 = vmatprep.subr.bf16.mxu0 %v1472_v4 }
  0x3a   :  { %1374 = vmatprep.subr.bf16.mxu1 %v1473_v5 }
  0x3c   :  { %1353 = vmatpush3.bf16.msra.mxu0 %v1474_v6 }
  0x3d   :  { %1375 = vmatpush3.bf16.msra.mxu1 %v1475_v7  ;;  %1354 = vmatprep.subr.bf16.mxu0 %v1476_v8 }
  0x3e   :  { %1376 = vmatprep.subr.bf16.mxu1 %v1477_v9 }
  0x40   :  { %1355 = vmatpush3.bf16.msra.mxu0 %v1478_v10 }
  0x41   :  { %1377 = vmatpush3.bf16.msra.mxu1 %v1479_v11  ;;  %1393 = vmatprep.subr.bf16.mxu0 %v1536_v24 }
  0x42   :  { %1064 = vmatprep.subr.bf16.mxu1 %v1490_v34  ;;  %v1535_v34 = vld [vmem:[%s1963_s5 + $0xec] ss:$16 sps:$4 sm:$0xff]  }
  0x43   :  { %685 = vmatmul.mubr.bf16.vlgmr.msra.gmra.mrb[4].mxu0 %v47_v21  ;;  %v1499_v21 = vld [vmem:[%s1963_s5 + $0x2c] ss:$16 sps:$4 sm:$0xff]  }
  0x44   :  { %726 = vmatmul.mubr.bf16.vlgmr.msra.gmra.mrb[4].mxu1 %v49_v23  ;;  %1394 = vmatpush3.bf16.msra.mxu0 %v1480_v25  ;;  %v1505_v23 = vld [vmem:[%s1963_s5 + $0x4c] ss:$16 sps:$4 sm:$0xff]  }
  0x45   :  { %1395 = vmatprep.subr.bf16.mxu0 %v1536_v24  ;;  %1409 = vmatprep.mubr.msk.bf16.mxu0 %vm1537_vm0, %v1536_v24  ;;  %v1511_v25 = vld [vmem:[%s1963_s5 + $0x6c] ss:$16 sps:$4 sm:$0xff]  }
  0x46   :  { %1065 = vmatpush1.bf16.msra.mxu1 %v1488_v33  ;;  %v1532_v33 = vld [vmem:[%s1963_s5 + $0xe4] ss:$16 sps:$4 sm:$0xff]  }
  0x47   :  { %1066 = vmatprep.subr.bf16.mxu1 %v1496_v36  ;;  %v1533_v36 = vld [vmem:[%s1963_s5 + $0xe8] ss:$16 sps:$4 sm:$0xff]  }
  0x48   :  { %1396 = vmatpush3.bf16.msra.mxu0 %v1481_v26  ;;  %v1509_v26 = vld [vmem:[%s1963_s5 + $0x68] ss:$16 sps:$4 sm:$0xff]  }
  0x49   :  { %1397 = vmatprep.subr.bf16.mxu0 %v1536_v24 }
  0x4a   :  { %1067 = vmatpush1.bf16.msra.mxu1 %v1494_v37  ;;  %v1538_v37 = vmov 0  }
  0x4b   :  { %1068 = vmatprep.subr.bf16.mxu1 %v1502_v38  ;;  %1096 = vmatprep.mubr.bf16.mxu1 %v1538_v37  ;;  %v1247_v38 = vld [vmem:[%s1965_s4] ss:$0 sm:$0xff] }
  0x4c   :  { %1398 = vmatpush3.bf16.msra.mxu0 %v1482_v27  ;;  %v1517_v27 = vld [vmem:[%s1963_s5 + $0x8c] ss:$16 sps:$4 sm:$0xff]  }
  0x4d   :  { %1399 = vmatprep.subr.bf16.mxu0 %v1536_v24 }
  0x4e   :  { %1069 = vmatpush1.bf16.msra.mxu1 %v1500_v39 }
  0x4f   :  { %1070 = vmatprep.subr.bf16.mxu1 %v1508_v40 }
  0x50   :  { %1400 = vmatpush3.bf16.msra.mxu0 %v1483_v28  ;;  %v1515_v28 = vld [vmem:[%s1963_s5 + $0x88] ss:$16 sps:$4 sm:$0xff]  }
  0x51   :  { %1401 = vmatprep.subr.bf16.mxu0 %v1536_v24 }
  0x52   :  { %1071 = vmatpush1.bf16.msra.mxu1 %v1506_v41 }
  0x53   :  { %1072 = vmatprep.subr.bf16.mxu1 %v1514_v42 }
  0x54   :  { %1402 = vmatpush3.bf16.msra.mxu0 %v1484_v29  ;;  %v1523_v29 = vld [vmem:[%s1963_s5 + $0xac] ss:$16 sps:$4 sm:$0xff]  }
  0x55   :  { %1403 = vmatprep.subr.bf16.mxu0 %v1536_v24 }
  0x56   :  { %1073 = vmatpush1.bf16.msra.mxu1 %v1512_v43 }
  0x57   :  { %1074 = vmatprep.subr.bf16.mxu1 %v1520_v44 }
  0x58   :  { %1404 = vmatpush3.bf16.msra.mxu0 %v1485_v30  ;;  %v1521_v30 = vld [vmem:[%s1963_s5 + $0xa8] ss:$16 sps:$4 sm:$0xff]  }
  0x59   :  { %1405 = vmatprep.subr.bf16.mxu0 %v1536_v24 }
  0x5a   :  { %1075 = vmatpush1.bf16.msra.mxu1 %v1518_v45 }
  0x5b   :  { %1076 = vmatprep.subr.bf16.mxu1 %v1526_v46  ;;  %v884_v46 = vlaneseq }
  0x5c   :  { %1406 = vmatpush3.bf16.msra.mxu0 %v1486_v31  ;;  %v1529_v31 = vld [vmem:[%s1963_s5 + $0xcc] ss:$16 sps:$4 sm:$0xff]  }
  0x5d   :  { %1407 = vmatprep.subr.bf16.mxu0 %v1536_v24  ;;  %v1503_v24 = vld [vmem:[%s1963_s5 + $0x48] ss:$16 sps:$4 sm:$0xff]  }
  0x5e   :  { %1077 = vmatpush1.bf16.msra.mxu1 %v1524_v47  ;;  %v885_v47 = vshrl.u32 %v884_v46, 7 }
  0x5f   :  { %1078 = vmatprep.subr.bf16.mxu1 %v1532_v33 }
  0x60   :  { %1408 = vmatpush3.bf16.msra.mxu0 %v1487_v32  ;;  %v1527_v32 = vld [vmem:[%s1963_s5 + $0xc8] ss:$16 sps:$4 sm:$0xff]  }
  0x61   :  { %1107 = vmatprep.subr.bf16.mxu0 %v1493_v35  ;;  %v1530_v35 = vld [vmem:[%s1963_s5 + $0xe0] ss:$16 sps:$4 sm:$0xff]  }
  0x62   :  { %1079 = vmatpush1.bf16.msra.mxu1 %v1530_v35 }
  0xf6   :  { %v1312_v48 = vpop.f32.mrb[0].mxu0 }
  0xf7   :  { %v1334_v49 = vpop.f32.mrb[0].mxu1  ;;  %v1313_v51 = vpop.f32.mrb[1].mxu0 }
  0xf8   :  { %v1314_v52 = vadd.f32 %v1313_v51, %v1312_v48  ;;  %v1335_v53 = vpop.f32.mrb[1].mxu1  ;;  %v1315_v54 = vpop.f32.mrb[2].mxu0  ;;  %v886_v48 = vsub.s32 0, %v885_v47  ;;  %v890_v51 = vsub.s32 1, %v885_v47 }
  0xf9   :  { %v1336_v55 = vadd.f32 %v1335_v53, %v1334_v49  ;;  %v1337_v56 = vpop.f32.mrb[2].mxu1  ;;  %v1316_v57 = vpop.f32.mrb[3].mxu0  ;;  %v894_v49 = vsub.s32 2, %v885_v47 }
  0xfa   :  { %v605_v58 = vadd.f32 %v1314_v52, %v1182_v50  ;;  %v1317_v59 = vadd.f32 %v1316_v57, %v1315_v54  ;;  %v1338_v60 = vpop.f32.mrb[3].mxu1  ;;  %v898_v52 = vsub.s32 3, %v885_v47 }
  0xfb   :  { %v1339_v61 = vadd.f32 %v1338_v60, %v1337_v56 }
  0xfc   :  { %v646_v62 = vadd.f32 %v1336_v55, %v605_v58  ;;  %v608_v63 = vadd.f32 %v1317_v59, %v1182_v50  ;;  %v882_v50 = vld [vmem:[%s1966_s6] sm:$0xf] }
  0xfd   :  { %v887_v53 = vrot.slane %v882_v50, %v886_v48  ;;  %v895_v54 = vrot.slane %v882_v50, %v894_v49  ;;  %v891_v55 = vrot.slane %v882_v50, %v890_v51  ;;  %v899_v56 = vrot.slane %v882_v50, %v898_v52 }
  0xfe   :  { %v649_v0 = vadd.f32 %v1339_v61, %v608_v63 }
 0x116   :  { %v1356_v1 = vpop.f32.mrb[4].mxu0 }
 0x117   :  { %v1378_v2 = vpop.f32.mrb[4].mxu1  ;;  %v1357_v3 = vpop.f32.mrb[5].mxu0 }
 0x118   :  { %v1358_v4 = vadd.f32 %v1357_v3, %v1356_v1  ;;  %v1379_v5 = vpop.f32.mrb[5].mxu1  ;;  %v1359_v6 = vpop.f32.mrb[6].mxu0 }
 0x119   :  { %v1380_v7 = vadd.f32 %v1379_v5, %v1378_v2  ;;  %v1381_v8 = vpop.f32.mrb[6].mxu1  ;;  %v1360_v9 = vpop.f32.mrb[7].mxu0 }
 0x11a   :  { %v687_v10 = vadd.f32 %v1358_v4, %v646_v62  ;;  %v1361_v11 = vadd.f32 %v1360_v9, %v1359_v6  ;;  %v1382_v12 = vpop.f32.mrb[7].mxu1 }
 0x11b   :  { %v1383_v13 = vadd.f32 %v1382_v12, %v1381_v8 }
 0x11c   :  { %v728_v14 = vadd.f32 %v1380_v7, %v687_v10  ;;  %v690_v15 = vadd.f32 %v1361_v11, %v649_v0 }
 0x11e   :  { %v731_v16 = vadd.f32 %v1383_v13, %v690_v15  ;;  %v734_v17 = vmax.f32 %v728_v14, 0.0 }
 0x120   :  { %v735_v18 = vmax.f32 %v731_v16, 0.0 }
 0x122   :  { %v736_v20 = vpack.c.bf16 %v735_v18, %v734_v17 }
 0x124   :  { %1410 = vmatmul.mubr.bf16.vlgmr.msra.gmra.mrb[8].mxu0 %v736_v20 }
 0x125   :  { %1108 = vmatpush1.bf16.msra.mxu0 %v1491_v19  ;;  %1139 = vmatprep.mubr.bf16.mxu0 %v1538_v37 }
 0x126   :  { %1109 = vmatprep.subr.bf16.mxu0 %v1499_v21 }
 0x129   :  { %1110 = vmatpush1.bf16.msra.mxu0 %v1497_v22 }
 0x12a   :  { %1111 = vmatprep.subr.bf16.mxu0 %v1505_v23 }
 0x12d   :  { %1112 = vmatpush1.bf16.msra.mxu0 %v1503_v24 }
 0x12e   :  { %1113 = vmatprep.subr.bf16.mxu0 %v1511_v25 }
 0x131   :  { %1114 = vmatpush1.bf16.msra.mxu0 %v1509_v26 }
 0x132   :  { %1115 = vmatprep.subr.bf16.mxu0 %v1517_v27 }
 0x135   :  { %1116 = vmatpush1.bf16.msra.mxu0 %v1515_v28 }
 0x136   :  { %1117 = vmatprep.subr.bf16.mxu0 %v1523_v29 }
 0x139   :  { %1118 = vmatpush1.bf16.msra.mxu0 %v1521_v30 }
 0x13a   :  { %1119 = vmatprep.subr.bf16.mxu0 %v1529_v31 }
 0x13d   :  { %1120 = vmatpush1.bf16.msra.mxu0 %v1527_v32 }
 0x13e   :  { %1121 = vmatprep.subr.bf16.mxu0 %v1535_v34 }
 0x141   :  { %1122 = vmatpush1.bf16.msra.mxu0 %v1533_v36 }
 0x1f7   :  { %v842_v39 = vpop.f32.mrb[8].mxu0 }
 0x1f8   :  { %v1411_v40 = vpop.f32.mrb[9].mxu0  ;;  %v843_v42 = vadd.f32 %v1247_v38, %v842_v39 }
 0x1f9   :  { %v845_v41 = vpop.f32.mrb[10].mxu0 }
 0x1fa   :  { %v846_v43 = vadd.f32 %v1247_v38, %v845_v41  ;;  %v1412_v44 = vpop.f32.mrb[11].mxu0 }
 0x1fc   :  { %v849_v45 = vpack.c.bf16 %v846_v43, %v843_v42 }
 0x1fe   :  { %1097 = vmatmul.mubr.bf16.vlgmr.msra.gmra.mrb[8].mxu1 %v849_v45  ;;  %1140 = vmatmul.mubr.bf16.vlgmr.msra.gmra.mrb[12].mxu0 %v849_v45 }
 0x2d1   :  { %v1098_v57 = vpop.f32.mrb[8].mxu1  ;;  %v1141_v58 = vpop.f32.mrb[12].mxu0 }
 0x2d2   :  { %v1099_v59 = vadd.f32 %v1098_v57, %v887_v53  ;;  %v1142_v60 = vadd.f32 %v1141_v58, %v895_v54  ;;  %v1100_v61 = vpop.f32.mrb[9].mxu1  ;;  %v1143_v62 = vpop.f32.mrb[13].mxu0 }
 0x2d3   :  { %v1101_v63 = vadd.f32 %v1100_v61, %v891_v55  ;;  %v1144_v0 = vadd.f32 %v1143_v62, %v899_v56  ;;  %v1102_v1 = vpop.f32.mrb[10].mxu1  ;;  %v1145_v2 = vpop.f32.mrb[14].mxu0 }
 0x2d4   :  { %v1103_v3 = vadd.f32 %v1102_v1, %v887_v53  ;;  %v1146_v4 = vadd.f32 %v1145_v2, %v895_v54  ;;  %v1104_v5 = vpop.f32.mrb[11].mxu1  ;;  %v1147_v6 = vpop.f32.mrb[15].mxu0 }
 0x2d5   :  { %v1292_v7 = vpack.c.bf16 %v1101_v63, %v1099_v59  ;;  %v1293_v8 = vpack.c.bf16 %v1144_v0, %v1142_v60  ;;  %v1105_v9 = vadd.f32 %v1104_v5, %v891_v55  ;;  %v1148_v10 = vadd.f32 %v1147_v6, %v899_v56 }
 0x2d7   :  { %1174 = vst [vmem:[%s1967_s7] sm:$0xff] %v1292_v7  ;;  %1175 = vst [vmem:[%s1967_s7 + $0x8] sm:$0xff] %v1293_v8  ;;  %v1294_v11 = vpack.c.bf16 %v1105_v9, %v1103_v3  ;;  %v1295_v12 = vpack.c.bf16 %v1148_v10, %v1146_v4 }
 0x2d9   :  { %1176 = vst [vmem:[%s1967_s7 + $0x10] sm:$0xff] %v1294_v11  ;;  %1177 = vst [vmem:[%s1967_s7 + $0x18] sm:$0xff] %v1295_v12 }

// kernel: video_encoder_forward.3
= control target key start
LH: loop header
LB: loop body
LE: loop exit
PB: predicated region body
PF: predicated region fallthrough
CT: control target
= control target key end

     0   :  { %v4514_v2 = vmov 0   ;;  %s6153_s0 = inlined_call_operand.vmem [shape: bf16[2,8,512], index: 0, kind: input, shape index: {}]   ;;  %s6154_s1 = inlined_call_operand.vmem [shape: bf16[128,512], index: 1, kind: input, shape index: {}]   ;;  %s6155_s2 = inlined_call_operand.vmem [shape: bf16[128,512], index: 2, kind: input, shape index: {}]   ;;  %s6156_s3 = inlined_call_operand.vmem [shape: bf16[128,512], index: 3, kind: input, shape index: {}]   ;;  %s6157_s4 = inlined_call_operand.vmem [shape: f32[1,512], index: 4, kind: input, shape index: {}]   ;;  %s6158_s5 = inlined_call_operand.vmem [shape: bf16[128,128], index: 5, kind: input, shape index: {}]   ;;  %s6159_s6 = inlined_call_operand.vmem [shape: f32[1,128], index: 6, kind: input, shape index: {}]   ;;  %s6160_s7 = inlined_call_operand.vmem [shape: bf16[128,32], index: 7, kind: input, shape index: {}]   ;;  %s6161_s8 = inlined_call_operand.vmem [shape: f32[1,32], index: 8, kind: input, shape index: {}]   ;;  %s6162_s9 = inlined_call_operand.vmem [shape: f32[1,32], index: 9, kind: input, shape index: {}]   ;;  %s6163_s10 = inlined_call_operand.vmem [shape: f32[1,32], index: 10, kind: input, shape index: {}]   ;;  %s6164_s11 = inlined_call_operand.hbm [shape: f32[2,32], index: 11, kind: output, shape index: {}]  }
   0x1   :  { %v4581_v0 = vld [vmem:[%s6154_s1 + $0x4] ss:$16 sps:$4 sm:$0xff]   ;;  %v4586_v1 = vld [vmem:[%s6154_s1] ss:$16 sps:$4 sm:$0xff]   ;;  %276 = vmatprep.mubr.bf16.mxu0 %v4514_v2  ;;  %317 = vmatprep.mubr.bf16.mxu1 %v4514_v2  ;;  %v4611_v6 = vld [vmem:[%s6154_s1 + $0xc] ss:$16 sps:$4 sm:$0xff]  }
   0x2   :  { %244 = vmatprep.subr.bf16.mxu0 %v4581_v0  ;;  %v4594_v3 = vld [vmem:[%s6154_s1 + $0x24] ss:$16 sps:$4 sm:$0xff]   ;;  %v4600_v4 = vld [vmem:[%s6154_s1 + $0x20] ss:$16 sps:$4 sm:$0xff]   ;;  %v4616_v7 = vld [vmem:[%s6154_s1 + $0x8] ss:$16 sps:$4 sm:$0xff]   ;;  %285 = vmatprep.subr.bf16.mxu1 %v4611_v6 }
   0x3   :  { %245 = vmatpush1.bf16.msra.mxu0 %v4586_v1  ;;  %v4606_v5 = vld [vmem:[%s6154_s1 + $0x44] ss:$16 sps:$4 sm:$0xff]   ;;  %v4622_v8 = vld [vmem:[%s6154_s1 + $0x40] ss:$16 sps:$4 sm:$0xff]   ;;  %286 = vmatpush1.bf16.msra.mxu1 %v4616_v7  ;;  %v4635_v10 = vld [vmem:[%s6154_s1 + $0x2c] ss:$16 sps:$4 sm:$0xff]  }
   0x4   :  { %246 = vmatprep.subr.bf16.mxu0 %v4594_v3  ;;  %v4629_v9 = vld [vmem:[%s6154_s1 + $0x64] ss:$16 sps:$4 sm:$0xff]   ;;  %v4640_v11 = vld [vmem:[%s6154_s1 + $0x28] ss:$16 sps:$4 sm:$0xff]   ;;  %287 = vmatprep.subr.bf16.mxu1 %v4635_v10  ;;  %v4647_v12 = vld [vmem:[%s6154_s1 + $0x60] ss:$16 sps:$4 sm:$0xff]  }
   0x5   :  { %v4652_v13 = vld [vmem:[%s6154_s1 + $0x84] ss:$16 sps:$4 sm:$0xff]   ;;  %v4657_v14 = vld [vmem:[%s6154_s1 + $0x4c] ss:$16 sps:$4 sm:$0xff]   ;;  %v4664_v15 = vld [vmem:[%s6154_s1 + $0x48] ss:$16 sps:$4 sm:$0xff]  }
   0x6   :  { %v4670_v16 = vld [vmem:[%s6154_s1 + $0x6c] ss:$16 sps:$4 sm:$0xff]   ;;  %v4676_v17 = vld [vmem:[%s6154_s1 + $0x80] ss:$16 sps:$4 sm:$0xff]   ;;  %v4682_v18 = vld [vmem:[%s6154_s1 + $0xa4] ss:$16 sps:$4 sm:$0xff]  }
   0x7   :  { %247 = vmatpush1.bf16.msra.mxu0 %v4600_v4  ;;  %288 = vmatpush1.bf16.msra.mxu1 %v4640_v11  ;;  %v4688_v19 = vld [vmem:[%s6154_s1 + $0x68] ss:$16 sps:$4 sm:$0xff]   ;;  %v4694_v20 = vld [vmem:[%s6154_s1 + $0x8c] ss:$16 sps:$4 sm:$0xff]   ;;  %v4700_v21 = vld [vmem:[%s6154_s1 + $0xa0] ss:$16 sps:$4 sm:$0xff]  }
   0x8   :  { %248 = vmatprep.subr.bf16.mxu0 %v4606_v5  ;;  %289 = vmatprep.subr.bf16.mxu1 %v4657_v14  ;;  %v4705_v22 = vld [vmem:[%s6154_s1 + $0xc4] ss:$16 sps:$4 sm:$0xff]   ;;  %v4712_v23 = vld [vmem:[%s6154_s1 + $0x88] ss:$16 sps:$4 sm:$0xff]   ;;  %v4717_v24 = vld [vmem:[%s6154_s1 + $0xc0] ss:$16 sps:$4 sm:$0xff]  }
   0x9   :  { %v4723_v25 = vld [vmem:[%s6154_s1 + $0xac] ss:$16 sps:$4 sm:$0xff]   ;;  %v4728_v26 = vld [vmem:[%s6154_s1 + $0xe4] ss:$16 sps:$4 sm:$0xff]   ;;  %v4733_v27 = vld [vmem:[%s6154_s1 + $0xa8] ss:$16 sps:$4 sm:$0xff]  }
   0xa   :  { %v4739_v28 = vld [vmem:[%s6154_s1 + $0xcc] ss:$16 sps:$4 sm:$0xff]   ;;  %v4746_v29 = vld [vmem:[%s6154_s1 + $0xe0] ss:$16 sps:$4 sm:$0xff]   ;;  %v4752_v30 = vld [vmem:[%s6154_s1 + $0xc8] ss:$16 sps:$4 sm:$0xff]  }
   0xb   :  { %249 = vmatpush1.bf16.msra.mxu0 %v4622_v8  ;;  %290 = vmatpush1.bf16.msra.mxu1 %v4664_v15  ;;  %v4758_v31 = vld [vmem:[%s6154_s1 + $0xec] ss:$16 sps:$4 sm:$0xff]   ;;  %v4766_v32 = vld [vmem:[%s6154_s1 + $0xe8] ss:$16 sps:$4 sm:$0xff]  }
   0xc   :  { %250 = vmatprep.subr.bf16.mxu0 %v4629_v9  ;;  %291 = vmatprep.subr.bf16.mxu1 %v4670_v16 }
   0xf   :  { %251 = vmatpush1.bf16.msra.mxu0 %v4647_v12  ;;  %292 = vmatpush1.bf16.msra.mxu1 %v4688_v19 }
  0x10   :  { %252 = vmatprep.subr.bf16.mxu0 %v4652_v13  ;;  %293 = vmatprep.subr.bf16.mxu1 %v4694_v20 }
  0x13   :  { %253 = vmatpush1.bf16.msra.mxu0 %v4676_v17  ;;  %294 = vmatpush1.bf16.msra.mxu1 %v4712_v23 }
  0x14   :  { %254 = vmatprep.subr.bf16.mxu0 %v4682_v18  ;;  %295 = vmatprep.subr.bf16.mxu1 %v4723_v25 }
  0x17   :  { %255 = vmatpush1.bf16.msra.mxu0 %v4700_v21  ;;  %296 = vmatpush1.bf16.msra.mxu1 %v4733_v27 }
  0x18   :  { %256 = vmatprep.subr.bf16.mxu0 %v4705_v22  ;;  %297 = vmatprep.subr.bf16.mxu1 %v4739_v28 }
  0x1b   :  { %257 = vmatpush1.bf16.msra.mxu0 %v4717_v24  ;;  %298 = vmatpush1.bf16.msra.mxu1 %v4752_v30 }
  0x1c   :  { %258 = vmatprep.subr.bf16.mxu0 %v4728_v26  ;;  %299 = vmatprep.subr.bf16.mxu1 %v4758_v31 }
  0x1f   :  { %259 = vmatpush1.bf16.msra.mxu0 %v4746_v29  ;;  %300 = vmatpush1.bf16.msra.mxu1 %v4766_v32 }
  0x20   :  { %422 = vmatprep.subr.bf16.mxu0 %v4581_v0  ;;  %463 = vmatprep.subr.bf16.mxu1 %v4611_v6 }
  0x22   :  { %277 = vmatmul.mubr.bf16.vlgmr.msra.gmra.mrb[0].mxu0 %v4514_v2  ;;  %318 = vmatmul.mubr.bf16.vlgmr.msra.gmra.mrb[0].mxu1 %v4514_v2 }
  0x23   :  { %423 = vmatpush1.bf16.msra.mxu0 %v4586_v1  ;;  %454 = vmatprep.mubr.bf16.mxu0 %v4514_v2 }
  0x24   :  { %424 = vmatprep.subr.bf16.mxu0 %v4594_v3  ;;  %464 = vmatpush1.bf16.msra.mxu1 %v4616_v7 }
  0x25   :  { %465 = vmatprep.subr.bf16.mxu1 %v4635_v10  ;;  %495 = vmatprep.mubr.bf16.mxu1 %v4514_v2 }
  0x27   :  { %425 = vmatpush1.bf16.msra.mxu0 %v4600_v4 }
  0x28   :  { %426 = vmatprep.subr.bf16.mxu0 %v4606_v5  ;;  %466 = vmatpush1.bf16.msra.mxu1 %v4640_v11 }
  0x29   :  { %467 = vmatprep.subr.bf16.mxu1 %v4657_v14 }
  0x2b   :  { %427 = vmatpush1.bf16.msra.mxu0 %v4622_v8 }
  0x2c   :  { %428 = vmatprep.subr.bf16.mxu0 %v4629_v9  ;;  %468 = vmatpush1.bf16.msra.mxu1 %v4664_v15 }
  0x2d   :  { %469 = vmatprep.subr.bf16.mxu1 %v4670_v16 }
  0x2f   :  { %429 = vmatpush1.bf16.msra.mxu0 %v4647_v12 }
  0x30   :  { %430 = vmatprep.subr.bf16.mxu0 %v4652_v13  ;;  %470 = vmatpush1.bf16.msra.mxu1 %v4688_v19 }
  0x31   :  { %471 = vmatprep.subr.bf16.mxu1 %v4694_v20 }
  0x33   :  { %431 = vmatpush1.bf16.msra.mxu0 %v4676_v17 }
  0x34   :  { %432 = vmatprep.subr.bf16.mxu0 %v4682_v18 }
  0x35   :  { %16 = vsyncpa [#allocation5], 0  ;;  %472 = vmatpush1.bf16.msra.mxu1 %v4712_v23  ;;  %v72_v33 = vld [vmem:[%s6153_s0] sm:$0x11]  ;;  %v74_v34 = vld [vmem:[%s6153_s0 + $0x10] sm:$0x11] }
  0x36   :  { %473 = vmatprep.subr.bf16.mxu1 %v4723_v25  ;;  %v76_v35 = vunpack.c.l.bf16 %v72_v33  ;;  %v77_v36 = vunpack.c.h.bf16 %v72_v33  ;;  %v80_v37 = vunpack.c.l.bf16 %v74_v34  ;;  %v81_v39 = vunpack.c.h.bf16 %v74_v34  ;;  %v73_v40 = vld [vmem:[%s6153_s0 + $0x8] sm:$0x11]  ;;  %v75_v47 = vld [vmem:[%s6153_s0 + $0x18] sm:$0x11]  ;;  %s4517_s23 = smov [#allocation4]  }
  0x37   :  { %433 = vmatpush1.bf16.msra.mxu0 %v4700_v21  ;;  %v79_v51 = vunpack.c.h.bf16 %v73_v40  ;;  %v83_v56 = vunpack.c.h.bf16 %v75_v47  ;;  %v78_v58 = vunpack.c.l.bf16 %v73_v40  ;;  %v82_v33 = vunpack.c.l.bf16 %v75_v47  ;;  %s3622_s24 = sshll.u32 %s4517_s23, 4  ;;  %s3623_s24 = int_to_ptr.vmem [resolvable:$true] %s3622_s24 }
  0x38   :  { %434 = vmatprep.subr.bf16.mxu0 %v4705_v22  ;;  %vm405_vm0 = vcmask 1041409   ;;  %vm590_vm1 = vcmask 1043459   ;;  %vm783_vm2 = vcmask 1045509   ;;  %vm977_vm3 = vcmask 1047559   ;;  %s4490_s25 = scalar_lea.vmem %s3623_s24, 32  ;;  %p4495_p1 = scmp.lt.s32.totalorder %s3623_s24, %s3623_s24 }
  0x39   :  { %474 = vmatpush1.bf16.msra.mxu1 %v4733_v27  ;;  %vm4516_vm4 = vmmov 0   ;;  %vm3584_vm5 = vcmask 254976   ;;  %p4491_p0 = scmp.ne.s32.totalorder %s3623_s24, %s4490_s25  ;;  %p4496_p2 = scmp.lt.s32.totalorder %s4490_s25, %s4490_s25 }
  0x3a   :  { %475 = vmatprep.subr.bf16.mxu1 %v4739_v28 }
  0x3b   :  { %435 = vmatpush1.bf16.msra.mxu0 %v4717_v24  ;;  %p4497_p3 = por %p4496_p2, %p4495_p1 }
  0x3c   :  { %436 = vmatprep.subr.bf16.mxu0 %v4728_v26 }
  0x3d   :  { %476 = vmatpush1.bf16.msra.mxu1 %v4752_v30  ;;  %p4498_p4 = pnand %p4497_p3, %p4491_p0 }
  0x3e   :  { %477 = vmatprep.subr.bf16.mxu1 %v4758_v31 }
  0x3f   :  { %437 = vmatpush1.bf16.msra.mxu0 %v4746_v29 }
  0x40   :  { %611 = vmatprep.subr.bf16.mxu0 %v4581_v0 }
  0x41   :  { %478 = vmatpush1.bf16.msra.mxu1 %v4766_v32 }
  0x42   :  { %652 = vmatprep.subr.bf16.mxu1 %v4611_v6 }
  0xf5   :  { %v278_v38 = vpop.f32.mrb[0].mxu0  ;;  %v319_v55 = vpop.f32.mrb[0].mxu1 }
  0xf6   :  { %v330_v41 = vrot.slane %v278_v38, 1  ;;  %v342_v42 = vadd.f32 %v278_v38, %v76_v35  ;;  %v280_v43 = vpop.f32.mrb[1].mxu0  ;;  %v321_v59 = vpop.f32.mrb[1].mxu1  ;;  %v332_v34 = vrot.slane %v319_v55, 1 }
  0xf7   :  { %v331_v44 = vrot.slane %v280_v43, 1  ;;  %v343_v45 = vadd.f32 %v280_v43, %v77_v36  ;;  %v282_v46 = vpop.f32.mrb[2].mxu0  ;;  %v333_v60 = vrot.slane %v321_v59, 1  ;;  %v345_v61 = vadd.f32 %v321_v59, %v79_v51  ;;  %v323_v62 = vpop.f32.mrb[2].mxu1 }
  0xf8   :  { %v346_v48 = vadd.f32 %v330_v41, %v80_v37  ;;  %v3662_v49 = vmul.f32 -1.442695, %v342_v42  ;;  %v283_v50 = vpop.f32.mrb[3].mxu0  ;;  %v324_v63 = vpop.f32.mrb[3].mxu1  ;;  %v344_v36 = vadd.f32 %v319_v55, %v78_v58 }
  0xf9   :  { %v347_v52 = vadd.f32 %v331_v44, %v81_v39  ;;  %v3664_v53 = vmul.f32 -1.442695, %v343_v45  ;;  %v349_v35 = vadd.f32 %v333_v60, %v83_v56  ;;  %v3666_v37 = vmul.f32 -1.442695, %v345_v61 }
  0xfa   :  { %4040 = vpow2.f32 %v3662_v49  ;;  %v3663_v54 = vmul.f32 -1.442695, %v346_v48  ;;  %v348_v39 = vadd.f32 %v332_v34, %v82_v33 }
  0xfb   :  { %4042 = vpow2.f32 %v3664_v53  ;;  %v3665_v57 = vmul.f32 -1.442695, %v347_v52  ;;  %v3667_v38 = vmul.f32 -1.442695, %v349_v35 }
  0xfc   :  { %4044 = vpow2.f32 %v3663_v54 }
  0xfd   :  { %4046 = vpow2.f32 %v3665_v57 }
  0xfe   :  { %4048 = vtanh.f32 %v344_v36 }
  0xff   :  { %4050 = vpow2.f32 %v3666_v37 }
 0x100   :  { %4052 = vpow2.f32 %v3667_v38 }
 0x101   :  { %4054 = vtanh.f32 %v348_v39 }
 0x104   :  { %v4041_v41 = vpop.eup %4040 }
 0x105   :  { %v4043_v42 = vpop.eup %4042  ;;  %v356_v43 = vadd.f32 1.0, %v4041_v41 }
 0x106   :  { %v4045_v40 = vpop.eup %4044  ;;  %v368_v44 = vadd.f32 1.0, %v4043_v42 }
 0x107   :  { %v4047_v45 = vpop.eup %4046  ;;  %v357_v46 = vadd.f32 1.0, %v4045_v40  ;;  %4056 = vrcp.f32 %v356_v43 }
 0x108   :  { %v369_v48 = vadd.f32 1.0, %v4047_v45  ;;  %4058 = vrcp.f32 %v368_v44  ;;  %v4049_v47 = vpop.eup %4048 }
 0x109   :  { %4060 = vrcp.f32 %v357_v46  ;;  %v4051_v49 = vpop.eup %4050  ;;  %v412_v46 = vld [vmem:[%s6153_s0 + $0x10] sm:$0x11] }
 0x10a   :  { %4062 = vrcp.f32 %v369_v48  ;;  %v4053_v50 = vpop.eup %4052  ;;  %v382_v53 = vadd.f32 1.0, %v4051_v49  ;;  %v410_v48 = vld [vmem:[%s6153_s0] sm:$0x11]  ;;  %v419_v49 = vunpack.c.h.bf16 %v412_v46 }
 0x10b   :  { %v4055_v51 = vpop.eup %4054  ;;  %v383_v56 = vadd.f32 1.0, %v4053_v50  ;;  %v414_v50 = vunpack.c.l.bf16 %v410_v48 }
 0x10c   :  { %4064 = vrcp.f32 %v382_v53  ;;  %v415_v53 = vunpack.c.h.bf16 %v410_v48 }
 0x10d   :  { %4066 = vrcp.f32 %v383_v56  ;;  %v411_v56 = vld [vmem:[%s6153_s0 + $0x8] sm:$0x11] }
 0x111   :  { %v4057_v52 = vpop.eup %4056 }
 0x112   :  { %v4059_v54 = vpop.eup %4058  ;;  %v390_v55 = vmul.f32 %v4057_v52, %v4049_v47  ;;  %v418_v47 = vunpack.c.l.bf16 %v412_v46 }
 0x113   :  { %v4061_v57 = vpop.eup %4060  ;;  %v388_v58 = vmul.f32 0.0, %v4059_v54 }
 0x114   :  { %v4063_v59 = vpop.eup %4062  ;;  %v391_v60 = vmul.f32 %v4061_v57, %v4055_v51 }
 0x115   :  { %v389_v61 = vmul.f32 0.0, %v4063_v59  ;;  %v4822_v62 = vadd.f32 %v390_v55, %v388_v58  ;;  %v413_v59 = vld [vmem:[%s6153_s0 + $0x18] sm:$0x11] }
 0x116   :  { %v4065_v33 = vpop.eup %4064  ;;  %v420_v46 = vunpack.c.l.bf16 %v413_v59 }
 0x117   :  { %v4824_v63 = vadd.f32 %v391_v60, %v389_v61  ;;  %4068 = vtanh.f32 %v4822_v62  ;;  %v4067_v34 = vpop.eup %4066 }
 0x119   :  { %4070 = vtanh.f32 %v4824_v63 }
 0x121   :  { %v4069_v35 = vpop.eup %4068 }
 0x122   :  { %v396_v36 = vmul.f32 %v4069_v35, %v4065_v33 }
 0x123   :  { %v4071_v37 = vpop.eup %4070 }
 0x124   :  { %v397_v38 = vmul.f32 %v4071_v37, %v4067_v34  ;;  %v398_v39 = vpack.c.bf16 %v396_v36, %v396_v36 }
 0x126   :  { %v399_v41 = vpack.c.bf16 %v397_v38, %v397_v38  ;;  %v402_v43 = vunpack.c.l.b16 %v398_v39 }
 0x128   :  { %v403_v42 = vunpack.c.l.b16 %v399_v41  ;;  %v417_v41 = vunpack.c.h.bf16 %v411_v56 }
 0x12a   :  { %v404_v40 = vrot.slane %v403_v42, 7 }
 0x12c   :  { %v406_v44 = vsel %vm405_vm0, %v404_v40, %v402_v43 }
 0x12d   :  { %v407_v45 = vpack.c.b16 %v406_v44, %v406_v44  ;;  %v421_v44 = vunpack.c.h.bf16 %v413_v59 }
 0x12f   :  { %409 = vst [vmem:[#allocation3] sm:$0x1] %v407_v45  ;;  %455 = vmatmul.mubr.bf16.vlgmr.msra.gmra.mrb[4].mxu0 %v407_v45  ;;  %496 = vmatmul.mubr.bf16.vlgmr.msra.gmra.mrb[4].mxu1 %v407_v45 }
 0x130   :  { %612 = vmatpush1.bf16.msra.mxu0 %v4586_v1  ;;  %653 = vmatpush1.bf16.msra.mxu1 %v4616_v7 }
 0x131   :  { %613 = vmatprep.subr.bf16.mxu0 %v4594_v3  ;;  %654 = vmatprep.subr.bf16.mxu1 %v4635_v10 }
 0x132   :  { %643 = vmatprep.mubr.bf16.mxu0 %v4514_v2  ;;  %684 = vmatprep.mubr.bf16.mxu1 %v4514_v2 }
 0x134   :  { %614 = vmatpush1.bf16.msra.mxu0 %v4600_v4  ;;  %655 = vmatpush1.bf16.msra.mxu1 %v4640_v11 }
 0x135   :  { %615 = vmatprep.subr.bf16.mxu0 %v4606_v5  ;;  %656 = vmatprep.subr.bf16.mxu1 %v4657_v14 }
 0x138   :  { %616 = vmatpush1.bf16.msra.mxu0 %v4622_v8  ;;  %657 = vmatpush1.bf16.msra.mxu1 %v4664_v15 }
 0x139   :  { %617 = vmatprep.subr.bf16.mxu0 %v4629_v9  ;;  %658 = vmatprep.subr.bf16.mxu1 %v4670_v16 }
 0x13c   :  { %618 = vmatpush1.bf16.msra.mxu0 %v4647_v12  ;;  %659 = vmatpush1.bf16.msra.mxu1 %v4688_v19 }
 0x13d   :  { %619 = vmatprep.subr.bf16.mxu0 %v4652_v13  ;;  %660 = vmatprep.subr.bf16.mxu1 %v4694_v20 }
 0x140   :  { %620 = vmatpush1.bf16.msra.mxu0 %v4676_v17  ;;  %661 = vmatpush1.bf16.msra.mxu1 %v4712_v23 }
 0x141   :  { %621 = vmatprep.subr.bf16.mxu0 %v4682_v18  ;;  %662 = vmatprep.subr.bf16.mxu1 %v4723_v25 }
 0x144   :  { %622 = vmatpush1.bf16.msra.mxu0 %v4700_v21  ;;  %663 = vmatpush1.bf16.msra.mxu1 %v4733_v27 }
 0x145   :  { %623 = vmatprep.subr.bf16.mxu0 %v4705_v22  ;;  %664 = vmatprep.subr.bf16.mxu1 %v4739_v28 }
 0x148   :  { %624 = vmatpush1.bf16.msra.mxu0 %v4717_v24  ;;  %665 = vmatpush1.bf16.msra.mxu1 %v4752_v30 }
 0x149   :  { %625 = vmatprep.subr.bf16.mxu0 %v4728_v26  ;;  %666 = vmatprep.subr.bf16.mxu1 %v4758_v31 }
 0x14c   :  { %626 = vmatpush1.bf16.msra.mxu0 %v4746_v29  ;;  %667 = vmatpush1.bf16.msra.mxu1 %v4766_v32 }
 0x14d   :  { %805 = vmatprep.subr.bf16.mxu0 %v4581_v0  ;;  %846 = vmatprep.subr.bf16.mxu1 %v4611_v6 }
 0x202   :  { %v456_v51 = vpop.f32.mrb[4].mxu0  ;;  %v497_v52 = vpop.f32.mrb[4].mxu1 }
 0x203   :  { %v508_v54 = vrot.slane %v456_v51, 7  ;;  %v524_v55 = vadd.f32 %v456_v51, %v418_v47  ;;  %v458_v57 = vpop.f32.mrb[5].mxu0  ;;  %v499_v58 = vpop.f32.mrb[5].mxu1  ;;  %v510_v51 = vrot.slane %v497_v52, 7 }
 0x204   :  { %v509_v60 = vrot.slane %v458_v57, 7  ;;  %v525_v61 = vadd.f32 %v458_v57, %v419_v49  ;;  %v460_v33 = vpop.f32.mrb[6].mxu0  ;;  %v501_v34 = vpop.f32.mrb[6].mxu1  ;;  %v511_v42 = vrot.slane %v499_v58, 7  ;;  %v527_v47 = vadd.f32 %v499_v58, %v421_v44 }
 0x205   :  { %v520_v35 = vadd.f32 %v508_v54, %v414_v50  ;;  %v3669_v36 = vmul.f32 -1.442695, %v524_v55  ;;  %v461_v37 = vpop.f32.mrb[7].mxu0  ;;  %v502_v38 = vpop.f32.mrb[7].mxu1  ;;  %v416_v49 = vunpack.c.l.bf16 %v411_v56  ;;  %v526_v50 = vadd.f32 %v497_v52, %v420_v46 }
 0x206   :  { %v521_v39 = vadd.f32 %v509_v60, %v415_v53  ;;  %v3671_v40 = vmul.f32 -1.442695, %v525_v61  ;;  %v523_v48 = vadd.f32 %v511_v42, %v417_v41  ;;  %v3673_v55 = vmul.f32 -1.442695, %v527_v47 }
 0x207   :  { %v3668_v43 = vmul.f32 -1.442695, %v520_v35  ;;  %4072 = vpow2.f32 %v3669_v36  ;;  %v522_v53 = vadd.f32 %v510_v51, %v416_v49  ;;  %v568_v42 = vrot.slane %v4822_v62, 7 }
 0x208   :  { %v3670_v45 = vmul.f32 -1.442695, %v521_v39  ;;  %v3672_v54 = vmul.f32 -1.442695, %v523_v48 }
 0x209   :  { %4074 = vpow2.f32 %v3668_v43 }
 0x20a   :  { %4076 = vpow2.f32 %v3670_v45  ;;  %v569_v45 = vrot.slane %v4824_v63, 7 }
 0x20b   :  { %4078 = vpow2.f32 %v3671_v40 }
 0x20c   :  { %4080 = vtanh.f32 %v526_v50 }
 0x20d   :  { %4082 = vpow2.f32 %v3672_v54 }
 0x20e   :  { %4084 = vpow2.f32 %v3673_v55 }
 0x211   :  { %v4073_v57 = vpop.eup %4072 }
 0x212   :  { %v535_v60 = vadd.f32 1.0, %v4073_v57 }
 0x213   :  { %v4075_v33 = vpop.eup %4074 }
 0x214   :  { %v4077_v61 = vpop.eup %4076  ;;  %v534_v34 = vadd.f32 1.0, %v4075_v33  ;;  %4086 = vrcp.f32 %v535_v60 }
 0x215   :  { %v4079_v59 = vpop.eup %4078  ;;  %4088 = vtanh.f32 %v522_v53  ;;  %v546_v35 = vadd.f32 1.0, %v4077_v61 }
 0x216   :  { %4090 = vrcp.f32 %v534_v34  ;;  %v547_v58 = vadd.f32 1.0, %v4079_v59  ;;  %v4081_v52 = vpop.eup %4080 }
 0x217   :  { %4092 = vrcp.f32 %v546_v35  ;;  %v4083_v56 = vpop.eup %4082 }
 0x218   :  { %4094 = vrcp.f32 %v547_v58  ;;  %v4085_v36 = vpop.eup %4084  ;;  %v560_v43 = vadd.f32 1.0, %v4083_v56 }
 0x219   :  { %v561_v46 = vadd.f32 1.0, %v4085_v36 }
 0x21a   :  { %4096 = vrcp.f32 %v560_v43 }
 0x21b   :  { %4098 = vrcp.f32 %v561_v46 }
 0x21e   :  { %v4087_v37 = vpop.eup %4086 }
 0x21f   :  { %v4089_v38 = vpop.eup %4088  ;;  %v575_v39 = vmul.f32 %v4087_v37, %v4081_v52 }
 0x220   :  { %v4091_v41 = vpop.eup %4090 }
 0x221   :  { %v4093_v40 = vpop.eup %4092  ;;  %v574_v44 = vmul.f32 %v4091_v41, %v4089_v38 }
 0x222   :  { %v4095_v48 = vpop.eup %4094  ;;  %v572_v47 = vmul.f32 %v4093_v40, %v568_v42 }
 0x223   :  { %v573_v49 = vmul.f32 %v4095_v48, %v569_v45 }
 0x224   :  { %v4877_v51 = vadd.f32 %v574_v44, %v572_v47  ;;  %v4097_v62 = vpop.eup %4096 }
 0x225   :  { %v4879_v50 = vadd.f32 %v575_v39, %v573_v49  ;;  %v4099_v54 = vpop.eup %4098 }
 0x226   :  { %4100 = vtanh.f32 %v4877_v51 }
 0x227   :  { %4102 = vtanh.f32 %v4879_v50 }
 0x230   :  { %v4101_v55 = vpop.eup %4100 }
 0x231   :  { %v4103_v57 = vpop.eup %4102  ;;  %v580_v53 = vmul.f32 %v4101_v55, %v4097_v62 }
 0x232   :  { %v581_v63 = vmul.f32 %v4103_v57, %v4099_v54 }
 0x233   :  { %v582_v60 = vpack.c.bf16 %v580_v53, %v580_v53 }
 0x234   :  { %v583_v33 = vpack.c.bf16 %v581_v63, %v581_v63 }
 0x235   :  { %v586_v61 = vunpack.c.l.b16 %v582_v60 }
 0x236   :  { %v587_v34 = vunpack.c.l.b16 %v583_v33 }
 0x237   :  { %v588_v59 = vrot.slane %v586_v61, 7  ;;  %v607_v35 = vrot.slane %v586_v61, 1 }
 0x238   :  { %v589_v58 = vrot.slane %v587_v34, 6 }
 0x239   :  { %v608_v52 = vsel %vm405_vm0, %v587_v34, %v607_v35 }
 0x23a   :  { %v591_v56 = vsel %vm590_vm1, %v589_v58, %v588_v59  ;;  %v609_v36 = vpack.c.b16 %v608_v52, %v608_v52  ;;  %v761_v52 = vrot.slane %v4877_v51, 7 }
 0x23b   :  { %v592_v37 = vpack.c.b16 %v591_v56, %v591_v56 }
 0x23c   :  { %644 = vmatmul.mubr.bf16.vlgmr.msra.gmra.mrb[8].mxu0 %v609_v36  ;;  %685 = vmatmul.mubr.bf16.vlgmr.msra.gmra.mrb[8].mxu1 %v609_v36 }
 0x23d   :  { %594 = vst [vmem:[#allocation3] sm:$0x2] %v592_v37  ;;  %806 = vmatpush1.bf16.msra.mxu0 %v4586_v1  ;;  %847 = vmatpush1.bf16.msra.mxu1 %v4616_v7  ;;  %v595_v1 = vld [vmem:[%s6153_s0] sm:$0x22] }
 0x23e   :  { %807 = vmatprep.subr.bf16.mxu0 %v4594_v3  ;;  %848 = vmatprep.subr.bf16.mxu1 %v4635_v10  ;;  %v597_v3 = vld [vmem:[%s6153_s0 + $0x10] sm:$0x22] }
 0x23f   :  { %837 = vmatprep.mubr.bf16.mxu0 %v4514_v2  ;;  %878 = vmatprep.mubr.bf16.mxu1 %v4514_v2  ;;  %v604_v10 = vunpack.c.h.bf16 %v597_v3 }
 0x241   :  { %808 = vmatpush1.bf16.msra.mxu0 %v4600_v4  ;;  %849 = vmatpush1.bf16.msra.mxu1 %v4640_v11  ;;  %v599_v4 = vunpack.c.l.bf16 %v595_v1 }
 0x242   :  { %809 = vmatprep.subr.bf16.mxu0 %v4606_v5  ;;  %850 = vmatprep.subr.bf16.mxu1 %v4657_v14  ;;  %v603_v5 = vunpack.c.l.bf16 %v597_v3 }
 0x245   :  { %810 = vmatpush1.bf16.msra.mxu0 %v4622_v8  ;;  %851 = vmatpush1.bf16.msra.mxu1 %v4664_v15 }
 0x246   :  { %811 = vmatprep.subr.bf16.mxu0 %v4629_v9  ;;  %852 = vmatprep.subr.bf16.mxu1 %v4670_v16  ;;  %v600_v9 = vunpack.c.h.bf16 %v595_v1  ;;  %v762_v1 = vrot.slane %v4879_v50, 7 }
 0x249   :  { %812 = vmatpush1.bf16.msra.mxu0 %v4647_v12  ;;  %853 = vmatpush1.bf16.msra.mxu1 %v4688_v19  ;;  %v596_v19 = vld [vmem:[%s6153_s0 + $0x8] sm:$0x22] }
 0x24a   :  { %813 = vmatprep.subr.bf16.mxu0 %v4652_v13  ;;  %854 = vmatprep.subr.bf16.mxu1 %v4694_v20  ;;  %v601_v38 = vunpack.c.l.bf16 %v596_v19 }
 0x24d   :  { %814 = vmatpush1.bf16.msra.mxu0 %v4676_v17  ;;  %855 = vmatpush1.bf16.msra.mxu1 %v4712_v23 }
 0x24e   :  { %815 = vmatprep.subr.bf16.mxu0 %v4682_v18  ;;  %856 = vmatprep.subr.bf16.mxu1 %v4723_v25 }
 0x251   :  { %816 = vmatpush1.bf16.msra.mxu0 %v4700_v21  ;;  %857 = vmatpush1.bf16.msra.mxu1 %v4733_v27 }
 0x252   :  { %817 = vmatprep.subr.bf16.mxu0 %v4705_v22  ;;  %858 = vmatprep.subr.bf16.mxu1 %v4739_v28  ;;  %v598_v22 = vld [vmem:[%s6153_s0 + $0x18] sm:$0x22] }
 0x253   :  { %v605_v41 = vunpack.c.l.bf16 %v598_v22 }
 0x255   :  { %818 = vmatpush1.bf16.msra.mxu0 %v4717_v24  ;;  %859 = vmatpush1.bf16.msra.mxu1 %v4752_v30 }
 0x256   :  { %819 = vmatprep.subr.bf16.mxu0 %v4728_v26  ;;  %860 = vmatprep.subr.bf16.mxu1 %v4758_v31  ;;  %v606_v31 = vunpack.c.h.bf16 %v598_v22 }
 0x259   :  { %820 = vmatpush1.bf16.msra.mxu0 %v4746_v29  ;;  %861 = vmatpush1.bf16.msra.mxu1 %v4766_v32  ;;  %v602_v29 = vunpack.c.h.bf16 %v596_v19 }
 0x25a   :  { %999 = vmatprep.subr.bf16.mxu0 %v4581_v0  ;;  %1040 = vmatprep.subr.bf16.mxu1 %v4611_v6 }
 0x30f   :  { %v645_v7 = vpop.f32.mrb[8].mxu0  ;;  %v686_v8 = vpop.f32.mrb[8].mxu1 }
 0x310   :  { %v697_v11 = vrot.slane %v645_v7, 6  ;;  %v701_v12 = vrot.slane %v645_v7, 7  ;;  %v647_v13 = vpop.f32.mrb[9].mxu0  ;;  %v688_v0 = vpop.f32.mrb[9].mxu1  ;;  %v699_v39 = vrot.slane %v686_v8, 6  ;;  %v703_v42 = vrot.slane %v686_v8, 7 }
 0x311   :  { %v698_v14 = vrot.slane %v647_v13, 6  ;;  %v702_v6 = vrot.slane %v647_v13, 7  ;;  %v649_v15 = vpop.f32.mrb[10].mxu0  ;;  %v690_v16 = vpop.f32.mrb[10].mxu1  ;;  %v700_v30 = vrot.slane %v688_v0, 6  ;;  %v704_v32 = vrot.slane %v688_v0, 7 }
 0x312   :  { %v713_v17 = vadd.f32 %v697_v11, %v599_v4  ;;  %v717_v18 = vadd.f32 %v701_v12, %v603_v5  ;;  %v650_v20 = vpop.f32.mrb[11].mxu0  ;;  %v691_v21 = vpop.f32.mrb[11].mxu1  ;;  %v715_v44 = vadd.f32 %v699_v39, %v601_v38  ;;  %v719_v45 = vadd.f32 %v703_v42, %v605_v41  ;;  %v5000_v38 = vld [vmem:[%s6154_s1 + $0x48] ss:$16 sps:$4 sm:$0xff]   ;;  %v5006_v39 = vld [vmem:[%s6154_s1 + $0x64] ss:$16 sps:$4 sm:$0xff]  }
 0x313   :  { %v714_v23 = vadd.f32 %v698_v14, %v600_v9  ;;  %v718_v24 = vadd.f32 %v702_v6, %v604_v10  ;;  %v716_v43 = vadd.f32 %v700_v30, %v602_v29  ;;  %v720_v40 = vadd.f32 %v704_v32, %v606_v31  ;;  %v4976_v29 = vld [vmem:[%s6154_s1 + $0x28] ss:$16 sps:$4 sm:$0xff]   ;;  %v4982_v30 = vld [vmem:[%s6154_s1 + $0x44] ss:$16 sps:$4 sm:$0xff]   ;;  %v4988_v31 = vld [vmem:[%s6154_s1 + $0x4c] ss:$16 sps:$4 sm:$0xff]  }
 0x314   :  { %v3674_v25 = vmul.f32 -1.442695, %v713_v17  ;;  %v3675_v26 = vmul.f32 -1.442695, %v717_v18  ;;  %v4994_v32 = vld [vmem:[%s6154_s1 + $0x40] ss:$16 sps:$4 sm:$0xff]  }
 0x315   :  { %v3676_v27 = vmul.f32 -1.442695, %v714_v23  ;;  %v3677_v28 = vmul.f32 -1.442695, %v718_v24  ;;  %v3678_v46 = vmul.f32 -1.442695, %v716_v43 }
 0x316   :  { %4104 = vpow2.f32 %v3674_v25  ;;  %v3679_v48 = vmul.f32 -1.442695, %v720_v40  ;;  %v4944_v24 = vld [vmem:[%s6154_s1] ss:$16 sps:$4 sm:$0xff]   ;;  %v4950_v25 = vld [vmem:[%s6154_s1 + $0x8] ss:$16 sps:$4 sm:$0xff]  }
 0x317   :  { %4106 = vpow2.f32 %v3675_v26  ;;  %v4956_v26 = vld [vmem:[%s6154_s1 + $0x24] ss:$16 sps:$4 sm:$0xff]   ;;  %v5012_v41 = vld [vmem:[%s6154_s1 + $0x6c] ss:$16 sps:$4 sm:$0xff]   ;;  %v5018_v42 = vld [vmem:[%s6154_s1 + $0x60] ss:$16 sps:$4 sm:$0xff]  }
 0x318   :  { %4108 = vpow2.f32 %v3676_v27  ;;  %v4962_v27 = vld [vmem:[%s6154_s1 + $0x2c] ss:$16 sps:$4 sm:$0xff]   ;;  %v5024_v43 = vld [vmem:[%s6154_s1 + $0x68] ss:$16 sps:$4 sm:$0xff]   ;;  %v5030_v40 = vld [vmem:[%s6154_s1 + $0x84] ss:$16 sps:$4 sm:$0xff]  }
 0x319   :  { %4110 = vpow2.f32 %v3677_v28  ;;  %v4970_v28 = vld [vmem:[%s6154_s1 + $0x20] ss:$16 sps:$4 sm:$0xff]  }
 0x31a   :  { %4112 = vtanh.f32 %v715_v44  ;;  %v5036_v44 = vld [vmem:[%s6154_s1 + $0x8c] ss:$16 sps:$4 sm:$0xff]  }
 0x31b   :  { %4114 = vtanh.f32 %v719_v45  ;;  %v5042_v45 = vld [vmem:[%s6154_s1 + $0x80] ss:$16 sps:$4 sm:$0xff]  }
 0x31c   :  { %4116 = vpow2.f32 %v3678_v46  ;;  %v5048_v46 = vld [vmem:[%s6154_s1 + $0x88] ss:$16 sps:$4 sm:$0xff]  }
 0x31d   :  { %4118 = vpow2.f32 %v3679_v48  ;;  %v5054_v48 = vld [vmem:[%s6154_s1 + $0xa4] ss:$16 sps:$4 sm:$0xff]  }
 0x320   :  { %v4105_v47 = vpop.eup %4104 }
 0x321   :  { %v4107_v49 = vpop.eup %4106  ;;  %v727_v62 = vadd.f32 1.0, %v4105_v47  ;;  %v5060_v47 = vld [vmem:[%s6154_s1 + $0xac] ss:$16 sps:$4 sm:$0xff]  }
 0x322   :  { %v4109_v54 = vpop.eup %4108  ;;  %v728_v55 = vadd.f32 1.0, %v4107_v49  ;;  %v5066_v49 = vld [vmem:[%s6154_s1 + $0xa0] ss:$16 sps:$4 sm:$0xff]  }
 0x323   :  { %v4111_v57 = vpop.eup %4110  ;;  %4120 = vrcp.f32 %v727_v62  ;;  %v739_v53 = vadd.f32 1.0, %v4109_v54  ;;  %v5072_v62 = vld [vmem:[%s6154_s1 + $0xa8] ss:$16 sps:$4 sm:$0xff]   ;;  %v5078_v54 = vld [vmem:[%s6154_s1 + $0xc4] ss:$16 sps:$4 sm:$0xff]  }
 0x324   :  { %4122 = vrcp.f32 %v728_v55  ;;  %v740_v63 = vadd.f32 1.0, %v4111_v57  ;;  %v4113_v60 = vpop.eup %4112  ;;  %v5084_v55 = vld [vmem:[%s6154_s1 + $0xcc] ss:$16 sps:$4 sm:$0xff]   ;;  %v5090_v57 = vld [vmem:[%s6154_s1 + $0xc0] ss:$16 sps:$4 sm:$0xff]  }
 0x325   :  { %4124 = vrcp.f32 %v739_v53  ;;  %v4115_v33 = vpop.eup %4114  ;;  %v5096_v53 = vld [vmem:[%s6154_s1 + $0xc8] ss:$16 sps:$4 sm:$0xff]  }
 0x326   :  { %4126 = vrcp.f32 %v740_v63  ;;  %v4117_v61 = vpop.eup %4116  ;;  %v5102_v63 = vld [vmem:[%s6154_s1 + $0xe4] ss:$16 sps:$4 sm:$0xff]  }
 0x327   :  { %v4119_v34 = vpop.eup %4118  ;;  %v753_v56 = vadd.f32 1.0, %v4117_v61  ;;  %v5120_v61 = vld [vmem:[%s6154_s1 + $0xe8] ss:$16 sps:$4 sm:$0xff]  }
 0x328   :  { %v754_v3 = vadd.f32 1.0, %v4119_v34  ;;  %v5126_v34 = vld [vmem:[%s6154_s1 + $0x4] ss:$16 sps:$4 sm:$0xff]  }
 0x329   :  { %4128 = vrcp.f32 %v753_v56 }
 0x32a   :  { %4130 = vrcp.f32 %v754_v3 }
 0x32d   :  { %v4121_v59 = vpop.eup %4120 }
 0x32e   :  { %v4123_v35 = vpop.eup %4122  ;;  %v767_v58 = vmul.f32 %v4121_v59, %v4113_v60  ;;  %v5108_v60 = vld [vmem:[%s6154_s1 + $0xec] ss:$16 sps:$4 sm:$0xff]  }
 0x32f   :  { %v4125_v36 = vpop.eup %4124  ;;  %v768_v37 = vmul.f32 %v4123_v35, %v4115_v33  ;;  %v5114_v33 = vld [vmem:[%s6154_s1 + $0xe0] ss:$16 sps:$4 sm:$0xff]   ;;  %v5132_v59 = vld [vmem:[%s6154_s1 + $0xc] ss:$16 sps:$4 sm:$0xff]  }
 0x330   :  { %v4127_v4 = vpop.eup %4126  ;;  %v765_v5 = vmul.f32 %v4125_v36, %v761_v52  ;;  %v788_v35 = vld [vmem:[%s6153_s0] sm:$0x22] }
 0x331   :  { %v766_v7 = vmul.f32 %v4127_v4, %v762_v1  ;;  %v792_v52 = vunpack.c.l.bf16 %v788_v35  ;;  %v793_v1 = vunpack.c.h.bf16 %v788_v35 }
 0x332   :  { %v4933_v8 = vadd.f32 %v767_v58, %v765_v5  ;;  %v790_v58 = vld [vmem:[%s6153_s0 + $0x10] sm:$0x22] }
 0x333   :  { %v4935_v9 = vadd.f32 %v768_v37, %v766_v7  ;;  %v4129_v51 = vpop.eup %4128  ;;  %v796_v56 = vunpack.c.l.bf16 %v790_v58  ;;  %v797_v3 = vunpack.c.h.bf16 %v790_v58 }
 0x334   :  { %4132 = vtanh.f32 %v4933_v8  ;;  %v4131_v10 = vpop.eup %4130 }
 0x335   :  { %4134 = vtanh.f32 %v4935_v9 }
 0x33e   :  { %v4133_v11 = vpop.eup %4132 }
 0x33f   :  { %v4135_v12 = vpop.eup %4134  ;;  %v773_v13 = vmul.f32 %v4133_v11, %v4129_v51 }
 0x340   :  { %v774_v50 = vmul.f32 %v4135_v12, %v4131_v10 }
 0x341   :  { %v775_v0 = vpack.c.bf16 %v773_v13, %v773_v13 }
 0x342   :  { %v776_v14 = vpack.c.bf16 %v774_v50, %v774_v50 }
 0x343   :  { %v779_v6 = vunpack.c.l.b16 %v775_v0 }
 0x344   :  { %v780_v15 = vunpack.c.l.b16 %v776_v14  ;;  %v789_v14 = vld [vmem:[%s6153_s0 + $0x8] sm:$0x22] }
 0x345   :  { %v781_v16 = vrot.slane %v779_v6, 6  ;;  %v800_v17 = vrot.slane %v779_v6, 2 }
 0x346   :  { %v782_v18 = vrot.slane %v780_v15, 5  ;;  %v801_v19 = vrot.slane %v780_v15, 1 }
 0x348   :  { %v784_v20 = vsel %vm783_vm2, %v782_v18, %v781_v16  ;;  %v802_v21 = vsel %vm405_vm0, %v801_v19, %v800_v17  ;;  %v791_v16 = vld [vmem:[%s6153_s0 + $0x18] sm:$0x22] }
 0x349   :  { %v785_v22 = vpack.c.b16 %v784_v20, %v784_v20  ;;  %v803_v23 = vpack.c.b16 %v802_v21, %v802_v21  ;;  %v799_v58 = vunpack.c.h.bf16 %v791_v16 }
 0x34b   :  { %787 = vst [vmem:[#allocation3] sm:$0x4] %v785_v22  ;;  %838 = vmatmul.mubr.bf16.vlgmr.msra.gmra.mrb[12].mxu0 %v803_v23  ;;  %879 = vmatmul.mubr.bf16.vlgmr.msra.gmra.mrb[12].mxu1 %v803_v23  ;;  %v795_v23 = vunpack.c.h.bf16 %v789_v14 }
 0x34c   :  { %1000 = vmatpush1.bf16.msra.mxu0 %v4944_v24  ;;  %1041 = vmatpush1.bf16.msra.mxu1 %v4950_v25 }
 0x34d   :  { %1001 = vmatprep.subr.bf16.mxu0 %v4956_v26  ;;  %1042 = vmatprep.subr.bf16.mxu1 %v4962_v27 }
 0x34e   :  { %1031 = vmatprep.mubr.bf16.mxu0 %v4514_v2  ;;  %1072 = vmatprep.mubr.bf16.mxu1 %v4514_v2 }
 0x350   :  { %1002 = vmatpush1.bf16.msra.mxu0 %v4970_v28  ;;  %1043 = vmatpush1.bf16.msra.mxu1 %v4976_v29 }
 0x351   :  { %1003 = vmatprep.subr.bf16.mxu0 %v4982_v30  ;;  %1044 = vmatprep.subr.bf16.mxu1 %v4988_v31 }
 0x354   :  { %1004 = vmatpush1.bf16.msra.mxu0 %v4994_v32  ;;  %1045 = vmatpush1.bf16.msra.mxu1 %v5000_v38 }
 0x355   :  { %1005 = vmatprep.subr.bf16.mxu0 %v5006_v39  ;;  %1046 = vmatprep.subr.bf16.mxu1 %v5012_v41 }
 0x358   :  { %1006 = vmatpush1.bf16.msra.mxu0 %v5018_v42  ;;  %1047 = vmatpush1.bf16.msra.mxu1 %v5024_v43 }
 0x359   :  { %1007 = vmatprep.subr.bf16.mxu0 %v5030_v40  ;;  %1048 = vmatprep.subr.bf16.mxu1 %v5036_v44 }
 0x35c   :  { %1008 = vmatpush1.bf16.msra.mxu0 %v5042_v45  ;;  %1049 = vmatpush1.bf16.msra.mxu1 %v5048_v46 }
 0x35d   :  { %1009 = vmatprep.subr.bf16.mxu0 %v5054_v48  ;;  %1050 = vmatprep.subr.bf16.mxu1 %v5060_v47 }
 0x360   :  { %1010 = vmatpush1.bf16.msra.mxu0 %v5066_v49  ;;  %1051 = vmatpush1.bf16.msra.mxu1 %v5072_v62 }
 0x361   :  { %1011 = vmatprep.subr.bf16.mxu0 %v5078_v54  ;;  %1052 = vmatprep.subr.bf16.mxu1 %v5084_v55 }
 0x364   :  { %1012 = vmatpush1.bf16.msra.mxu0 %v5090_v57  ;;  %1053 = vmatpush1.bf16.msra.mxu1 %v5096_v53 }
 0x365   :  { %1013 = vmatprep.subr.bf16.mxu0 %v5102_v63  ;;  %1054 = vmatprep.subr.bf16.mxu1 %v5108_v60 }
 0x368   :  { %1014 = vmatpush1.bf16.msra.mxu0 %v5114_v33  ;;  %1055 = vmatpush1.bf16.msra.mxu1 %v5120_v61 }
 0x369   :  { %1187 = vmatprep.subr.bf16.mxu0 %v5126_v34  ;;  %1228 = vmatprep.subr.bf16.mxu1 %v5132_v59 }
 0x41e   :  { %v839_v36 = vpop.f32.mrb[12].mxu0  ;;  %v880_v37 = vpop.f32.mrb[12].mxu1 }
 0x41f   :  { %v891_v4 = vrot.slane %v839_v36, 5  ;;  %v895_v5 = vrot.slane %v839_v36, 6  ;;  %v841_v7 = vpop.f32.mrb[13].mxu0  ;;  %v882_v51 = vpop.f32.mrb[13].mxu1  ;;  %v893_v36 = vrot.slane %v880_v37, 5 }
 0x420   :  { %v892_v10 = vrot.slane %v841_v7, 5  ;;  %v896_v11 = vrot.slane %v841_v7, 6  ;;  %v843_v12 = vpop.f32.mrb[14].mxu0  ;;  %v884_v13 = vpop.f32.mrb[14].mxu1  ;;  %v894_v35 = vrot.slane %v882_v51, 5 }
 0x421   :  { %v907_v50 = vadd.f32 %v891_v4, %v792_v52  ;;  %v911_v0 = vadd.f32 %v895_v5, %v796_v56  ;;  %v844_v6 = vpop.f32.mrb[15].mxu0  ;;  %v885_v15 = vpop.f32.mrb[15].mxu1  ;;  %v898_v52 = vrot.slane %v882_v51, 6  ;;  %v794_v56 = vunpack.c.l.bf16 %v789_v14 }
 0x422   :  { %v908_v17 = vadd.f32 %v892_v10, %v793_v1  ;;  %v912_v18 = vadd.f32 %v896_v11, %v797_v3  ;;  %v798_v4 = vunpack.c.l.bf16 %v791_v16  ;;  %v897_v5 = vrot.slane %v880_v37, 6 }
 0x423   :  { %v3680_v19 = vmul.f32 -1.442695, %v907_v50  ;;  %v3681_v20 = vmul.f32 -1.442695, %v911_v0  ;;  %v910_v7 = vadd.f32 %v894_v35, %v795_v23  ;;  %v914_v12 = vadd.f32 %v898_v52, %v799_v58 }
 0x424   :  { %v3682_v21 = vmul.f32 -1.442695, %v908_v17  ;;  %v3683_v22 = vmul.f32 -1.442695, %v912_v18  ;;  %v909_v1 = vadd.f32 %v893_v36, %v794_v56  ;;  %v913_v3 = vadd.f32 %v897_v5, %v798_v4 }
 0x425   :  { %4136 = vpow2.f32 %v3680_v19  ;;  %v3684_v10 = vmul.f32 -1.442695, %v910_v7  ;;  %v3685_v11 = vmul.f32 -1.442695, %v914_v12  ;;  %v955_v23 = vrot.slane %v4933_v8, 7 }
 0x426   :  { %4138 = vpow2.f32 %v3681_v20  ;;  %v956_v56 = vrot.slane %v4935_v9, 7 }
 0x427   :  { %4140 = vpow2.f32 %v3682_v21 }
 0x428   :  { %4142 = vpow2.f32 %v3683_v22 }
 0x429   :  { %4144 = vtanh.f32 %v909_v1 }
 0x42a   :  { %4146 = vtanh.f32 %v913_v3 }
 0x42b   :  { %4148 = vpow2.f32 %v3684_v10 }
 0x42c   :  { %4150 = vpow2.f32 %v3685_v11 }
 0x42f   :  { %v4137_v13 = vpop.eup %4136 }
 0x430   :  { %v4139_v50 = vpop.eup %4138  ;;  %v921_v0 = vadd.f32 1.0, %v4137_v13 }
 0x431   :  { %v4141_v51 = vpop.eup %4140  ;;  %v922_v6 = vadd.f32 1.0, %v4139_v50 }
 0x432   :  { %v4143_v14 = vpop.eup %4142  ;;  %4152 = vrcp.f32 %v921_v0  ;;  %v933_v37 = vadd.f32 1.0, %v4141_v51 }
 0x433   :  { %4154 = vrcp.f32 %v922_v6  ;;  %v934_v15 = vadd.f32 1.0, %v4143_v14  ;;  %v4145_v16 = vpop.eup %4144 }
 0x434   :  { %4156 = vrcp.f32 %v933_v37  ;;  %v4147_v17 = vpop.eup %4146 }
 0x435   :  { %4158 = vrcp.f32 %v934_v15  ;;  %v4149_v18 = vpop.eup %4148 }
 0x436   :  { %v4151_v19 = vpop.eup %4150  ;;  %v947_v35 = vadd.f32 1.0, %v4149_v18 }
 0x437   :  { %v948_v36 = vadd.f32 1.0, %v4151_v19 }
 0x438   :  { %4160 = vrcp.f32 %v947_v35 }
 0x439   :  { %4162 = vrcp.f32 %v948_v36 }
 0x43c   :  { %v4153_v20 = vpop.eup %4152 }
 0x43d   :  { %v4155_v21 = vpop.eup %4154  ;;  %v961_v22 = vmul.f32 %v4153_v20, %v4145_v16 }
 0x43e   :  { %v4157_v58 = vpop.eup %4156  ;;  %v962_v52 = vmul.f32 %v4155_v21, %v4147_v17  ;;  %v982_v21 = vld [vmem:[%s6153_s0] sm:$0x44] }
 0x43f   :  { %v4159_v4 = vpop.eup %4158  ;;  %v959_v5 = vmul.f32 %v4157_v58, %v955_v23  ;;  %v986_v23 = vunpack.c.l.bf16 %v982_v21 }
 0x440   :  { %v960_v7 = vmul.f32 %v4159_v4, %v956_v56  ;;  %v987_v56 = vunpack.c.h.bf16 %v982_v21 }
 0x441   :  { %v5149_v12 = vadd.f32 %v961_v22, %v959_v5  ;;  %v984_v22 = vld [vmem:[%s6153_s0 + $0x10] sm:$0x44] }
 0x442   :  { %v5151_v1 = vadd.f32 %v962_v52, %v960_v7  ;;  %v4161_v8 = vpop.eup %4160  ;;  %v990_v35 = vunpack.c.l.bf16 %v984_v22  ;;  %v991_v36 = vunpack.c.h.bf16 %v984_v22 }
 0x443   :  { %4164 = vtanh.f32 %v5149_v12  ;;  %v4163_v3 = vpop.eup %4162 }
 0x444   :  { %4166 = vtanh.f32 %v5151_v1 }
 0x44d   :  { %v4165_v10 = vpop.eup %4164 }
 0x44e   :  { %v4167_v11 = vpop.eup %4166  ;;  %v967_v13 = vmul.f32 %v4165_v10, %v4161_v8 }
 0x44f   :  { %v968_v9 = vmul.f32 %v4167_v11, %v4163_v3 }
 0x450   :  { %v969_v50 = vpack.c.bf16 %v967_v13, %v967_v13 }
 0x451   :  { %v970_v0 = vpack.c.bf16 %v968_v9, %v968_v9 }
 0x452   :  { %v973_v51 = vunpack.c.l.b16 %v969_v50 }
 0x453   :  { %v974_v6 = vunpack.c.l.b16 %v970_v0  ;;  %v983_v0 = vld [vmem:[%s6153_s0 + $0x8] sm:$0x44] }
 0x454   :  { %v975_v14 = vrot.slane %v973_v51, 5  ;;  %v994_v37 = vrot.slane %v973_v51, 3 }
 0x455   :  { %v976_v15 = vrot.slane %v974_v6, 4  ;;  %v995_v16 = vrot.slane %v974_v6, 2 }
 0x457   :  { %v978_v17 = vsel %vm977_vm3, %v976_v15, %v975_v14  ;;  %v996_v18 = vsel %vm405_vm0, %v995_v16, %v994_v37  ;;  %v985_v14 = vld [vmem:[%s6153_s0 + $0x18] sm:$0x44] }
 0x458   :  { %v979_v19 = vpack.c.b16 %v978_v17, %v978_v17  ;;  %v997_v20 = vpack.c.b16 %v996_v18, %v996_v18  ;;  %v993_v22 = vunpack.c.h.bf16 %v985_v14 }
 0x45a   :  { %981 = vst [vmem:[#allocation3] sm:$0x8] %v979_v19  ;;  %1032 = vmatmul.mubr.bf16.vlgmr.msra.gmra.mrb[16].mxu0 %v997_v20  ;;  %1073 = vmatmul.mubr.bf16.vlgmr.msra.gmra.mrb[16].mxu1 %v997_v20  ;;  %v989_v20 = vunpack.c.h.bf16 %v983_v0 }
 0x45b   :  { %1188 = vmatpush1.bf16.msra.mxu0 %v4944_v24  ;;  %1229 = vmatpush1.bf16.msra.mxu1 %v4950_v25 }
 0x45c   :  { %1189 = vmatprep.subr.bf16.mxu0 %v4956_v26  ;;  %1230 = vmatprep.subr.bf16.mxu1 %v4962_v27 }
 0x45d   :  { %1219 = vmatprep.mubr.bf16.mxu0 %v4514_v2  ;;  %1260 = vmatprep.mubr.bf16.mxu1 %v4514_v2 }
 0x45f   :  { %1190 = vmatpush1.bf16.msra.mxu0 %v4970_v28  ;;  %1231 = vmatpush1.bf16.msra.mxu1 %v4976_v29 }
 0x460   :  { %1191 = vmatprep.subr.bf16.mxu0 %v4982_v30  ;;  %1232 = vmatprep.subr.bf16.mxu1 %v4988_v31 }
 0x463   :  { %1192 = vmatpush1.bf16.msra.mxu0 %v4994_v32  ;;  %1233 = vmatpush1.bf16.msra.mxu1 %v5000_v38 }
 0x464   :  { %1193 = vmatprep.subr.bf16.mxu0 %v5006_v39  ;;  %1234 = vmatprep.subr.bf16.mxu1 %v5012_v41 }
 0x467   :  { %1194 = vmatpush1.bf16.msra.mxu0 %v5018_v42  ;;  %1235 = vmatpush1.bf16.msra.mxu1 %v5024_v43 }
 0x468   :  { %1195 = vmatprep.subr.bf16.mxu0 %v5030_v40  ;;  %1236 = vmatprep.subr.bf16.mxu1 %v5036_v44 }
 0x46b   :  { %1196 = vmatpush1.bf16.msra.mxu0 %v5042_v45  ;;  %1237 = vmatpush1.bf16.msra.mxu1 %v5048_v46 }
 0x46c   :  { %1197 = vmatprep.subr.bf16.mxu0 %v5054_v48  ;;  %1238 = vmatprep.subr.bf16.mxu1 %v5060_v47 }
 0x46f   :  { %1198 = vmatpush1.bf16.msra.mxu0 %v5066_v49  ;;  %1239 = vmatpush1.bf16.msra.mxu1 %v5072_v62 }
 0x470   :  { %1199 = vmatprep.subr.bf16.mxu0 %v5078_v54  ;;  %1240 = vmatprep.subr.bf16.mxu1 %v5084_v55 }
 0x473   :  { %1200 = vmatpush1.bf16.msra.mxu0 %v5090_v57  ;;  %1241 = vmatpush1.bf16.msra.mxu1 %v5096_v53 }
 0x474   :  { %1201 = vmatprep.subr.bf16.mxu0 %v5102_v63  ;;  %1242 = vmatprep.subr.bf16.mxu1 %v5108_v60 }
 0x477   :  { %1202 = vmatpush1.bf16.msra.mxu0 %v5114_v33  ;;  %1243 = vmatpush1.bf16.msra.mxu1 %v5120_v61 }
 0x478   :  { %1380 = vmatprep.subr.bf16.mxu0 %v5126_v34  ;;  %1421 = vmatprep.subr.bf16.mxu1 %v5132_v59 }
 0x52d   :  { %v1033_v58 = vpop.f32.mrb[16].mxu0  ;;  %v1074_v52 = vpop.f32.mrb[16].mxu1 }
 0x52e   :  { %v1085_v4 = vrot.slane %v1033_v58, 4  ;;  %v1089_v5 = vrot.slane %v1033_v58, 5  ;;  %v1035_v7 = vpop.f32.mrb[17].mxu0  ;;  %v1076_v8 = vpop.f32.mrb[17].mxu1  ;;  %v1087_v58 = vrot.slane %v1074_v52, 4 }
 0x52f   :  { %v1086_v3 = vrot.slane %v1035_v7, 4  ;;  %v1090_v10 = vrot.slane %v1035_v7, 5  ;;  %v1037_v11 = vpop.f32.mrb[18].mxu0  ;;  %v1078_v13 = vpop.f32.mrb[18].mxu1  ;;  %v1088_v21 = vrot.slane %v1076_v8, 4 }
 0x530   :  { %v1101_v9 = vadd.f32 %v1085_v4, %v986_v23  ;;  %v1105_v50 = vadd.f32 %v1089_v5, %v990_v35  ;;  %v1038_v51 = vpop.f32.mrb[19].mxu0  ;;  %v1079_v6 = vpop.f32.mrb[19].mxu1  ;;  %v1092_v23 = vrot.slane %v1076_v8, 5  ;;  %v988_v35 = vunpack.c.l.bf16 %v983_v0 }
 0x531   :  { %v1102_v37 = vadd.f32 %v1086_v3, %v987_v56  ;;  %v1106_v15 = vadd.f32 %v1090_v10, %v991_v36  ;;  %v992_v4 = vunpack.c.l.bf16 %v985_v14  ;;  %v1091_v5 = vrot.slane %v1074_v52, 5 }
 0x532   :  { %v3686_v16 = vmul.f32 -1.442695, %v1101_v9  ;;  %v3687_v17 = vmul.f32 -1.442695, %v1105_v50  ;;  %v1104_v7 = vadd.f32 %v1088_v21, %v989_v20  ;;  %v1108_v11 = vadd.f32 %v1092_v23, %v993_v22 }
 0x533   :  { %v3688_v18 = vmul.f32 -1.442695, %v1102_v37  ;;  %v3689_v19 = vmul.f32 -1.442695, %v1106_v15  ;;  %v1103_v56 = vadd.f32 %v1087_v58, %v988_v35  ;;  %v1107_v36 = vadd.f32 %v1091_v5, %v992_v4 }
 0x534   :  { %4168 = vpow2.f32 %v3686_v16  ;;  %v3690_v3 = vmul.f32 -1.442695, %v1104_v7  ;;  %v3691_v10 = vmul.f32 -1.442695, %v1108_v11  ;;  %v1149_v20 = vrot.slane %v5149_v12, 7 }
 0x535   :  { %4170 = vpow2.f32 %v3687_v17  ;;  %v1150_v35 = vrot.slane %v5151_v1, 7 }
 0x536   :  { %4172 = vpow2.f32 %v3688_v18 }
 0x537   :  { %4174 = vpow2.f32 %v3689_v19 }
 0x538   :  { %4176 = vtanh.f32 %v1103_v56 }
 0x539   :  { %4178 = vtanh.f32 %v1107_v36 }
 0x53a   :  { %4180 = vpow2.f32 %v3690_v3 }
 0x53b   :  { %4182 = vpow2.f32 %v3691_v10 }
 0x53e   :  { %v4169_v13 = vpop.eup %4168 }
 0x53f   :  { %v4171_v9 = vpop.eup %4170  ;;  %v1115_v50 = vadd.f32 1.0, %v4169_v13 }
 0x540   :  { %v4173_v8 = vpop.eup %4172  ;;  %v1116_v51 = vadd.f32 1.0, %v4171_v9 }
 0x541   :  { %v4175_v0 = vpop.eup %4174  ;;  %4184 = vrcp.f32 %v1115_v50  ;;  %v1127_v52 = vadd.f32 1.0, %v4173_v8 }
 0x542   :  { %4186 = vrcp.f32 %v1116_v51  ;;  %v1128_v6 = vadd.f32 1.0, %v4175_v0  ;;  %v4177_v14 = vpop.eup %4176 }
 0x543   :  { %4188 = vrcp.f32 %v1127_v52  ;;  %v4179_v37 = vpop.eup %4178 }
 0x544   :  { %4190 = vrcp.f32 %v1128_v6  ;;  %v4181_v15 = vpop.eup %4180 }
 0x545   :  { %v4183_v16 = vpop.eup %4182  ;;  %v1141_v21 = vadd.f32 1.0, %v4181_v15  ;;  %v1177_v15 = vld [vmem:[%s6153_s0 + $0x10] sm:$0x44] }
 0x546   :  { %v1142_v58 = vadd.f32 1.0, %v4183_v16 }
 0x547   :  { %4192 = vrcp.f32 %v1141_v21  ;;  %v1184_v21 = vunpack.c.h.bf16 %v1177_v15 }
 0x548   :  { %4194 = vrcp.f32 %v1142_v58 }
 0x54b   :  { %v4185_v17 = vpop.eup %4184 }
 0x54c   :  { %v4187_v18 = vpop.eup %4186  ;;  %v1155_v19 = vmul.f32 %v4185_v17, %v4177_v14  ;;  %v1183_v17 = vunpack.c.l.bf16 %v1177_v15 }
 0x54d   :  { %v4189_v22 = vpop.eup %4188  ;;  %v1156_v23 = vmul.f32 %v4187_v18, %v4179_v37  ;;  %v1175_v37 = vld [vmem:[%s6153_s0] sm:$0x44] }
 0x54e   :  { %v4191_v4 = vpop.eup %4190  ;;  %v1153_v5 = vmul.f32 %v4189_v22, %v1149_v20  ;;  %v1179_v16 = vunpack.c.l.bf16 %v1175_v37  ;;  %v1180_v20 = vunpack.c.h.bf16 %v1175_v37 }
 0x54f   :  { %v1154_v7 = vmul.f32 %v4191_v4, %v1150_v35 }
 0x550   :  { %v5205_v11 = vadd.f32 %v1155_v19, %v1153_v5 }
 0x551   :  { %v5207_v56 = vadd.f32 %v1156_v23, %v1154_v7  ;;  %v4193_v12 = vpop.eup %4192 }
 0x552   :  { %4196 = vtanh.f32 %v5205_v11  ;;  %v4195_v36 = vpop.eup %4194 }
 0x553   :  { %4198 = vtanh.f32 %v5207_v56 }
 0x55c   :  { %v4197_v3 = vpop.eup %4196 }
 0x55d   :  { %v4199_v10 = vpop.eup %4198  ;;  %v1161_v13 = vmul.f32 %v4197_v3, %v4193_v12 }
 0x55e   :  { %v1162_v1 = vmul.f32 %v4199_v10, %v4195_v36  ;;  %v1176_v36 = vld [vmem:[%s6153_s0 + $0x8] sm:$0x44] }
 0x55f   :  { %v1163_v9 = vpack.c.bf16 %v1161_v13, %v1161_v13  ;;  %v1178_v13 = vld [vmem:[%s6153_s0 + $0x18] sm:$0x44]  ;;  %v1181_v15 = vunpack.c.l.bf16 %v1176_v36 }
 0x560   :  { %v1164_v50 = vpack.c.bf16 %v1162_v1, %v1162_v1 }
 0x561   :  { %v1167_v8 = vunpack.c.l.b16 %v1163_v9 }
 0x562   :  { %v1168_v51 = vunpack.c.l.b16 %v1164_v50 }
 0x563   :  { %v1169_v0 = vrot.slane %v1167_v8, 4 }
 0x564   :  { %v1170_v52 = vrot.slane %v1168_v51, 3 }
 0x566   :  { %v1171_v6 = vsel %vm405_vm0, %v1170_v52, %v1169_v0  ;;  %v1182_v52 = vunpack.c.h.bf16 %v1176_v36 }
 0x567   :  { %v1172_v14 = vpack.c.b16 %v1171_v6, %v1171_v6 }
 0x569   :  { %1174 = vst [vmem:[#allocation3] sm:$0x10] %v1172_v14  ;;  %1220 = vmatmul.mubr.bf16.vlgmr.msra.gmra.mrb[20].mxu0 %v1172_v14  ;;  %1261 = vmatmul.mubr.bf16.vlgmr.msra.gmra.mrb[20].mxu1 %v1172_v14  ;;  %v1186_v14 = vunpack.c.h.bf16 %v1178_v13 }
 0x56a   :  { %1381 = vmatpush1.bf16.msra.mxu0 %v4944_v24  ;;  %1422 = vmatpush1.bf16.msra.mxu1 %v4950_v25 }
 0x56b   :  { %1382 = vmatprep.subr.bf16.mxu0 %v4956_v26  ;;  %1423 = vmatprep.subr.bf16.mxu1 %v4962_v27 }
 0x56c   :  { %1412 = vmatprep.mubr.bf16.mxu0 %v4514_v2  ;;  %1453 = vmatprep.mubr.bf16.mxu1 %v4514_v2 }
 0x56e   :  { %1383 = vmatpush1.bf16.msra.mxu0 %v4970_v28  ;;  %1424 = vmatpush1.bf16.msra.mxu1 %v4976_v29 }
 0x56f   :  { %1384 = vmatprep.subr.bf16.mxu0 %v4982_v30  ;;  %1425 = vmatprep.subr.bf16.mxu1 %v4988_v31 }
 0x572   :  { %1385 = vmatpush1.bf16.msra.mxu0 %v4994_v32  ;;  %1426 = vmatpush1.bf16.msra.mxu1 %v5000_v38 }
 0x573   :  { %1386 = vmatprep.subr.bf16.mxu0 %v5006_v39  ;;  %1427 = vmatprep.subr.bf16.mxu1 %v5012_v41 }
 0x576   :  { %1387 = vmatpush1.bf16.msra.mxu0 %v5018_v42  ;;  %1428 = vmatpush1.bf16.msra.mxu1 %v5024_v43 }
 0x577   :  { %1388 = vmatprep.subr.bf16.mxu0 %v5030_v40  ;;  %1429 = vmatprep.subr.bf16.mxu1 %v5036_v44 }
 0x57a   :  { %1389 = vmatpush1.bf16.msra.mxu0 %v5042_v45  ;;  %1430 = vmatpush1.bf16.msra.mxu1 %v5048_v46 }
 0x57b   :  { %1390 = vmatprep.subr.bf16.mxu0 %v5054_v48  ;;  %1431 = vmatprep.subr.bf16.mxu1 %v5060_v47 }
 0x57e   :  { %1391 = vmatpush1.bf16.msra.mxu0 %v5066_v49  ;;  %1432 = vmatpush1.bf16.msra.mxu1 %v5072_v62 }
 0x57f   :  { %1392 = vmatprep.subr.bf16.mxu0 %v5078_v54  ;;  %1433 = vmatprep.subr.bf16.mxu1 %v5084_v55 }
 0x582   :  { %1393 = vmatpush1.bf16.msra.mxu0 %v5090_v57  ;;  %1434 = vmatpush1.bf16.msra.mxu1 %v5096_v53 }
 0x583   :  { %1394 = vmatprep.subr.bf16.mxu0 %v5102_v63  ;;  %1435 = vmatprep.subr.bf16.mxu1 %v5108_v60 }
 0x586   :  { %1395 = vmatpush1.bf16.msra.mxu0 %v5114_v33  ;;  %1436 = vmatpush1.bf16.msra.mxu1 %v5120_v61 }
 0x587   :  { %1573 = vmatprep.subr.bf16.mxu0 %v5126_v34  ;;  %1614 = vmatprep.subr.bf16.mxu1 %v5132_v59 }
 0x63c   :  { %v1221_v18 = vpop.f32.mrb[20].mxu0  ;;  %v1262_v19 = vpop.f32.mrb[20].mxu1 }
 0x63d   :  { %v1273_v22 = vrot.slane %v1221_v18, 3  ;;  %v1277_v23 = vrot.slane %v1221_v18, 4  ;;  %v1223_v35 = vpop.f32.mrb[21].mxu0  ;;  %v1264_v34 = vpop.f32.mrb[21].mxu1  ;;  %v1279_v18 = vrot.slane %v1262_v19, 4 }
 0x63e   :  { %v1274_v58 = vrot.slane %v1223_v35, 3  ;;  %v1278_v59 = vrot.slane %v1223_v35, 4  ;;  %v1225_v4 = vpop.f32.mrb[22].mxu0  ;;  %v1266_v5 = vpop.f32.mrb[22].mxu1  ;;  %v1276_v6 = vrot.slane %v1264_v34, 3  ;;  %v1280_v37 = vrot.slane %v1264_v34, 4 }
 0x63f   :  { %v1289_v7 = vadd.f32 %v1273_v22, %v1179_v16  ;;  %v1293_v12 = vadd.f32 %v1277_v23, %v1183_v17  ;;  %v1226_v3 = vpop.f32.mrb[23].mxu0  ;;  %v1267_v10 = vpop.f32.mrb[23].mxu1  ;;  %v1275_v16 = vrot.slane %v1262_v19, 3  ;;  %v1185_v17 = vunpack.c.l.bf16 %v1178_v13 }
 0x640   :  { %v1290_v1 = vadd.f32 %v1274_v58, %v1180_v20  ;;  %v1294_v9 = vadd.f32 %v1278_v59, %v1184_v21  ;;  %v1292_v22 = vadd.f32 %v1276_v6, %v1182_v52  ;;  %v1296_v23 = vadd.f32 %v1280_v37, %v1186_v14 }
 0x641   :  { %v3692_v50 = vmul.f32 -1.442695, %v1289_v7  ;;  %v3693_v8 = vmul.f32 -1.442695, %v1293_v12  ;;  %v1291_v20 = vadd.f32 %v1275_v16, %v1181_v15  ;;  %v1295_v21 = vadd.f32 %v1279_v18, %v1185_v17 }
 0x642   :  { %v3694_v51 = vmul.f32 -1.442695, %v1290_v1  ;;  %v3695_v0 = vmul.f32 -1.442695, %v1294_v9  ;;  %v3696_v35 = vmul.f32 -1.442695, %v1292_v22 }
 0x643   :  { %4200 = vpow2.f32 %v3692_v50  ;;  %v3697_v58 = vmul.f32 -1.442695, %v1296_v23  ;;  %v1338_v14 = vrot.slane %v5207_v56, 7 }
 0x644   :  { %4202 = vpow2.f32 %v3693_v8 }
 0x645   :  { %4204 = vpow2.f32 %v3694_v51  ;;  %v1337_v51 = vrot.slane %v5205_v11, 7 }
 0x646   :  { %4206 = vpow2.f32 %v3695_v0 }
 0x647   :  { %4208 = vtanh.f32 %v1291_v20 }
 0x648   :  { %4210 = vtanh.f32 %v1295_v21 }
 0x649   :  { %4212 = vpow2.f32 %v3696_v35 }
 0x64a   :  { %4214 = vpow2.f32 %v3697_v58 }
 0x64d   :  { %v4201_v59 = vpop.eup %4200 }
 0x64e   :  { %v4203_v4 = vpop.eup %4202  ;;  %v1303_v5 = vadd.f32 1.0, %v4201_v59 }
 0x64f   :  { %v4205_v34 = vpop.eup %4204  ;;  %v1304_v7 = vadd.f32 1.0, %v4203_v4 }
 0x650   :  { %v4207_v12 = vpop.eup %4206  ;;  %4216 = vrcp.f32 %v1303_v5  ;;  %v1315_v19 = vadd.f32 1.0, %v4205_v34 }
 0x651   :  { %4218 = vrcp.f32 %v1304_v7  ;;  %v1316_v36 = vadd.f32 1.0, %v4207_v12  ;;  %v4209_v3 = vpop.eup %4208 }
 0x652   :  { %4220 = vrcp.f32 %v1315_v19  ;;  %v4211_v10 = vpop.eup %4210 }
 0x653   :  { %4222 = vrcp.f32 %v1316_v36  ;;  %v4213_v13 = vpop.eup %4212 }
 0x654   :  { %v4215_v1 = vpop.eup %4214  ;;  %v1329_v0 = vadd.f32 1.0, %v4213_v13 }
 0x655   :  { %v1330_v37 = vadd.f32 1.0, %v4215_v1 }
 0x656   :  { %4224 = vrcp.f32 %v1329_v0 }
 0x657   :  { %4226 = vrcp.f32 %v1330_v37 }
 0x65a   :  { %v4217_v9 = vpop.eup %4216 }
 0x65b   :  { %v4219_v50 = vpop.eup %4218  ;;  %v1343_v8 = vmul.f32 %v4217_v9, %v4209_v3 }
 0x65c   :  { %v4221_v52 = vpop.eup %4220  ;;  %v1344_v6 = vmul.f32 %v4219_v50, %v4211_v10 }
 0x65d   :  { %v4223_v15 = vpop.eup %4222  ;;  %v1341_v16 = vmul.f32 %v4221_v52, %v1337_v51 }
 0x65e   :  { %v1342_v17 = vmul.f32 %v4223_v15, %v1338_v14 }
 0x65f   :  { %v5260_v18 = vadd.f32 %v1343_v8, %v1341_v16 }
 0x660   :  { %v5262_v22 = vadd.f32 %v1344_v6, %v1342_v17  ;;  %v4225_v11 = vpop.eup %4224 }
 0x661   :  { %4228 = vtanh.f32 %v5260_v18  ;;  %v4227_v23 = vpop.eup %4226 }
 0x662   :  { %4230 = vtanh.f32 %v5262_v22 }
 0x66b   :  { %v4229_v20 = vpop.eup %4228 }
 0x66c   :  { %v4231_v21 = vpop.eup %4230  ;;  %v1349_v35 = vmul.f32 %v4229_v20, %v4225_v11 }
 0x66d   :  { %v1350_v56 = vmul.f32 %v4231_v21, %v4227_v23 }
 0x66e   :  { %v1351_v58 = vpack.c.bf16 %v1349_v35, %v1349_v35 }
 0x66f   :  { %v1352_v59 = vpack.c.bf16 %v1350_v56, %v1350_v56 }
 0x670   :  { %v1355_v4 = vunpack.c.l.b16 %v1351_v58 }
 0x671   :  { %v1356_v5 = vunpack.c.l.b16 %v1352_v59 }
 0x672   :  { %v1357_v34 = vrot.slane %v1355_v4, 3  ;;  %v1375_v7 = vrot.slane %v1355_v4, 5 }
 0x673   :  { %v1358_v12 = vrot.slane %v1356_v5, 2  ;;  %v1376_v19 = vrot.slane %v1356_v5, 4 }
 0x675   :  { %v1359_v36 = vsel %vm590_vm1, %v1358_v12, %v1357_v34  ;;  %v1377_v3 = vsel %vm405_vm0, %v1376_v19, %v1375_v7 }
 0x676   :  { %v1360_v10 = vpack.c.b16 %v1359_v36, %v1359_v36  ;;  %v1378_v13 = vpack.c.b16 %v1377_v3, %v1377_v3  ;;  %v1530_v36 = vrot.slane %v5260_v18, 7 }
 0x678   :  { %1362 = vst [vmem:[#allocation3] sm:$0x20] %v1360_v10  ;;  %1413 = vmatmul.mubr.bf16.vlgmr.msra.gmra.mrb[24].mxu0 %v1378_v13  ;;  %1454 = vmatmul.mubr.bf16.vlgmr.msra.gmra.mrb[24].mxu1 %v1378_v13 }
 0x679   :  { %1574 = vmatpush1.bf16.msra.mxu0 %v4944_v24  ;;  %1615 = vmatpush1.bf16.msra.mxu1 %v4950_v25  ;;  %v1363_v24 = vld [vmem:[%s6153_s0] sm:$0x88]  ;;  %v1365_v25 = vld [vmem:[%s6153_s0 + $0x10] sm:$0x88] }
 0x67a   :  { %1575 = vmatprep.subr.bf16.mxu0 %v4956_v26  ;;  %1616 = vmatprep.subr.bf16.mxu1 %v4962_v27  ;;  %v1367_v26 = vunpack.c.l.bf16 %v1363_v24  ;;  %v1371_v27 = vunpack.c.l.bf16 %v1365_v25 }
 0x67b   :  { %1605 = vmatprep.mubr.bf16.mxu0 %v4514_v2  ;;  %1646 = vmatprep.mubr.bf16.mxu1 %v4514_v2 }
 0x67d   :  { %1576 = vmatpush1.bf16.msra.mxu0 %v4970_v28  ;;  %1617 = vmatpush1.bf16.msra.mxu1 %v4976_v29 }
 0x67e   :  { %1577 = vmatprep.subr.bf16.mxu0 %v4982_v30  ;;  %1618 = vmatprep.subr.bf16.mxu1 %v4988_v31  ;;  %v1368_v30 = vunpack.c.h.bf16 %v1363_v24  ;;  %v1372_v31 = vunpack.c.h.bf16 %v1365_v25  ;;  %v1531_v24 = vrot.slane %v5262_v22, 7 }
 0x681   :  { %1578 = vmatpush1.bf16.msra.mxu0 %v4994_v32  ;;  %1619 = vmatpush1.bf16.msra.mxu1 %v5000_v38 }
 0x682   :  { %1579 = vmatprep.subr.bf16.mxu0 %v5006_v39  ;;  %1620 = vmatprep.subr.bf16.mxu1 %v5012_v41 }
 0x685   :  { %1580 = vmatpush1.bf16.msra.mxu0 %v5018_v42  ;;  %1621 = vmatpush1.bf16.msra.mxu1 %v5024_v43 }
 0x686   :  { %1581 = vmatprep.subr.bf16.mxu0 %v5030_v40  ;;  %1622 = vmatprep.subr.bf16.mxu1 %v5036_v44 }
 0x689   :  { %1582 = vmatpush1.bf16.msra.mxu0 %v5042_v45  ;;  %1623 = vmatpush1.bf16.msra.mxu1 %v5048_v46 }
 0x68a   :  { %1583 = vmatprep.subr.bf16.mxu0 %v5054_v48  ;;  %1624 = vmatprep.subr.bf16.mxu1 %v5060_v47  ;;  %v1364_v48 = vld [vmem:[%s6153_s0 + $0x8] sm:$0x88] }
 0x68b   :  { %v1369_v50 = vunpack.c.l.bf16 %v1364_v48 }
 0x68d   :  { %1584 = vmatpush1.bf16.msra.mxu0 %v5066_v49  ;;  %1625 = vmatpush1.bf16.msra.mxu1 %v5072_v62  ;;  %v1366_v62 = vld [vmem:[%s6153_s0 + $0x18] sm:$0x88] }
 0x68e   :  { %1585 = vmatprep.subr.bf16.mxu0 %v5078_v54  ;;  %1626 = vmatprep.subr.bf16.mxu1 %v5084_v55  ;;  %v1374_v1 = vunpack.c.h.bf16 %v1366_v62  ;;  %v1373_v51 = vunpack.c.l.bf16 %v1366_v62 }
 0x691   :  { %1586 = vmatpush1.bf16.msra.mxu0 %v5090_v57  ;;  %1627 = vmatpush1.bf16.msra.mxu1 %v5096_v53 }
 0x692   :  { %1587 = vmatprep.subr.bf16.mxu0 %v5102_v63  ;;  %1628 = vmatprep.subr.bf16.mxu1 %v5108_v60 }
 0x695   :  { %1588 = vmatpush1.bf16.msra.mxu0 %v5114_v33  ;;  %1629 = vmatpush1.bf16.msra.mxu1 %v5120_v61  ;;  %v1370_v33 = vunpack.c.h.bf16 %v1364_v48 }
 0x74b   :  { %v1414_v28 = vpop.f32.mrb[24].mxu0  ;;  %v1455_v29 = vpop.f32.mrb[24].mxu1 }
 0x74c   :  { %v1466_v32 = vrot.slane %v1414_v28, 2  ;;  %v1470_v38 = vrot.slane %v1414_v28, 3  ;;  %v1416_v39 = vpop.f32.mrb[25].mxu0  ;;  %v1457_v41 = vpop.f32.mrb[25].mxu1  ;;  %v1468_v8 = vrot.slane %v1455_v29, 2  ;;  %v1472_v0 = vrot.slane %v1455_v29, 3 }
 0x74d   :  { %v1467_v42 = vrot.slane %v1416_v39, 2  ;;  %v1471_v43 = vrot.slane %v1416_v39, 3  ;;  %v1418_v40 = vpop.f32.mrb[26].mxu0  ;;  %v1459_v44 = vpop.f32.mrb[26].mxu1  ;;  %v1469_v61 = vrot.slane %v1457_v41, 2  ;;  %v1473_v9 = vrot.slane %v1457_v41, 3 }
 0x74e   :  { %v1482_v45 = vadd.f32 %v1466_v32, %v1367_v26  ;;  %v1486_v46 = vadd.f32 %v1470_v38, %v1371_v27  ;;  %v1419_v47 = vpop.f32.mrb[27].mxu0  ;;  %v1460_v49 = vpop.f32.mrb[27].mxu1  ;;  %v1484_v14 = vadd.f32 %v1468_v8, %v1369_v50  ;;  %v1488_v37 = vadd.f32 %v1472_v0, %v1373_v51  ;;  %v3945_v50 = vld [vmem:[%s6155_s2 + $0x4c] ss:$16 sps:$4 sm:$0xff]   ;;  %v3940_v8 = vld [vmem:[%s6155_s2 + $0x40] ss:$16 sps:$4 sm:$0xff]  }
 0x74f   :  { %v1483_v54 = vadd.f32 %v1467_v42, %v1368_v30  ;;  %v1487_v55 = vadd.f32 %v1471_v43, %v1372_v31  ;;  %v1485_v52 = vadd.f32 %v1469_v61, %v1370_v33  ;;  %v1489_v6 = vadd.f32 %v1473_v9, %v1374_v1  ;;  %v3939_v33 = vld [vmem:[%s6155_s2 + $0x2c] ss:$16 sps:$4 sm:$0xff]   ;;  %v3934_v61 = vld [vmem:[%s6155_s2 + $0x20] ss:$16 sps:$4 sm:$0xff]   ;;  %v3937_v1 = vld [vmem:[%s6155_s2 + $0x28] ss:$16 sps:$4 sm:$0xff]  }
 0x750   :  { %v3698_v57 = vmul.f32 -1.442695, %v1482_v45  ;;  %v3699_v53 = vmul.f32 -1.442695, %v1486_v46  ;;  %v3942_v9 = vld [vmem:[%s6155_s2 + $0x44] ss:$16 sps:$4 sm:$0xff]  }
 0x751   :  { %v3700_v63 = vmul.f32 -1.442695, %v1483_v54  ;;  %v3701_v60 = vmul.f32 -1.442695, %v1487_v55  ;;  %v3702_v15 = vmul.f32 -1.442695, %v1485_v52 }
 0x752   :  { %4232 = vpow2.f32 %v3698_v57  ;;  %v3703_v16 = vmul.f32 -1.442695, %v1489_v6  ;;  %v3930_v55 = vld [vmem:[%s6155_s2 + $0x4] ss:$16 sps:$4 sm:$0xff]   ;;  %v3933_v57 = vld [vmem:[%s6155_s2 + $0xc] ss:$16 sps:$4 sm:$0xff]  }
 0x753   :  { %4234 = vpow2.f32 %v3699_v53  ;;  %v3928_v53 = vld [vmem:[%s6155_s2] ss:$16 sps:$4 sm:$0xff]   ;;  %1963 = vmatprep.subr.bf16.mxu0 %v3930_v55  ;;  %2006 = vmatprep.subr.bf16.mxu1 %v3933_v57  ;;  %v3943_v51 = vld [vmem:[%s6155_s2 + $0x48] ss:$16 sps:$4 sm:$0xff]   ;;  %v3948_v0 = vld [vmem:[%s6155_s2 + $0x64] ss:$16 sps:$4 sm:$0xff]  }
 0x754   :  { %4236 = vpow2.f32 %v3700_v63  ;;  %v3931_v63 = vld [vmem:[%s6155_s2 + $0x8] ss:$16 sps:$4 sm:$0xff]   ;;  %v3951_v52 = vld [vmem:[%s6155_s2 + $0x6c] ss:$16 sps:$4 sm:$0xff]   ;;  %v3946_v6 = vld [vmem:[%s6155_s2 + $0x60] ss:$16 sps:$4 sm:$0xff]  }
 0x755   :  { %4238 = vpow2.f32 %v3701_v60  ;;  %v3936_v60 = vld [vmem:[%s6155_s2 + $0x24] ss:$16 sps:$4 sm:$0xff]  }
 0x756   :  { %4240 = vtanh.f32 %v1484_v14  ;;  %v3949_v14 = vld [vmem:[%s6155_s2 + $0x68] ss:$16 sps:$4 sm:$0xff]  }
 0x757   :  { %4242 = vtanh.f32 %v1488_v37  ;;  %v3954_v37 = vld [vmem:[%s6155_s2 + $0x84] ss:$16 sps:$4 sm:$0xff]  }
 0x758   :  { %4244 = vpow2.f32 %v3702_v15  ;;  %v3957_v15 = vld [vmem:[%s6155_s2 + $0x8c] ss:$16 sps:$4 sm:$0xff]  }
 0x759   :  { %4246 = vpow2.f32 %v3703_v16  ;;  %v3952_v16 = vld [vmem:[%s6155_s2 + $0x80] ss:$16 sps:$4 sm:$0xff]  }
 0x75c   :  { %v4233_v17 = vpop.eup %4232 }
 0x75d   :  { %v4235_v11 = vpop.eup %4234  ;;  %v1496_v23 = vadd.f32 1.0, %v4233_v17  ;;  %v3955_v17 = vld [vmem:[%s6155_s2 + $0x88] ss:$16 sps:$4 sm:$0xff]  }
 0x75e   :  { %v4237_v20 = vpop.eup %4236  ;;  %v1497_v21 = vadd.f32 1.0, %v4235_v11  ;;  %v3960_v11 = vld [vmem:[%s6155_s2 + $0xa4] ss:$16 sps:$4 sm:$0xff]  }
 0x75f   :  { %v4239_v35 = vpop.eup %4238  ;;  %4248 = vrcp.f32 %v1496_v23  ;;  %v1508_v56 = vadd.f32 1.0, %v4237_v20  ;;  %v3963_v23 = vld [vmem:[%s6155_s2 + $0xac] ss:$16 sps:$4 sm:$0xff]   ;;  %v3958_v20 = vld [vmem:[%s6155_s2 + $0xa0] ss:$16 sps:$4 sm:$0xff]  }
 0x760   :  { %4250 = vrcp.f32 %v1497_v21  ;;  %v1509_v58 = vadd.f32 1.0, %v4239_v35  ;;  %v4241_v59 = vpop.eup %4240  ;;  %v3961_v21 = vld [vmem:[%s6155_s2 + $0xa8] ss:$16 sps:$4 sm:$0xff]   ;;  %v3964_v35 = vld [vmem:[%s6155_s2 + $0xc0] ss:$16 sps:$4 sm:$0xff]  }
 0x761   :  { %4252 = vrcp.f32 %v1508_v56  ;;  %v4243_v4 = vpop.eup %4242  ;;  %v3966_v56 = vld [vmem:[%s6155_s2 + $0xc4] ss:$16 sps:$4 sm:$0xff]  }
 0x762   :  { %4254 = vrcp.f32 %v1509_v58  ;;  %v4245_v5 = vpop.eup %4244  ;;  %v3967_v58 = vld [vmem:[%s6155_s2 + $0xc8] ss:$16 sps:$4 sm:$0xff]  }
 0x763   :  { %v4247_v34 = vpop.eup %4246  ;;  %v1522_v3 = vadd.f32 1.0, %v4245_v5  ;;  %v3975_v5 = vld [vmem:[%s6155_s2 + $0xec] ss:$16 sps:$4 sm:$0xff]  }
 0x764   :  { %v1523_v25 = vadd.f32 1.0, %v4247_v34  ;;  %v3970_v34 = vld [vmem:[%s6155_s2 + $0xe0] ss:$16 sps:$4 sm:$0xff]  }
 0x765   :  { %4256 = vrcp.f32 %v1522_v3  ;;  %v1558_v3 = vld [vmem:[%s6153_s0 + $0x10] sm:$0x88] }
 0x766   :  { %4258 = vrcp.f32 %v1523_v25 }
 0x769   :  { %v4249_v7 = vpop.eup %4248 }
 0x76a   :  { %v4251_v12 = vpop.eup %4250  ;;  %v1536_v19 = vmul.f32 %v4249_v7, %v4241_v59  ;;  %v3969_v59 = vld [vmem:[%s6155_s2 + $0xcc] ss:$16 sps:$4 sm:$0xff]   ;;  %v3973_v7 = vld [vmem:[%s6155_s2 + $0xe8] ss:$16 sps:$4 sm:$0xff]  }
 0x76b   :  { %v4253_v10 = vpop.eup %4252  ;;  %v1537_v13 = vmul.f32 %v4251_v12, %v4243_v4  ;;  %v3972_v4 = vld [vmem:[%s6155_s2 + $0xe4] ss:$16 sps:$4 sm:$0xff]  }
 0x76c   :  { %v4255_v26 = vpop.eup %4254  ;;  %v1534_v27 = vmul.f32 %v4253_v10, %v1530_v36  ;;  %v5423_v12 = vld [vmem:[%s6156_s3 + $0x4] ss:$16 sps:$4 sm:$0xff]  }
 0x76d   :  { %v1535_v28 = vmul.f32 %v4255_v26, %v1531_v24  ;;  %v1556_v36 = vld [vmem:[%s6153_s0] sm:$0x88] }
 0x76e   :  { %v5314_v29 = vadd.f32 %v1536_v19, %v1534_v27  ;;  %v5428_v19 = vld [vmem:[%s6156_s3 + $0xc] ss:$16 sps:$4 sm:$0xff]   ;;  %v1560_v10 = vunpack.c.l.bf16 %v1556_v36  ;;  %v1561_v26 = vunpack.c.h.bf16 %v1556_v36  ;;  %v1565_v27 = vunpack.c.h.bf16 %v1558_v3 }
 0x76f   :  { %v5316_v30 = vadd.f32 %v1537_v13, %v1535_v28  ;;  %v4257_v18 = vpop.eup %4256  ;;  %v1564_v13 = vunpack.c.l.bf16 %v1558_v3 }
 0x770   :  { %4260 = vtanh.f32 %v5314_v29  ;;  %v4259_v31 = vpop.eup %4258 }
 0x771   :  { %4262 = vtanh.f32 %v5316_v30 }
 0x77a   :  { %v4261_v32 = vpop.eup %4260 }
 0x77b   :  { %v4263_v38 = vpop.eup %4262  ;;  %v1542_v39 = vmul.f32 %v4261_v32, %v4257_v18 }
 0x77c   :  { %v1543_v22 = vmul.f32 %v4263_v38, %v4259_v31 }
 0x77d   :  { %v1544_v41 = vpack.c.bf16 %v1542_v39, %v1542_v39 }
 0x77e   :  { %v1545_v42 = vpack.c.bf16 %v1543_v22, %v1543_v22 }
 0x77f   :  { %v1548_v43 = vunpack.c.l.b16 %v1544_v41 }
 0x780   :  { %v1549_v40 = vunpack.c.l.b16 %v1545_v42 }
 0x781   :  { %v1550_v44 = vrot.slane %v1548_v43, 2  ;;  %v1568_v45 = vrot.slane %v1548_v43, 6 }
 0x782   :  { %v1551_v46 = vrot.slane %v1549_v40, 1  ;;  %v1569_v48 = vrot.slane %v1549_v40, 5  ;;  %v1557_v40 = vld [vmem:[%s6153_s0 + $0x8] sm:$0x88] }
 0x783   :  { %v1563_v57 = vunpack.c.h.bf16 %v1557_v40 }
 0x784   :  { %v1552_v47 = vsel %vm783_vm2, %v1551_v46, %v1550_v44  ;;  %v1570_v49 = vsel %vm405_vm0, %v1569_v48, %v1568_v45  ;;  %v1559_v46 = vld [vmem:[%s6153_s0 + $0x18] sm:$0x88] }
 0x785   :  { %v1553_v62 = vpack.c.b16 %v1552_v47, %v1552_v47  ;;  %v1571_v54 = vpack.c.b16 %v1570_v49, %v1570_v49 }
 0x787   :  { %1555 = vst [vmem:[#allocation3] sm:$0x40] %v1553_v62  ;;  %1606 = vmatmul.mubr.bf16.vlgmr.msra.gmra.mrb[28].mxu0 %v1571_v54  ;;  %1647 = vmatmul.mubr.bf16.vlgmr.msra.gmra.mrb[28].mxu1 %v1571_v54 }
 0x788   :  { %1995 = vmatprep.mubr.bf16.mxu0 %v4514_v2  ;;  %2038 = vmatprep.mubr.bf16.mxu1 %v4514_v2 }
 0x789   :  { %1964 = vmatpush1.bf16.msra.mxu0 %v3928_v53  ;;  %2007 = vmatpush1.bf16.msra.mxu1 %v3931_v63  ;;  %v1567_v63 = vunpack.c.h.bf16 %v1559_v46 }
 0x78a   :  { %1965 = vmatprep.subr.bf16.mxu0 %v3936_v60  ;;  %2008 = vmatprep.subr.bf16.mxu1 %v3939_v33  ;;  %v1562_v33 = vunpack.c.l.bf16 %v1557_v40 }
 0x78d   :  { %1966 = vmatpush1.bf16.msra.mxu0 %v3934_v61  ;;  %2009 = vmatpush1.bf16.msra.mxu1 %v3937_v1  ;;  %v1566_v1 = vunpack.c.l.bf16 %v1559_v46  ;;  %v5455_v46 = vld [vmem:[%s6156_s3 + $0x8] ss:$16 sps:$4 sm:$0xff]  }
 0x78e   :  { %1967 = vmatprep.subr.bf16.mxu0 %v3942_v9  ;;  %2010 = vmatprep.subr.bf16.mxu1 %v3945_v50 }
 0x791   :  { %1968 = vmatpush1.bf16.msra.mxu0 %v3940_v8  ;;  %2011 = vmatpush1.bf16.msra.mxu1 %v3943_v51 }
 0x792   :  { %1969 = vmatprep.subr.bf16.mxu0 %v3948_v0  ;;  %2012 = vmatprep.subr.bf16.mxu1 %v3951_v52 }
 0x795   :  { %1970 = vmatpush1.bf16.msra.mxu0 %v3946_v6  ;;  %2013 = vmatpush1.bf16.msra.mxu1 %v3949_v14 }
 0x796   :  { %1971 = vmatprep.subr.bf16.mxu0 %v3954_v37  ;;  %2014 = vmatprep.subr.bf16.mxu1 %v3957_v15 }
 0x799   :  { %1972 = vmatpush1.bf16.msra.mxu0 %v3952_v16  ;;  %2015 = vmatpush1.bf16.msra.mxu1 %v3955_v17 }
 0x79a   :  { %1973 = vmatprep.subr.bf16.mxu0 %v3960_v11  ;;  %2016 = vmatprep.subr.bf16.mxu1 %v3963_v23 }
 0x79d   :  { %1974 = vmatpush1.bf16.msra.mxu0 %v3958_v20  ;;  %2017 = vmatpush1.bf16.msra.mxu1 %v3961_v21 }
 0x79e   :  { %1975 = vmatprep.subr.bf16.mxu0 %v3966_v56  ;;  %2018 = vmatprep.subr.bf16.mxu1 %v3969_v59 }
 0x7a1   :  { %1976 = vmatpush1.bf16.msra.mxu0 %v3964_v35  ;;  %2019 = vmatpush1.bf16.msra.mxu1 %v3967_v58 }
 0x7a2   :  { %1977 = vmatprep.subr.bf16.mxu0 %v3972_v4  ;;  %2020 = vmatprep.subr.bf16.mxu1 %v3975_v5 }
 0x7a5   :  { %1978 = vmatpush1.bf16.msra.mxu0 %v3970_v34  ;;  %2021 = vmatpush1.bf16.msra.mxu1 %v3973_v7  ;;  %v1723_v34 = vrot.slane %v5314_v29, 7 }
 0x7a6   :  { %2257 = vmatprep.subr.bf16.mxu0 %v5423_v12  ;;  %2298 = vmatprep.subr.bf16.mxu1 %v5428_v19 }
 0x85a   :  { %v1607_v24 = vpop.f32.mrb[28].mxu0  ;;  %v1648_v25 = vpop.f32.mrb[28].mxu1 }
 0x85b   :  { %v1659_v28 = vrot.slane %v1607_v24, 1  ;;  %v1663_v18 = vrot.slane %v1607_v24, 2  ;;  %v1609_v31 = vpop.f32.mrb[29].mxu0  ;;  %v1650_v32 = vpop.f32.mrb[29].mxu1  ;;  %v1661_v61 = vrot.slane %v1648_v25, 1  ;;  %v1665_v9 = vrot.slane %v1648_v25, 2 }
 0x85c   :  { %v1660_v38 = vrot.slane %v1609_v31, 1  ;;  %v1664_v39 = vrot.slane %v1609_v31, 2  ;;  %v1611_v22 = vpop.f32.mrb[30].mxu0  ;;  %v1652_v41 = vpop.f32.mrb[30].mxu1  ;;  %v1662_v53 = vrot.slane %v1650_v32, 1  ;;  %v1666_v60 = vrot.slane %v1650_v32, 2 }
 0x85d   :  { %v1675_v42 = vadd.f32 %v1659_v28, %v1560_v10  ;;  %v1679_v43 = vadd.f32 %v1663_v18, %v1564_v13  ;;  %v1612_v44 = vpop.f32.mrb[31].mxu0  ;;  %v1653_v45 = vpop.f32.mrb[31].mxu1  ;;  %v1677_v51 = vadd.f32 %v1661_v61, %v1562_v33  ;;  %v1681_v0 = vadd.f32 %v1665_v9, %v1566_v1  ;;  %v5515_v33 = vld [vmem:[%s6156_s3 + $0x6c] ss:$16 sps:$4 sm:$0xff]   ;;  %v5522_v61 = vld [vmem:[%s6156_s3 + $0x60] ss:$16 sps:$4 sm:$0xff]  }
 0x85e   :  { %v1676_v48 = vadd.f32 %v1660_v38, %v1561_v26  ;;  %v1680_v47 = vadd.f32 %v1664_v39, %v1565_v27  ;;  %v1678_v50 = vadd.f32 %v1662_v53, %v1563_v57  ;;  %v1682_v8 = vadd.f32 %v1666_v60, %v1567_v63  ;;  %v5450_v45 = vld [vmem:[%s6156_s3] ss:$16 sps:$4 sm:$0xff]   ;;  %v5489_v57 = vld [vmem:[%s6156_s3 + $0x4c] ss:$16 sps:$4 sm:$0xff]   ;;  %v5503_v63 = vld [vmem:[%s6156_s3 + $0x48] ss:$16 sps:$4 sm:$0xff]  }
 0x85f   :  { %v3704_v49 = vmul.f32 -1.442695, %v1675_v42  ;;  %v3705_v62 = vmul.f32 -1.442695, %v1679_v43  ;;  %v1724_v10 = vrot.slane %v5316_v30, 7 }
 0x860   :  { %v3706_v54 = vmul.f32 -1.442695, %v1676_v48  ;;  %v3707_v55 = vmul.f32 -1.442695, %v1680_v47  ;;  %v3708_v52 = vmul.f32 -1.442695, %v1678_v50 }
 0x861   :  { %4264 = vpow2.f32 %v3704_v49  ;;  %v3709_v6 = vmul.f32 -1.442695, %v1682_v8  ;;  %v5460_v48 = vld [vmem:[%s6156_s3 + $0x24] ss:$16 sps:$4 sm:$0xff]   ;;  %v5465_v47 = vld [vmem:[%s6156_s3 + $0x2c] ss:$16 sps:$4 sm:$0xff]  }
 0x862   :  { %4266 = vpow2.f32 %v3705_v62  ;;  %v5472_v62 = vld [vmem:[%s6156_s3 + $0x20] ss:$16 sps:$4 sm:$0xff]   ;;  %v5510_v60 = vld [vmem:[%s6156_s3 + $0x64] ss:$16 sps:$4 sm:$0xff]   ;;  %v5527_v1 = vld [vmem:[%s6156_s3 + $0x68] ss:$16 sps:$4 sm:$0xff]  }
 0x863   :  { %4268 = vpow2.f32 %v3706_v54  ;;  %v5477_v54 = vld [vmem:[%s6156_s3 + $0x28] ss:$16 sps:$4 sm:$0xff]   ;;  %v5498_v53 = vld [vmem:[%s6156_s3 + $0x40] ss:$16 sps:$4 sm:$0xff]   ;;  %v5534_v9 = vld [vmem:[%s6156_s3 + $0x84] ss:$16 sps:$4 sm:$0xff]  }
 0x864   :  { %4270 = vpow2.f32 %v3707_v55  ;;  %v5484_v55 = vld [vmem:[%s6156_s3 + $0x44] ss:$16 sps:$4 sm:$0xff]   ;;  %v5539_v50 = vld [vmem:[%s6156_s3 + $0x8c] ss:$16 sps:$4 sm:$0xff]   ;;  %v5546_v8 = vld [vmem:[%s6156_s3 + $0x80] ss:$16 sps:$4 sm:$0xff]  }
 0x865   :  { %4272 = vtanh.f32 %v1677_v51  ;;  %v5551_v51 = vld [vmem:[%s6156_s3 + $0x88] ss:$16 sps:$4 sm:$0xff]  }
 0x866   :  { %4274 = vtanh.f32 %v1681_v0  ;;  %v5558_v0 = vld [vmem:[%s6156_s3 + $0xa4] ss:$16 sps:$4 sm:$0xff]  }
 0x867   :  { %4276 = vpow2.f32 %v3708_v52  ;;  %v5563_v52 = vld [vmem:[%s6156_s3 + $0xac] ss:$16 sps:$4 sm:$0xff]  }
 0x868   :  { %4278 = vpow2.f32 %v3709_v6  ;;  %v5570_v6 = vld [vmem:[%s6156_s3 + $0xa0] ss:$16 sps:$4 sm:$0xff]  }
 0x86b   :  { %v4265_v14 = vpop.eup %4264 }
 0x86c   :  { %v4267_v37 = vpop.eup %4266  ;;  %v1689_v15 = vadd.f32 1.0, %v4265_v14  ;;  %v5575_v14 = vld [vmem:[%s6156_s3 + $0xa8] ss:$16 sps:$4 sm:$0xff]  }
 0x86d   :  { %v4269_v16 = vpop.eup %4268  ;;  %v1690_v17 = vadd.f32 1.0, %v4267_v37  ;;  %v5582_v37 = vld [vmem:[%s6156_s3 + $0xc4] ss:$16 sps:$4 sm:$0xff]  }
 0x86e   :  { %v4271_v11 = vpop.eup %4270  ;;  %4280 = vrcp.f32 %v1689_v15  ;;  %v1701_v23 = vadd.f32 1.0, %v4269_v16  ;;  %v5587_v15 = vld [vmem:[%s6156_s3 + $0xcc] ss:$16 sps:$4 sm:$0xff]   ;;  %v5594_v16 = vld [vmem:[%s6156_s3 + $0xc0] ss:$16 sps:$4 sm:$0xff]  }
 0x86f   :  { %4282 = vrcp.f32 %v1690_v17  ;;  %v1702_v20 = vadd.f32 1.0, %v4271_v11  ;;  %v4273_v21 = vpop.eup %4272  ;;  %v5599_v17 = vld [vmem:[%s6156_s3 + $0xc8] ss:$16 sps:$4 sm:$0xff]   ;;  %v5606_v11 = vld [vmem:[%s6156_s3 + $0xe4] ss:$16 sps:$4 sm:$0xff]  }
 0x870   :  { %4284 = vrcp.f32 %v1701_v23  ;;  %v4275_v35 = vpop.eup %4274  ;;  %v5611_v23 = vld [vmem:[%s6156_s3 + $0xec] ss:$16 sps:$4 sm:$0xff]  }
 0x871   :  { %4286 = vrcp.f32 %v1702_v20  ;;  %v4277_v56 = vpop.eup %4276  ;;  %v5618_v20 = vld [vmem:[%s6156_s3 + $0xe0] ss:$16 sps:$4 sm:$0xff]  }
 0x872   :  { %v4279_v58 = vpop.eup %4278  ;;  %v1715_v7 = vadd.f32 1.0, %v4277_v56 }
 0x873   :  { %v1716_v13 = vadd.f32 1.0, %v4279_v58 }
 0x874   :  { %4288 = vrcp.f32 %v1715_v7 }
 0x875   :  { %4290 = vrcp.f32 %v1716_v13 }
 0x878   :  { %v4281_v59 = vpop.eup %4280 }
 0x879   :  { %v4283_v4 = vpop.eup %4282  ;;  %v1729_v5 = vmul.f32 %v4281_v59, %v4273_v21  ;;  %v5623_v21 = vld [vmem:[%s6156_s3 + $0xe8] ss:$16 sps:$4 sm:$0xff]  }
 0x87a   :  { %v4285_v36 = vpop.eup %4284  ;;  %v1730_v3 = vmul.f32 %v4283_v4, %v4275_v35  ;;  %v1783_v35 = vlaneseq  ;;  %v1781_v4 = vld [vmem:[%s6157_s4] sm:$0xf] }
 0x87b   :  { %v4287_v24 = vpop.eup %4286  ;;  %v1727_v25 = vmul.f32 %v4285_v36, %v1723_v34 }
 0x87c   :  { %v1728_v26 = vmul.f32 %v4287_v24, %v1724_v10  ;;  %v1784_v56 = vshrl.u32 %v1783_v35, 7 }
 0x87d   :  { %v1731_v27 = vadd.f32 %v1729_v5, %v1727_v25 }
 0x87e   :  { %v1732_v28 = vadd.f32 %v1730_v3, %v1728_v26  ;;  %v4289_v18 = vpop.eup %4288  ;;  %v1785_v58 = vsub.s32 0, %v1784_v56  ;;  %v1793_v59 = vsub.s32 2, %v1784_v56  ;;  %v1789_v5 = vsub.s32 1, %v1784_v56 }
 0x87f   :  { %4292 = vtanh.f32 %v1731_v27  ;;  %v4291_v31 = vpop.eup %4290  ;;  %v1797_v34 = vsub.s32 3, %v1784_v56 }
 0x880   :  { %4294 = vtanh.f32 %v1732_v28  ;;  %v1786_v7 = vrot.slane %v1781_v4, %v1785_v58  ;;  %v1794_v36 = vrot.slane %v1781_v4, %v1793_v59  ;;  %v1790_v13 = vrot.slane %v1781_v4, %v1789_v5 }
 0x881   :  { %v1798_v24 = vrot.slane %v1781_v4, %v1797_v34 }
 0x889   :  { %v4293_v32 = vpop.eup %4292 }
 0x88a   :  { %v4295_v38 = vpop.eup %4294  ;;  %v1735_v29 = vmul.f32 %v4293_v32, %v4289_v18 }
 0x88b   :  { %v1736_v39 = vmul.f32 %v4295_v38, %v4291_v31 }
 0x88c   :  { %v1737_v22 = vpack.c.bf16 %v1735_v29, %v1735_v29 }
 0x88d   :  { %v1738_v41 = vpack.c.bf16 %v1736_v39, %v1736_v39 }
 0x88e   :  { %v1741_v42 = vunpack.c.l.b16 %v1737_v22 }
 0x88f   :  { %v1742_v30 = vunpack.c.l.b16 %v1738_v41 }
 0x890   :  { %v1743_v43 = vrot.slane %v1741_v42, 1 }
 0x892   :  { %v1744_v40 = vsel %vm977_vm3, %v1742_v30, %v1743_v43 }
 0x893   :  { %v1745_v44 = vpack.c.b16 %v1744_v40, %v1744_v40 }
 0x895   :  { %1747 = vst [vmem:[#allocation3] sm:$0x80] %v1745_v44 }
 0x89c   :  { %v1748_v49 = vld [vmem:[#allocation3] sm:$0xff] }
 0x89d   :  { %1996 = vmatmul.mubr.bf16.vlgmr.msra.gmra.mrb[32].mxu0 %v1748_v49  ;;  %2039 = vmatmul.mubr.bf16.vlgmr.msra.gmra.mrb[32].mxu1 %v1748_v49 }
 0x89e   :  { %2258 = vmatpush1.bf16.msra.mxu0 %v5450_v45  ;;  %2299 = vmatpush1.bf16.msra.mxu1 %v5455_v46 }
 0x89f   :  { %2259 = vmatprep.subr.bf16.mxu0 %v5460_v48  ;;  %2300 = vmatprep.subr.bf16.mxu1 %v5465_v47 }
 0x8a0   :  { %2289 = vmatprep.mubr.bf16.mxu0 %v4514_v2  ;;  %2330 = vmatprep.mubr.bf16.mxu1 %v4514_v2 }
 0x8a2   :  { %2260 = vmatpush1.bf16.msra.mxu0 %v5472_v62  ;;  %2301 = vmatpush1.bf16.msra.mxu1 %v5477_v54 }
 0x8a3   :  { %2261 = vmatprep.subr.bf16.mxu0 %v5484_v55  ;;  %2302 = vmatprep.subr.bf16.mxu1 %v5489_v57 }
 0x8a6   :  { %2262 = vmatpush1.bf16.msra.mxu0 %v5498_v53  ;;  %2303 = vmatpush1.bf16.msra.mxu1 %v5503_v63 }
 0x8a7   :  { %2263 = vmatprep.subr.bf16.mxu0 %v5510_v60  ;;  %2304 = vmatprep.subr.bf16.mxu1 %v5515_v33 }
 0x8aa   :  { %2264 = vmatpush1.bf16.msra.mxu0 %v5522_v61  ;;  %2305 = vmatpush1.bf16.msra.mxu1 %v5527_v1 }
 0x8ab   :  { %2265 = vmatprep.subr.bf16.mxu0 %v5534_v9  ;;  %2306 = vmatprep.subr.bf16.mxu1 %v5539_v50 }
 0x8ae   :  { %2266 = vmatpush1.bf16.msra.mxu0 %v5546_v8  ;;  %2307 = vmatpush1.bf16.msra.mxu1 %v5551_v51 }
 0x8af   :  { %2267 = vmatprep.subr.bf16.mxu0 %v5558_v0  ;;  %2308 = vmatprep.subr.bf16.mxu1 %v5563_v52 }
 0x8b2   :  { %2268 = vmatpush1.bf16.msra.mxu0 %v5570_v6  ;;  %2309 = vmatpush1.bf16.msra.mxu1 %v5575_v14 }
 0x8b3   :  { %2269 = vmatprep.subr.bf16.mxu0 %v5582_v37  ;;  %2310 = vmatprep.subr.bf16.mxu1 %v5587_v15 }
 0x8b6   :  { %2270 = vmatpush1.bf16.msra.mxu0 %v5594_v16  ;;  %2311 = vmatpush1.bf16.msra.mxu1 %v5599_v17 }
 0x8b7   :  { %2271 = vmatprep.subr.bf16.mxu0 %v5606_v11  ;;  %2312 = vmatprep.subr.bf16.mxu1 %v5611_v23 }
 0x8ba   :  { %2272 = vmatpush1.bf16.msra.mxu0 %v5618_v20  ;;  %2313 = vmatpush1.bf16.msra.mxu1 %v5623_v21 }
 0x8bb   :  { %2376 = vmatprep.subr.bf16.mxu0 %v5423_v12  ;;  %2417 = vmatprep.subr.bf16.mxu1 %v5428_v19 }
 0x8bd   :  { %2290 = vmatmul.mubr.bf16.vlgmr.msra.gmra.mrb[36].mxu0 %v4514_v2  ;;  %2331 = vmatmul.mubr.bf16.vlgmr.msra.gmra.mrb[36].mxu1 %v4514_v2 }
 0x8be   :  { %2377 = vmatpush1.bf16.msra.mxu0 %v5450_v45  ;;  %2418 = vmatpush1.bf16.msra.mxu1 %v5455_v46 }
 0x8bf   :  { %2378 = vmatprep.subr.bf16.mxu0 %v5460_v48  ;;  %2419 = vmatprep.subr.bf16.mxu1 %v5465_v47 }
 0x8c0   :  { %2408 = vmatprep.mubr.bf16.mxu0 %v4514_v2  ;;  %2449 = vmatprep.mubr.bf16.mxu1 %v4514_v2 }
 0x8c2   :  { %2379 = vmatpush1.bf16.msra.mxu0 %v5472_v62  ;;  %2420 = vmatpush1.bf16.msra.mxu1 %v5477_v54 }
 0x8c3   :  { %2380 = vmatprep.subr.bf16.mxu0 %v5484_v55  ;;  %2421 = vmatprep.subr.bf16.mxu1 %v5489_v57 }
 0x8c6   :  { %2381 = vmatpush1.bf16.msra.mxu0 %v5498_v53  ;;  %2422 = vmatpush1.bf16.msra.mxu1 %v5503_v63 }
 0x8c7   :  { %2382 = vmatprep.subr.bf16.mxu0 %v5510_v60  ;;  %2423 = vmatprep.subr.bf16.mxu1 %v5515_v33 }
 0x8ca   :  { %2383 = vmatpush1.bf16.msra.mxu0 %v5522_v61  ;;  %2424 = vmatpush1.bf16.msra.mxu1 %v5527_v1 }
 0x8cb   :  { %2384 = vmatprep.subr.bf16.mxu0 %v5534_v9  ;;  %2425 = vmatprep.subr.bf16.mxu1 %v5539_v50 }
 0x8ce   :  { %2385 = vmatpush1.bf16.msra.mxu0 %v5546_v8  ;;  %2426 = vmatpush1.bf16.msra.mxu1 %v5551_v51 }
 0x8cf   :  { %2386 = vmatprep.subr.bf16.mxu0 %v5558_v0  ;;  %2427 = vmatprep.subr.bf16.mxu1 %v5563_v52 }
 0x8d2   :  { %2387 = vmatpush1.bf16.msra.mxu0 %v5570_v6  ;;  %2428 = vmatpush1.bf16.msra.mxu1 %v5575_v14 }
 0x8d3   :  { %2388 = vmatprep.subr.bf16.mxu0 %v5582_v37  ;;  %2429 = vmatprep.subr.bf16.mxu1 %v5587_v15 }
 0x8d6   :  { %2389 = vmatpush1.bf16.msra.mxu0 %v5594_v16  ;;  %2430 = vmatpush1.bf16.msra.mxu1 %v5599_v17 }
 0x8d7   :  { %2390 = vmatprep.subr.bf16.mxu0 %v5606_v11  ;;  %2431 = vmatprep.subr.bf16.mxu1 %v5611_v23 }
 0x8da   :  { %2391 = vmatpush1.bf16.msra.mxu0 %v5618_v20  ;;  %2432 = vmatpush1.bf16.msra.mxu1 %v5623_v21 }
 0x8db   :  { %2513 = vmatprep.subr.bf16.mxu0 %v5423_v12  ;;  %2554 = vmatprep.subr.bf16.mxu1 %v5428_v19 }
 0x970   :  { %v1997_v3 = vpop.f32.mrb[32].mxu0  ;;  %v2040_v10 = vpop.f32.mrb[32].mxu1 }
 0x971   :  { %v1999_v25 = vpop.f32.mrb[33].mxu0  ;;  %v2042_v26 = vpop.f32.mrb[33].mxu1  ;;  %v1998_v18 = vadd.f32 %v1997_v3, %v1786_v7  ;;  %v2041_v31 = vadd.f32 %v2040_v10, %v1794_v36 }
 0x972   :  { %v2001_v27 = vpop.f32.mrb[34].mxu0  ;;  %v2044_v28 = vpop.f32.mrb[34].mxu1  ;;  %v2000_v22 = vadd.f32 %v1999_v25, %v1790_v13  ;;  %v2043_v41 = vadd.f32 %v2042_v26, %v1798_v24 }
 0x973   :  { %v2002_v32 = vadd.f32 %v2001_v27, %v1786_v7  ;;  %v2045_v38 = vadd.f32 %v2044_v28, %v1794_v36  ;;  %v2003_v29 = vpop.f32.mrb[35].mxu0  ;;  %v2046_v39 = vpop.f32.mrb[35].mxu1 }
 0x974   :  { %v2004_v42 = vadd.f32 %v2003_v29, %v1790_v13  ;;  %v2047_v30 = vadd.f32 %v2046_v39, %v1798_v24 }
 0x975   :  { %v2049_v43 = vpack.c.bf16 %v2002_v32, %v1998_v18  ;;  %v2051_v40 = vpack.c.bf16 %v2045_v38, %v2041_v31 }
 0x976   :  { %v2050_v44 = vpack.c.bf16 %v2004_v42, %v2000_v22  ;;  %v2052_v49 = vpack.c.bf16 %v2047_v30, %v2043_v41 }
 0x977   :  { %2053 = vst [vmem:[#allocation2] sm:$0xff] %v2049_v43  ;;  %2055 = vst [vmem:[#allocation2 + $0x10] sm:$0xff] %v2051_v40 }
 0x978   :  { %2054 = vst [vmem:[#allocation2 + $0x8] sm:$0xff] %v2050_v44  ;;  %2056 = vst [vmem:[#allocation2 + $0x18] sm:$0xff] %v2052_v49 }
 0x97e   :  { %v2089_v35 = vld [vmem:[#allocation2] sm:$0x1]  ;;  %v2091_v31 = vld [vmem:[#allocation2 + $0x10] sm:$0x1] }
 0x97f   :  { %v2090_v56 = vld [vmem:[#allocation2 + $0x8] sm:$0x1]  ;;  %v2093_v58 = vunpack.c.l.bf16 %v2089_v35  ;;  %v2092_v25 = vld [vmem:[#allocation2 + $0x18] sm:$0x1]  ;;  %v2095_v38 = vunpack.c.l.bf16 %v2091_v31 }
 0x980   :  { %v2094_v5 = vunpack.c.l.bf16 %v2090_v56  ;;  %v2096_v18 = vunpack.c.l.bf16 %v2092_v25 }
 0x990   :  { %v2291_v59 = vpop.f32.mrb[36].mxu0  ;;  %v2332_v4 = vpop.f32.mrb[36].mxu1 }
 0x991   :  { %v2339_v34 = vadd.f32 %v2291_v59, %v2093_v58  ;;  %v2293_v7 = vpop.f32.mrb[37].mxu0  ;;  %v2334_v36 = vpop.f32.mrb[37].mxu1  ;;  %v2341_v39 = vadd.f32 %v2332_v4, %v2095_v38 }
 0x992   :  { %v2340_v3 = vadd.f32 %v2293_v7, %v2094_v5  ;;  %v2295_v10 = vpop.f32.mrb[38].mxu0  ;;  %v2336_v13 = vpop.f32.mrb[38].mxu1  ;;  %v2342_v32 = vadd.f32 %v2334_v36, %v2096_v18  ;;  %v2367_v36 = vld [vmem:[#allocation2] sm:$0x2] }
 0x993   :  { %v3774_v24 = vmul.f32 -1.442695, %v2339_v34  ;;  %v2296_v26 = vpop.f32.mrb[39].mxu0  ;;  %v2337_v27 = vpop.f32.mrb[39].mxu1 }
 0x994   :  { %v3775_v28 = vmul.f32 -1.442695, %v2340_v3  ;;  %v3776_v29 = vmul.f32 -1.442695, %v2342_v32  ;;  %v2368_v3 = vld [vmem:[#allocation2 + $0x8] sm:$0x2] }
 0x995   :  { %4296 = vpow2.f32 %v3774_v24  ;;  %v2371_v24 = vunpack.c.l.bf16 %v2367_v36 }
 0x996   :  { %4298 = vpow2.f32 %v3775_v28  ;;  %v2372_v28 = vunpack.c.l.bf16 %v2368_v3 }
 0x997   :  { %4300 = vpow2.f32 %v3776_v29 }
 0x998   :  { %4302 = vtanh.f32 %v2341_v39 }
 0x99f   :  { %v4297_v22 = vpop.eup %4296 }
 0x9a0   :  { %v4299_v41 = vpop.eup %4298  ;;  %v2346_v42 = vadd.f32 1.0, %v4297_v22 }
 0x9a1   :  { %v2352_v30 = vadd.f32 1.0, %v4299_v41  ;;  %v4301_v43 = vpop.eup %4300 }
 0x9a2   :  { %4304 = vrcp.f32 %v2346_v42  ;;  %v4303_v40 = vpop.eup %4302  ;;  %v2359_v56 = vadd.f32 1.0, %v4301_v43  ;;  %v2370_v42 = vld [vmem:[#allocation2 + $0x18] sm:$0x2] }
 0x9a3   :  { %4306 = vrcp.f32 %v2352_v30 }
 0x9a4   :  { %4308 = vrcp.f32 %v2359_v56 }
 0x9ac   :  { %v4305_v44 = vpop.eup %4304 }
 0x9ad   :  { %v4307_v49 = vpop.eup %4306  ;;  %v2363_v35 = vmul.f32 %v4305_v44, %v4303_v40  ;;  %v2374_v40 = vunpack.c.l.bf16 %v2370_v42  ;;  %v2369_v44 = vld [vmem:[#allocation2 + $0x10] sm:$0x2] }
 0x9ae   :  { %v2362_v58 = vmul.f32 0.0, %v4307_v49  ;;  %v4309_v4 = vpop.eup %4308  ;;  %v2373_v56 = vunpack.c.l.bf16 %v2369_v44 }
 0x9b0   :  { %v5670_v59 = vadd.f32 %v2363_v35, %v2362_v58 }
 0x9b2   :  { %4310 = vtanh.f32 %v5670_v59 }
 0x9bc   :  { %v4311_v5 = vpop.eup %4310 }
 0x9bd   :  { %v2366_v34 = vmul.f32 %v4311_v5, %v4309_v4 }
 0x9bf   :  { %v2375_v7 = vpack.c.bf16 %v2366_v34, %v2366_v34 }
 0x9c1   :  { %2409 = vmatmul.mubr.bf16.vlgmr.msra.gmra.mrb[40].mxu0 %v2375_v7  ;;  %2450 = vmatmul.mubr.bf16.vlgmr.msra.gmra.mrb[40].mxu1 %v2375_v7 }
 0x9c2   :  { %2514 = vmatpush1.bf16.msra.mxu0 %v5450_v45  ;;  %2555 = vmatpush1.bf16.msra.mxu1 %v5455_v46 }
 0x9c3   :  { %2515 = vmatprep.subr.bf16.mxu0 %v5460_v48  ;;  %2556 = vmatprep.subr.bf16.mxu1 %v5465_v47 }
 0x9c4   :  { %2545 = vmatprep.mubr.bf16.mxu0 %v4514_v2  ;;  %2586 = vmatprep.mubr.bf16.mxu1 %v4514_v2 }
 0x9c6   :  { %2516 = vmatpush1.bf16.msra.mxu0 %v5472_v62  ;;  %2557 = vmatpush1.bf16.msra.mxu1 %v5477_v54 }
 0x9c7   :  { %2517 = vmatprep.subr.bf16.mxu0 %v5484_v55  ;;  %2558 = vmatprep.subr.bf16.mxu1 %v5489_v57 }
 0x9ca   :  { %2518 = vmatpush1.bf16.msra.mxu0 %v5498_v53  ;;  %2559 = vmatpush1.bf16.msra.mxu1 %v5503_v63 }
 0x9cb   :  { %2519 = vmatprep.subr.bf16.mxu0 %v5510_v60  ;;  %2560 = vmatprep.subr.bf16.mxu1 %v5515_v33 }
 0x9ce   :  { %2520 = vmatpush1.bf16.msra.mxu0 %v5522_v61  ;;  %2561 = vmatpush1.bf16.msra.mxu1 %v5527_v1 }
 0x9cf   :  { %2521 = vmatprep.subr.bf16.mxu0 %v5534_v9  ;;  %2562 = vmatprep.subr.bf16.mxu1 %v5539_v50 }
 0x9d2   :  { %2522 = vmatpush1.bf16.msra.mxu0 %v5546_v8  ;;  %2563 = vmatpush1.bf16.msra.mxu1 %v5551_v51 }
 0x9d3   :  { %2523 = vmatprep.subr.bf16.mxu0 %v5558_v0  ;;  %2564 = vmatprep.subr.bf16.mxu1 %v5563_v52 }
 0x9d6   :  { %2524 = vmatpush1.bf16.msra.mxu0 %v5570_v6  ;;  %2565 = vmatpush1.bf16.msra.mxu1 %v5575_v14 }
 0x9d7   :  { %2525 = vmatprep.subr.bf16.mxu0 %v5582_v37  ;;  %2566 = vmatprep.subr.bf16.mxu1 %v5587_v15 }
 0x9da   :  { %2526 = vmatpush1.bf16.msra.mxu0 %v5594_v16  ;;  %2567 = vmatpush1.bf16.msra.mxu1 %v5599_v17 }
 0x9db   :  { %2527 = vmatprep.subr.bf16.mxu0 %v5606_v11  ;;  %2568 = vmatprep.subr.bf16.mxu1 %v5611_v23 }
 0x9de   :  { %2528 = vmatpush1.bf16.msra.mxu0 %v5618_v20  ;;  %2569 = vmatpush1.bf16.msra.mxu1 %v5623_v21 }
 0x9df   :  { %2650 = vmatprep.subr.bf16.mxu0 %v5423_v12  ;;  %2691 = vmatprep.subr.bf16.mxu1 %v5428_v19 }
 0xa94   :  { %v2410_v10 = vpop.f32.mrb[40].mxu0  ;;  %v2451_v13 = vpop.f32.mrb[40].mxu1 }
 0xa95   :  { %v2462_v25 = vrot.slane %v2410_v10, 6  ;;  %v2412_v26 = vpop.f32.mrb[41].mxu0  ;;  %v2453_v27 = vpop.f32.mrb[41].mxu1  ;;  %v2464_v35 = vrot.slane %v2451_v13, 6 }
 0xa96   :  { %v2463_v18 = vrot.slane %v2412_v26, 6  ;;  %v2414_v31 = vpop.f32.mrb[42].mxu0  ;;  %v2455_v32 = vpop.f32.mrb[42].mxu1  ;;  %v2465_v43 = vrot.slane %v2453_v27, 6 }
 0xa97   :  { %v2470_v38 = vadd.f32 %v2462_v25, %v2371_v24  ;;  %v2415_v29 = vpop.f32.mrb[43].mxu0  ;;  %v2456_v39 = vpop.f32.mrb[43].mxu1  ;;  %v2472_v4 = vadd.f32 %v2464_v35, %v2373_v56  ;;  %v2494_v25 = vrot.slane %v5670_v59, 6  ;;  %v2501_v59 = vld [vmem:[#allocation2] sm:$0x4] }
 0xa98   :  { %v2471_v22 = vadd.f32 %v2463_v18, %v2372_v28  ;;  %v2473_v49 = vadd.f32 %v2465_v43, %v2374_v40 }
 0xa99   :  { %v3777_v41 = vmul.f32 -1.442695, %v2470_v38 }
 0xa9a   :  { %v3778_v30 = vmul.f32 -1.442695, %v2471_v22  ;;  %v3779_v58 = vmul.f32 -1.442695, %v2473_v49  ;;  %v2502_v22 = vld [vmem:[#allocation2 + $0x8] sm:$0x4] }
 0xa9b   :  { %4312 = vpow2.f32 %v3777_v41  ;;  %v2506_v49 = vunpack.c.l.bf16 %v2502_v22 }
 0xa9c   :  { %4314 = vpow2.f32 %v3778_v30  ;;  %v2505_v30 = vunpack.c.l.bf16 %v2501_v59 }
 0xa9d   :  { %4316 = vpow2.f32 %v3779_v58 }
 0xa9e   :  { %4318 = vtanh.f32 %v2472_v4 }
 0xaa5   :  { %v4313_v5 = vpop.eup %4312 }
 0xaa6   :  { %v4315_v34 = vpop.eup %4314  ;;  %v2477_v7 = vadd.f32 1.0, %v4313_v5 }
 0xaa7   :  { %v2483_v36 = vadd.f32 1.0, %v4315_v34  ;;  %v4317_v3 = vpop.eup %4316 }
 0xaa8   :  { %4320 = vrcp.f32 %v2477_v7  ;;  %v4319_v10 = vpop.eup %4318  ;;  %v2490_v28 = vadd.f32 1.0, %v4317_v3  ;;  %v2504_v3 = vld [vmem:[#allocation2 + $0x18] sm:$0x4] }
 0xaa9   :  { %4322 = vrcp.f32 %v2483_v36 }
 0xaaa   :  { %4324 = vrcp.f32 %v2490_v28 }
 0xab2   :  { %v4321_v24 = vpop.eup %4320 }
 0xab3   :  { %v4323_v26 = vpop.eup %4322  ;;  %v2497_v27 = vmul.f32 %v4321_v24, %v4319_v10 }
 0xab4   :  { %v2496_v13 = vmul.f32 %v4323_v26, %v2494_v25  ;;  %v4325_v31 = vpop.eup %4324  ;;  %v2508_v25 = vunpack.c.l.bf16 %v2504_v3  ;;  %v2503_v26 = vld [vmem:[#allocation2 + $0x10] sm:$0x4] }
 0xab6   :  { %v5708_v18 = vadd.f32 %v2497_v27, %v2496_v13  ;;  %v2507_v13 = vunpack.c.l.bf16 %v2503_v26 }
 0xab8   :  { %4326 = vtanh.f32 %v5708_v18 }
 0xac2   :  { %v4327_v32 = vpop.eup %4326 }
 0xac3   :  { %v2500_v38 = vmul.f32 %v4327_v32, %v4325_v31 }
 0xac5   :  { %v2509_v29 = vpack.c.bf16 %v2500_v38, %v2500_v38 }
 0xac7   :  { %v2511_v39 = vrot.slane %v2509_v29, 1 }
 0xac9   :  { %2546 = vmatmul.mubr.bf16.vlgmr.msra.gmra.mrb[44].mxu0 %v2511_v39  ;;  %2587 = vmatmul.mubr.bf16.vlgmr.msra.gmra.mrb[44].mxu1 %v2511_v39 }
 0xaca   :  { %2651 = vmatpush1.bf16.msra.mxu0 %v5450_v45  ;;  %2692 = vmatpush1.bf16.msra.mxu1 %v5455_v46 }
 0xacb   :  { %2652 = vmatprep.subr.bf16.mxu0 %v5460_v48  ;;  %2693 = vmatprep.subr.bf16.mxu1 %v5465_v47 }
 0xacc   :  { %2682 = vmatprep.mubr.bf16.mxu0 %v4514_v2  ;;  %2723 = vmatprep.mubr.bf16.mxu1 %v4514_v2 }
 0xace   :  { %2653 = vmatpush1.bf16.msra.mxu0 %v5472_v62  ;;  %2694 = vmatpush1.bf16.msra.mxu1 %v5477_v54 }
 0xacf   :  { %2654 = vmatprep.subr.bf16.mxu0 %v5484_v55  ;;  %2695 = vmatprep.subr.bf16.mxu1 %v5489_v57 }
 0xad2   :  { %2655 = vmatpush1.bf16.msra.mxu0 %v5498_v53  ;;  %2696 = vmatpush1.bf16.msra.mxu1 %v5503_v63 }
 0xad3   :  { %2656 = vmatprep.subr.bf16.mxu0 %v5510_v60  ;;  %2697 = vmatprep.subr.bf16.mxu1 %v5515_v33 }
 0xad6   :  { %2657 = vmatpush1.bf16.msra.mxu0 %v5522_v61  ;;  %2698 = vmatpush1.bf16.msra.mxu1 %v5527_v1 }
 0xad7   :  { %2658 = vmatprep.subr.bf16.mxu0 %v5534_v9  ;;  %2699 = vmatprep.subr.bf16.mxu1 %v5539_v50 }
 0xada   :  { %2659 = vmatpush1.bf16.msra.mxu0 %v5546_v8  ;;  %2700 = vmatpush1.bf16.msra.mxu1 %v5551_v51 }
 0xadb   :  { %2660 = vmatprep.subr.bf16.mxu0 %v5558_v0  ;;  %2701 = vmatprep.subr.bf16.mxu1 %v5563_v52 }
 0xade   :  { %2661 = vmatpush1.bf16.msra.mxu0 %v5570_v6  ;;  %2702 = vmatpush1.bf16.msra.mxu1 %v5575_v14 }
 0xadf   :  { %2662 = vmatprep.subr.bf16.mxu0 %v5582_v37  ;;  %2703 = vmatprep.subr.bf16.mxu1 %v5587_v15 }
 0xae2   :  { %2663 = vmatpush1.bf16.msra.mxu0 %v5594_v16  ;;  %2704 = vmatpush1.bf16.msra.mxu1 %v5599_v17 }
 0xae3   :  { %2664 = vmatprep.subr.bf16.mxu0 %v5606_v11  ;;  %2705 = vmatprep.subr.bf16.mxu1 %v5611_v23 }
 0xae6   :  { %2665 = vmatpush1.bf16.msra.mxu0 %v5618_v20  ;;  %2706 = vmatpush1.bf16.msra.mxu1 %v5623_v21 }
 0xae7   :  { %2799 = vmatprep.subr.bf16.mxu0 %v5423_v12  ;;  %2840 = vmatprep.subr.bf16.mxu1 %v5428_v19 }
 0xb9c   :  { %v2547_v41 = vpop.f32.mrb[44].mxu0  ;;  %v2588_v42 = vpop.f32.mrb[44].mxu1 }
 0xb9d   :  { %v2599_v43 = vrot.slane %v2547_v41, 4  ;;  %v2549_v40 = vpop.f32.mrb[45].mxu0  ;;  %v2590_v44 = vpop.f32.mrb[45].mxu1  ;;  %v2601_v28 = vrot.slane %v2588_v42, 4 }
 0xb9e   :  { %v2600_v35 = vrot.slane %v2549_v40, 4  ;;  %v2551_v56 = vpop.f32.mrb[46].mxu0  ;;  %v2592_v58 = vpop.f32.mrb[46].mxu1  ;;  %v2602_v24 = vrot.slane %v2590_v44, 4 }
 0xb9f   :  { %v2607_v4 = vadd.f32 %v2599_v43, %v2505_v30  ;;  %v2552_v5 = vpop.f32.mrb[47].mxu0  ;;  %v2593_v34 = vpop.f32.mrb[47].mxu1  ;;  %v2609_v32 = vadd.f32 %v2601_v28, %v2507_v13  ;;  %v2631_v43 = vrot.slane %v5708_v18, 6  ;;  %v2638_v18 = vld [vmem:[#allocation2] sm:$0x8] }
 0xba0   :  { %v2608_v7 = vadd.f32 %v2600_v35, %v2506_v49  ;;  %v2610_v27 = vadd.f32 %v2602_v24, %v2508_v25 }
 0xba1   :  { %v3780_v36 = vmul.f32 -1.442695, %v2607_v4 }
 0xba2   :  { %v3781_v10 = vmul.f32 -1.442695, %v2608_v7  ;;  %v3782_v31 = vmul.f32 -1.442695, %v2610_v27  ;;  %v2639_v7 = vld [vmem:[#allocation2 + $0x8] sm:$0x8] }
 0xba3   :  { %4328 = vpow2.f32 %v3780_v36  ;;  %v2643_v27 = vunpack.c.l.bf16 %v2639_v7 }
 0xba4   :  { %4330 = vpow2.f32 %v3781_v10  ;;  %v2642_v10 = vunpack.c.l.bf16 %v2638_v18 }
 0xba5   :  { %4332 = vpow2.f32 %v3782_v31 }
 0xba6   :  { %4334 = vtanh.f32 %v2609_v32 }
 0xbad   :  { %v4329_v38 = vpop.eup %4328 }
 0xbae   :  { %v4331_v29 = vpop.eup %4330  ;;  %v2614_v39 = vadd.f32 1.0, %v4329_v38 }
 0xbaf   :  { %v2620_v59 = vadd.f32 1.0, %v4331_v29  ;;  %v4333_v22 = vpop.eup %4332 }
 0xbb0   :  { %4336 = vrcp.f32 %v2614_v39  ;;  %v4335_v41 = vpop.eup %4334  ;;  %v2627_v49 = vadd.f32 1.0, %v4333_v22 }
 0xbb1   :  { %4338 = vrcp.f32 %v2620_v59 }
 0xbb2   :  { %4340 = vrcp.f32 %v2627_v49 }
 0xbba   :  { %v4337_v30 = vpop.eup %4336 }
 0xbbb   :  { %v4339_v40 = vpop.eup %4338  ;;  %v2634_v44 = vmul.f32 %v4337_v30, %v4335_v41  ;;  %v2640_v30 = vld [vmem:[#allocation2 + $0x10] sm:$0x8] }
 0xbbc   :  { %v2633_v42 = vmul.f32 %v4339_v40, %v2631_v43  ;;  %v4341_v56 = vpop.eup %4340 }
 0xbbe   :  { %v5746_v35 = vadd.f32 %v2634_v44, %v2633_v42  ;;  %v2644_v44 = vunpack.c.l.bf16 %v2640_v30 }
 0xbc0   :  { %4342 = vtanh.f32 %v5746_v35 }
 0xbca   :  { %v4343_v58 = vpop.eup %4342 }
 0xbcb   :  { %v2637_v4 = vmul.f32 %v4343_v58, %v4341_v56 }
 0xbcd   :  { %v2646_v5 = vpack.c.bf16 %v2637_v4, %v2637_v4 }
 0xbcf   :  { %v2648_v34 = vrot.slane %v2646_v5, 2 }
 0xbd1   :  { %2683 = vmatmul.mubr.bf16.vlgmr.msra.gmra.mrb[48].mxu0 %v2648_v34  ;;  %2724 = vmatmul.mubr.bf16.vlgmr.msra.gmra.mrb[48].mxu1 %v2648_v34 }
 0xbd2   :  { %2800 = vmatpush1.bf16.msra.mxu0 %v5450_v45  ;;  %2841 = vmatpush1.bf16.msra.mxu1 %v5455_v46 }
 0xbd3   :  { %2801 = vmatprep.subr.bf16.mxu0 %v5460_v48  ;;  %2842 = vmatprep.subr.bf16.mxu1 %v5465_v47 }
 0xbd4   :  { %2831 = vmatprep.mubr.bf16.mxu0 %v4514_v2  ;;  %2872 = vmatprep.mubr.bf16.mxu1 %v4514_v2 }
 0xbd6   :  { %2802 = vmatpush1.bf16.msra.mxu0 %v5472_v62  ;;  %2843 = vmatpush1.bf16.msra.mxu1 %v5477_v54 }
 0xbd7   :  { %2803 = vmatprep.subr.bf16.mxu0 %v5484_v55  ;;  %2844 = vmatprep.subr.bf16.mxu1 %v5489_v57 }
 0xbda   :  { %2804 = vmatpush1.bf16.msra.mxu0 %v5498_v53  ;;  %2845 = vmatpush1.bf16.msra.mxu1 %v5503_v63 }
 0xbdb   :  { %2805 = vmatprep.subr.bf16.mxu0 %v5510_v60  ;;  %2846 = vmatprep.subr.bf16.mxu1 %v5515_v33 }
 0xbde   :  { %2806 = vmatpush1.bf16.msra.mxu0 %v5522_v61  ;;  %2847 = vmatpush1.bf16.msra.mxu1 %v5527_v1 }
 0xbdf   :  { %2807 = vmatprep.subr.bf16.mxu0 %v5534_v9  ;;  %2848 = vmatprep.subr.bf16.mxu1 %v5539_v50 }
 0xbe2   :  { %2808 = vmatpush1.bf16.msra.mxu0 %v5546_v8  ;;  %2849 = vmatpush1.bf16.msra.mxu1 %v5551_v51 }
 0xbe3   :  { %2809 = vmatprep.subr.bf16.mxu0 %v5558_v0  ;;  %2850 = vmatprep.subr.bf16.mxu1 %v5563_v52 }
 0xbe6   :  { %2810 = vmatpush1.bf16.msra.mxu0 %v5570_v6  ;;  %2851 = vmatpush1.bf16.msra.mxu1 %v5575_v14 }
 0xbe7   :  { %2811 = vmatprep.subr.bf16.mxu0 %v5582_v37  ;;  %2852 = vmatprep.subr.bf16.mxu1 %v5587_v15 }
 0xbea   :  { %2812 = vmatpush1.bf16.msra.mxu0 %v5594_v16  ;;  %2853 = vmatpush1.bf16.msra.mxu1 %v5599_v17 }
 0xbeb   :  { %2813 = vmatprep.subr.bf16.mxu0 %v5606_v11  ;;  %2854 = vmatprep.subr.bf16.mxu1 %v5611_v23 }
 0xbee   :  { %2814 = vmatpush1.bf16.msra.mxu0 %v5618_v20  ;;  %2855 = vmatpush1.bf16.msra.mxu1 %v5623_v21 }
 0xbef   :  { %2933 = vmatprep.subr.bf16.mxu0 %v5423_v12  ;;  %2974 = vmatprep.subr.bf16.mxu1 %v5428_v19  ;;  %v2641_v12 = vld [vmem:[#allocation2 + $0x18] sm:$0x8] }
 0xbf0   :  { %v2645_v41 = vunpack.c.l.bf16 %v2641_v12 }
 0xca4   :  { %v2684_v36 = vpop.f32.mrb[48].mxu0  ;;  %v2725_v3 = vpop.f32.mrb[48].mxu1 }
 0xca5   :  { %v2736_v24 = vrot.slane %v2684_v36, 2  ;;  %v2686_v25 = vpop.f32.mrb[49].mxu0  ;;  %v2727_v26 = vpop.f32.mrb[49].mxu1  ;;  %v2738_v40 = vrot.slane %v2725_v3, 2  ;;  %v2768_v36 = vrot.slane %v5746_v35, 6 }
 0xca6   :  { %v2737_v28 = vrot.slane %v2686_v25, 2  ;;  %v2688_v13 = vpop.f32.mrb[50].mxu0  ;;  %v2729_v31 = vpop.f32.mrb[50].mxu1  ;;  %v2739_v19 = vrot.slane %v2727_v26, 2 }
 0xca7   :  { %v2744_v32 = vadd.f32 %v2736_v24, %v2642_v10  ;;  %v2689_v38 = vpop.f32.mrb[51].mxu0  ;;  %v2730_v29 = vpop.f32.mrb[51].mxu1  ;;  %v2746_v42 = vadd.f32 %v2738_v40, %v2644_v44 }
 0xca8   :  { %v2745_v39 = vadd.f32 %v2737_v28, %v2643_v27  ;;  %v2747_v43 = vadd.f32 %v2739_v19, %v2645_v41 }
 0xca9   :  { %v3783_v59 = vmul.f32 -1.442695, %v2744_v32 }
 0xcaa   :  { %v3784_v22 = vmul.f32 -1.442695, %v2745_v39  ;;  %v3785_v49 = vmul.f32 -1.442695, %v2747_v43 }
 0xcab   :  { %4344 = vpow2.f32 %v3783_v59 }
 0xcac   :  { %4346 = vpow2.f32 %v3784_v22 }
 0xcad   :  { %4348 = vpow2.f32 %v3785_v49 }
 0xcae   :  { %4350 = vtanh.f32 %v2746_v42 }
 0xcb5   :  { %v4345_v56 = vpop.eup %4344 }
 0xcb6   :  { %v4347_v58 = vpop.eup %4346  ;;  %v2751_v4 = vadd.f32 1.0, %v4345_v56 }
 0xcb7   :  { %v2757_v5 = vadd.f32 1.0, %v4347_v58  ;;  %v4349_v34 = vpop.eup %4348  ;;  %v5838_v58 = vld [vmem:[%s6156_s3] ss:$16 sps:$4 sm:$0xff]  }
 0xcb8   :  { %4352 = vrcp.f32 %v2751_v4  ;;  %v4351_v18 = vpop.eup %4350  ;;  %v2764_v25 = vadd.f32 1.0, %v4349_v34  ;;  %v5844_v4 = vld [vmem:[%s6156_s3 + $0x8] ss:$16 sps:$4 sm:$0xff]   ;;  %v5856_v34 = vld [vmem:[%s6156_s3 + $0x2c] ss:$16 sps:$4 sm:$0xff]  }
 0xcb9   :  { %4354 = vrcp.f32 %v2757_v5  ;;  %v5850_v5 = vld [vmem:[%s6156_s3 + $0x24] ss:$16 sps:$4 sm:$0xff]  }
 0xcba   :  { %4356 = vrcp.f32 %v2764_v25  ;;  %v5894_v25 = vld [vmem:[%s6156_s3 + $0x48] ss:$16 sps:$4 sm:$0xff]  }
 0xcc2   :  { %v4353_v7 = vpop.eup %4352 }
 0xcc3   :  { %v4355_v10 = vpop.eup %4354  ;;  %v2771_v24 = vmul.f32 %v4353_v7, %v4351_v18  ;;  %v5864_v18 = vld [vmem:[%s6156_s3 + $0x20] ss:$16 sps:$4 sm:$0xff]   ;;  %v5870_v7 = vld [vmem:[%s6156_s3 + $0x28] ss:$16 sps:$4 sm:$0xff]  }
 0xcc4   :  { %v2770_v3 = vmul.f32 %v4355_v10, %v2768_v36  ;;  %v4357_v27 = vpop.eup %4356  ;;  %v5876_v36 = vld [vmem:[%s6156_s3 + $0x44] ss:$16 sps:$4 sm:$0xff]   ;;  %v5882_v10 = vld [vmem:[%s6156_s3 + $0x4c] ss:$16 sps:$4 sm:$0xff]  }
 0xcc6   :  { %v5784_v26 = vadd.f32 %v2771_v24, %v2770_v3  ;;  %v5888_v24 = vld [vmem:[%s6156_s3 + $0x40] ss:$16 sps:$4 sm:$0xff]   ;;  %v5900_v3 = vld [vmem:[%s6156_s3 + $0x64] ss:$16 sps:$4 sm:$0xff]  }
 0xcc8   :  { %4358 = vtanh.f32 %v5784_v26  ;;  %v2905_v22 = vrot.slane %v5784_v26, 6  ;;  %v5906_v26 = vld [vmem:[%s6156_s3 + $0x6c] ss:$16 sps:$4 sm:$0xff]  }
 0xcd2   :  { %v4359_v28 = vpop.eup %4358 }
 0xcd3   :  { %v2774_v13 = vmul.f32 %v4359_v28, %v4357_v27  ;;  %v5912_v27 = vld [vmem:[%s6156_s3 + $0x60] ss:$16 sps:$4 sm:$0xff]   ;;  %v5918_v28 = vld [vmem:[%s6156_s3 + $0x68] ss:$16 sps:$4 sm:$0xff]  }
 0xcd5   :  { %v2795_v31 = vpack.c.bf16 %v2774_v13, %v2774_v13  ;;  %v5924_v13 = vld [vmem:[%s6156_s3 + $0x84] ss:$16 sps:$4 sm:$0xff]  }
 0xcd7   :  { %v2797_v32 = vrot.slane %v2795_v31, 3  ;;  %v5930_v31 = vld [vmem:[%s6156_s3 + $0x8c] ss:$16 sps:$4 sm:$0xff]  }
 0xcd9   :  { %2832 = vmatmul.mubr.bf16.vlgmr.msra.gmra.mrb[52].mxu0 %v2797_v32  ;;  %2873 = vmatmul.mubr.bf16.vlgmr.msra.gmra.mrb[52].mxu1 %v2797_v32  ;;  %v5936_v32 = vld [vmem:[%s6156_s3 + $0x80] ss:$16 sps:$4 sm:$0xff]  }
 0xcda   :  { %2934 = vmatpush1.bf16.msra.mxu0 %v5450_v45  ;;  %2975 = vmatpush1.bf16.msra.mxu1 %v5455_v46  ;;  %v5822_v45 = vld [vmem:[%s6156_s3 + $0x4] ss:$16 sps:$4 sm:$0xff]   ;;  %v5828_v46 = vld [vmem:[%s6156_s3 + $0xc] ss:$16 sps:$4 sm:$0xff]  }
 0xcdb   :  { %2935 = vmatprep.subr.bf16.mxu0 %v5460_v48  ;;  %2976 = vmatprep.subr.bf16.mxu1 %v5465_v47  ;;  %v2775_v48 = vld [vmem:[#allocation2] sm:$0x10]  ;;  %v2776_v47 = vld [vmem:[#allocation2 + $0x8] sm:$0x10] }
 0xcdc   :  { %2965 = vmatprep.mubr.bf16.mxu0 %v4514_v2  ;;  %3006 = vmatprep.mubr.bf16.mxu1 %v4514_v2 }
 0xcde   :  { %2936 = vmatpush1.bf16.msra.mxu0 %v5472_v62  ;;  %2977 = vmatpush1.bf16.msra.mxu1 %v5477_v54  ;;  %v2783_v62 = vrot.slane %v2775_v48, 4  ;;  %v2784_v54 = vrot.slane %v2776_v47, 4  ;;  %v5942_v48 = vld [vmem:[%s6156_s3 + $0x88] ss:$16 sps:$4 sm:$0xff]   ;;  %v5948_v47 = vld [vmem:[%s6156_s3 + $0xa4] ss:$16 sps:$4 sm:$0xff]  }
 0xcdf   :  { %2937 = vmatprep.subr.bf16.mxu0 %v5484_v55  ;;  %2978 = vmatprep.subr.bf16.mxu1 %v5489_v57  ;;  %v2778_v57 = vld [vmem:[#allocation2 + $0x18] sm:$0x10] }
 0xce0   :  { %v2791_v55 = vunpack.c.l.bf16 %v2783_v62  ;;  %v5954_v62 = vld [vmem:[%s6156_s3 + $0xac] ss:$16 sps:$4 sm:$0xff]  }
 0xce2   :  { %2938 = vmatpush1.bf16.msra.mxu0 %v5498_v53  ;;  %2979 = vmatpush1.bf16.msra.mxu1 %v5503_v63 }
 0xce3   :  { %2939 = vmatprep.subr.bf16.mxu0 %v5510_v60  ;;  %2980 = vmatprep.subr.bf16.mxu1 %v5515_v33  ;;  %v2792_v60 = vunpack.c.l.bf16 %v2784_v54  ;;  %v5960_v54 = vld [vmem:[%s6156_s3 + $0xa0] ss:$16 sps:$4 sm:$0xff]  }
 0xce6   :  { %2940 = vmatpush1.bf16.msra.mxu0 %v5522_v61  ;;  %2981 = vmatpush1.bf16.msra.mxu1 %v5527_v1 }
 0xce7   :  { %2941 = vmatprep.subr.bf16.mxu0 %v5534_v9  ;;  %2982 = vmatprep.subr.bf16.mxu1 %v5539_v50  ;;  %v2786_v50 = vrot.slane %v2778_v57, 4  ;;  %v5972_v57 = vld [vmem:[%s6156_s3 + $0xc4] ss:$16 sps:$4 sm:$0xff]  }
 0xcea   :  { %2942 = vmatpush1.bf16.msra.mxu0 %v5546_v8  ;;  %2983 = vmatpush1.bf16.msra.mxu1 %v5551_v51 }
 0xceb   :  { %2943 = vmatprep.subr.bf16.mxu0 %v5558_v0  ;;  %2984 = vmatprep.subr.bf16.mxu1 %v5563_v52 }
 0xcee   :  { %2944 = vmatpush1.bf16.msra.mxu0 %v5570_v6  ;;  %2985 = vmatpush1.bf16.msra.mxu1 %v5575_v14  ;;  %v2777_v14 = vld [vmem:[#allocation2 + $0x10] sm:$0x10] }
 0xcef   :  { %2945 = vmatprep.subr.bf16.mxu0 %v5582_v37  ;;  %2986 = vmatprep.subr.bf16.mxu1 %v5587_v15  ;;  %v2794_v15 = vunpack.c.l.bf16 %v2786_v50  ;;  %v2912_v50 = vld [vmem:[#allocation2] sm:$0x20] }
 0xcf2   :  { %2946 = vmatpush1.bf16.msra.mxu0 %v5594_v16  ;;  %2987 = vmatpush1.bf16.msra.mxu1 %v5599_v17  ;;  %v2785_v16 = vrot.slane %v2777_v14, 4 }
 0xcf3   :  { %2947 = vmatprep.subr.bf16.mxu0 %v5606_v11  ;;  %2988 = vmatprep.subr.bf16.mxu1 %v5611_v23 }
 0xcf4   :  { %v2793_v11 = vunpack.c.l.bf16 %v2785_v16  ;;  %v2915_v16 = vld [vmem:[#allocation2 + $0x18] sm:$0x20] }
 0xcf6   :  { %2948 = vmatpush1.bf16.msra.mxu0 %v5618_v20  ;;  %2989 = vmatpush1.bf16.msra.mxu1 %v5623_v21 }
 0xcf7   :  { %3082 = vmatprep.subr.bf16.mxu0 %v5822_v45  ;;  %3123 = vmatprep.subr.bf16.mxu1 %v5828_v46 }
 0xdac   :  { %v2833_v53 = vpop.f32.mrb[52].mxu0  ;;  %v2874_v63 = vpop.f32.mrb[52].mxu1 }
 0xdad   :  { %v2881_v33 = vadd.f32 %v2833_v53, %v2791_v55  ;;  %v2835_v61 = vpop.f32.mrb[53].mxu0  ;;  %v2876_v1 = vpop.f32.mrb[53].mxu1  ;;  %v2883_v20 = vadd.f32 %v2874_v63, %v2793_v11  ;;  %v5966_v55 = vld [vmem:[%s6156_s3 + $0xa8] ss:$16 sps:$4 sm:$0xff]   ;;  %v5978_v53 = vld [vmem:[%s6156_s3 + $0xcc] ss:$16 sps:$4 sm:$0xff]  }
 0xdae   :  { %v2882_v9 = vadd.f32 %v2835_v61, %v2792_v60  ;;  %v2837_v8 = vpop.f32.mrb[54].mxu0  ;;  %v2878_v51 = vpop.f32.mrb[54].mxu1  ;;  %v2884_v17 = vadd.f32 %v2876_v1, %v2794_v15  ;;  %v5984_v63 = vld [vmem:[%s6156_s3 + $0xc0] ss:$16 sps:$4 sm:$0xff]   ;;  %v5990_v60 = vld [vmem:[%s6156_s3 + $0xc8] ss:$16 sps:$4 sm:$0xff]  }
 0xdaf   :  { %v3786_v0 = vmul.f32 -1.442695, %v2881_v33  ;;  %v2838_v52 = vpop.f32.mrb[55].mxu0  ;;  %v2879_v6 = vpop.f32.mrb[55].mxu1  ;;  %v5996_v33 = vld [vmem:[%s6156_s3 + $0xe4] ss:$16 sps:$4 sm:$0xff]  }
 0xdb0   :  { %v3787_v37 = vmul.f32 -1.442695, %v2882_v9  ;;  %v3788_v23 = vmul.f32 -1.442695, %v2884_v17  ;;  %v6002_v61 = vld [vmem:[%s6156_s3 + $0xec] ss:$16 sps:$4 sm:$0xff]  }
 0xdb1   :  { %4360 = vpow2.f32 %v3786_v0  ;;  %v6008_v1 = vld [vmem:[%s6156_s3 + $0xe0] ss:$16 sps:$4 sm:$0xff]   ;;  %v6014_v9 = vld [vmem:[%s6156_s3 + $0xe8] ss:$16 sps:$4 sm:$0xff]   ;;  %v2913_v8 = vld [vmem:[#allocation2 + $0x8] sm:$0x20] }
 0xdb2   :  { %4362 = vpow2.f32 %v3787_v37  ;;  %v2920_v51 = vrot.slane %v2912_v50, 4  ;;  %v2921_v0 = vrot.slane %v2913_v8, 4 }
 0xdb3   :  { %4364 = vpow2.f32 %v3788_v23 }
 0xdb4   :  { %4366 = vtanh.f32 %v2883_v20  ;;  %v2928_v14 = vunpack.c.l.bf16 %v2920_v51  ;;  %v2929_v11 = vunpack.c.l.bf16 %v2921_v0 }
 0xdbb   :  { %v4361_v21 = vpop.eup %4360 }
 0xdbc   :  { %v4363_v35 = vpop.eup %4362  ;;  %v2888_v38 = vadd.f32 1.0, %v4361_v21 }
 0xdbd   :  { %v2894_v29 = vadd.f32 1.0, %v4363_v35  ;;  %v4365_v39 = vpop.eup %4364 }
 0xdbe   :  { %4368 = vrcp.f32 %v2888_v38  ;;  %v4367_v59 = vpop.eup %4366  ;;  %v2901_v30 = vadd.f32 1.0, %v4365_v39 }
 0xdbf   :  { %4370 = vrcp.f32 %v2894_v29 }
 0xdc0   :  { %4372 = vrcp.f32 %v2901_v30 }
 0xdc8   :  { %v4369_v12 = vpop.eup %4368 }
 0xdc9   :  { %v4371_v19 = vpop.eup %4370  ;;  %v2908_v41 = vmul.f32 %v4369_v12, %v4367_v59  ;;  %v2914_v59 = vld [vmem:[#allocation2 + $0x10] sm:$0x20] }
 0xdca   :  { %v2907_v43 = vmul.f32 %v4371_v19, %v2905_v22  ;;  %v4373_v44 = vpop.eup %4372 }
 0xdcc   :  { %v5832_v40 = vadd.f32 %v2908_v41, %v2907_v43  ;;  %v2922_v41 = vrot.slane %v2914_v59, 4 }
 0xdce   :  { %4374 = vtanh.f32 %v5832_v40 }
 0xdd8   :  { %v4375_v49 = vpop.eup %4374 }
 0xdd9   :  { %v2911_v42 = vmul.f32 %v4375_v49, %v4373_v44  ;;  %v2930_v44 = vunpack.c.l.bf16 %v2922_v41 }
 0xddb   :  { %v2932_v56 = vpack.c.bf16 %v2911_v42, %v2911_v42 }
 0xddd   :  { %2966 = vmatmul.mubr.bf16.vlgmr.msra.gmra.mrb[56].mxu0 %v2932_v56  ;;  %3007 = vmatmul.mubr.bf16.vlgmr.msra.gmra.mrb[56].mxu1 %v2932_v56 }
 0xdde   :  { %3083 = vmatpush1.bf16.msra.mxu0 %v5838_v58  ;;  %3124 = vmatpush1.bf16.msra.mxu1 %v5844_v4 }
 0xddf   :  { %3084 = vmatprep.subr.bf16.mxu0 %v5850_v5  ;;  %3125 = vmatprep.subr.bf16.mxu1 %v5856_v34 }
 0xde0   :  { %3114 = vmatprep.mubr.bf16.mxu0 %v4514_v2  ;;  %3155 = vmatprep.mubr.bf16.mxu1 %v4514_v2 }
 0xde2   :  { %3085 = vmatpush1.bf16.msra.mxu0 %v5864_v18  ;;  %3126 = vmatpush1.bf16.msra.mxu1 %v5870_v7 }
 0xde3   :  { %3086 = vmatprep.subr.bf16.mxu0 %v5876_v36  ;;  %3127 = vmatprep.subr.bf16.mxu1 %v5882_v10 }
 0xde6   :  { %3087 = vmatpush1.bf16.msra.mxu0 %v5888_v24  ;;  %3128 = vmatpush1.bf16.msra.mxu1 %v5894_v25 }
 0xde7   :  { %3088 = vmatprep.subr.bf16.mxu0 %v5900_v3  ;;  %3129 = vmatprep.subr.bf16.mxu1 %v5906_v26 }
 0xdea   :  { %3089 = vmatpush1.bf16.msra.mxu0 %v5912_v27  ;;  %3130 = vmatpush1.bf16.msra.mxu1 %v5918_v28 }
 0xdeb   :  { %3090 = vmatprep.subr.bf16.mxu0 %v5924_v13  ;;  %3131 = vmatprep.subr.bf16.mxu1 %v5930_v31 }
 0xdee   :  { %3091 = vmatpush1.bf16.msra.mxu0 %v5936_v32  ;;  %3132 = vmatpush1.bf16.msra.mxu1 %v5942_v48 }
 0xdef   :  { %3092 = vmatprep.subr.bf16.mxu0 %v5948_v47  ;;  %3133 = vmatprep.subr.bf16.mxu1 %v5954_v62 }
 0xdf2   :  { %3093 = vmatpush1.bf16.msra.mxu0 %v5960_v54  ;;  %3134 = vmatpush1.bf16.msra.mxu1 %v5966_v55 }
 0xdf3   :  { %3094 = vmatprep.subr.bf16.mxu0 %v5972_v57  ;;  %3135 = vmatprep.subr.bf16.mxu1 %v5978_v53 }
 0xdf6   :  { %3095 = vmatpush1.bf16.msra.mxu0 %v5984_v63  ;;  %3136 = vmatpush1.bf16.msra.mxu1 %v5990_v60 }
 0xdf7   :  { %3096 = vmatprep.subr.bf16.mxu0 %v5996_v33  ;;  %3137 = vmatprep.subr.bf16.mxu1 %v6002_v61 }
 0xdfa   :  { %3097 = vmatpush1.bf16.msra.mxu0 %v6008_v1  ;;  %3138 = vmatpush1.bf16.msra.mxu1 %v6014_v9 }
 0xdfb   :  { %3231 = vmatprep.subr.bf16.mxu0 %v5822_v45  ;;  %3272 = vmatprep.subr.bf16.mxu1 %v5828_v46  ;;  %v2923_v46 = vrot.slane %v2915_v16, 4 }
 0xdfd   :  { %v2931_v19 = vunpack.c.l.bf16 %v2923_v46 }
 0xeb0   :  { %v2967_v52 = vpop.f32.mrb[56].mxu0  ;;  %v3008_v6 = vpop.f32.mrb[56].mxu1 }
 0xeb1   :  { %v3019_v37 = vrot.slane %v2967_v52, 6  ;;  %v2969_v15 = vpop.f32.mrb[57].mxu0  ;;  %v3010_v17 = vpop.f32.mrb[57].mxu1  ;;  %v3021_v43 = vrot.slane %v3008_v6, 6 }
 0xeb2   :  { %v3020_v23 = vrot.slane %v2969_v15, 6  ;;  %v2971_v20 = vpop.f32.mrb[58].mxu0  ;;  %v3012_v21 = vpop.f32.mrb[58].mxu1  ;;  %v3022_v22 = vrot.slane %v3010_v17, 6 }
 0xeb3   :  { %v3027_v35 = vadd.f32 %v3019_v37, %v2928_v14  ;;  %v2972_v38 = vpop.f32.mrb[59].mxu0  ;;  %v3013_v45 = vpop.f32.mrb[59].mxu1  ;;  %v3029_v42 = vadd.f32 %v3021_v43, %v2930_v44  ;;  %v3051_v37 = vrot.slane %v5832_v40, 6  ;;  %v3059_v40 = vld [vmem:[#allocation2 + $0x8] sm:$0x40] }
 0xeb4   :  { %v3028_v29 = vadd.f32 %v3020_v23, %v2929_v11  ;;  %v3030_v30 = vadd.f32 %v3022_v22, %v2931_v19 }
 0xeb5   :  { %v3789_v39 = vmul.f32 -1.442695, %v3027_v35 }
 0xeb6   :  { %v3790_v12 = vmul.f32 -1.442695, %v3028_v29  ;;  %v3791_v49 = vmul.f32 -1.442695, %v3030_v30 }
 0xeb7   :  { %4376 = vpow2.f32 %v3789_v39 }
 0xeb8   :  { %4378 = vpow2.f32 %v3790_v12 }
 0xeb9   :  { %4380 = vpow2.f32 %v3791_v49 }
 0xeba   :  { %4382 = vtanh.f32 %v3029_v42 }
 0xec1   :  { %v4377_v56 = vpop.eup %4376 }
 0xec2   :  { %v4379_v50 = vpop.eup %4378  ;;  %v3034_v8 = vadd.f32 1.0, %v4377_v56 }
 0xec3   :  { %v3040_v51 = vadd.f32 1.0, %v4379_v50  ;;  %v4381_v0 = vpop.eup %4380 }
 0xec4   :  { %4384 = vrcp.f32 %v3034_v8  ;;  %v4383_v52 = vpop.eup %4382  ;;  %v3047_v17 = vadd.f32 1.0, %v4381_v0  ;;  %v4515_v0 = vmov 0.0  }
 0xec5   :  { %4386 = vrcp.f32 %v3040_v51  ;;  %v4024_v51 = vld [vmem:[%s6158_s5] sm:$0xff]  }
 0xec6   :  { %4388 = vrcp.f32 %v3047_v17  ;;  %v4030_v17 = vld [vmem:[%s6158_s5 + $0x30] sm:$0xff]  }
 0xece   :  { %v4385_v14 = vpop.eup %4384 }
 0xecf   :  { %v4387_v15 = vpop.eup %4386  ;;  %v3054_v16 = vmul.f32 %v4385_v14, %v4383_v52  ;;  %v4025_v52 = vld [vmem:[%s6158_s5 + $0x8] sm:$0xff]   ;;  %v4026_v14 = vld [vmem:[%s6158_s5 + $0x10] sm:$0xff]  }
 0xed0   :  { %v3053_v6 = vmul.f32 %v4387_v15, %v3051_v37  ;;  %v4389_v23 = vpop.eup %4388  ;;  %v4027_v37 = vld [vmem:[%s6158_s5 + $0x18] sm:$0xff]   ;;  %v4028_v15 = vld [vmem:[%s6158_s5 + $0x20] sm:$0xff]  }
 0xed2   :  { %v6020_v11 = vadd.f32 %v3054_v16, %v3053_v6  ;;  %v4029_v16 = vld [vmem:[%s6158_s5 + $0x28] sm:$0xff]   ;;  %v4032_v6 = vld [vmem:[%s6160_s7] sm:$0xff]  }
 0xed4   :  { %4390 = vtanh.f32 %v6020_v11  ;;  %v3200_v22 = vrot.slane %v6020_v11, 6  ;;  %v4033_v11 = vld [vmem:[%s6160_s7 + $0x8] sm:$0xff]  }
 0xede   :  { %v4391_v20 = vpop.eup %4390 }
 0xedf   :  { %v3057_v21 = vmul.f32 %v4391_v20, %v4389_v23  ;;  %v4031_v23 = vld [vmem:[%s6158_s5 + $0x38] sm:$0xff]   ;;  %v4034_v20 = vld [vmem:[%s6160_s7 + $0x10] sm:$0xff]  }
 0xee1   :  { %v3078_v35 = vpack.c.bf16 %v3057_v21, %v3057_v21  ;;  %v4035_v21 = vld [vmem:[%s6160_s7 + $0x18] sm:$0xff]  }
 0xee3   :  { %v3080_v38 = vrot.slane %v3078_v35, 1  ;;  %v4036_v35 = vld [vmem:[%s6160_s7 + $0x20] sm:$0xff]  }
 0xee5   :  { %3115 = vmatmul.mubr.bf16.vlgmr.msra.gmra.mrb[60].mxu0 %v3080_v38  ;;  %3156 = vmatmul.mubr.bf16.vlgmr.msra.gmra.mrb[60].mxu1 %v3080_v38  ;;  %v4037_v38 = vld [vmem:[%s6160_s7 + $0x28] sm:$0xff]  }
 0xee6   :  { %3232 = vmatpush1.bf16.msra.mxu0 %v5838_v58  ;;  %3273 = vmatpush1.bf16.msra.mxu1 %v5844_v4  ;;  %v3067_v4 = vrot.slane %v3059_v40, 4  ;;  %v3208_v40 = vld [vmem:[#allocation2 + $0x8] sm:$0x80] }
 0xee7   :  { %3233 = vmatprep.subr.bf16.mxu0 %v5850_v5  ;;  %3274 = vmatprep.subr.bf16.mxu1 %v5856_v34 }
 0xee8   :  { %3263 = vmatprep.mubr.bf16.mxu0 %v4514_v2  ;;  %3304 = vmatprep.mubr.bf16.mxu1 %v4514_v2  ;;  %v3058_v2 = vld [vmem:[#allocation2] sm:$0x40] }
 0xee9   :  { %v3066_v58 = vrot.slane %v3058_v2, 4  ;;  %v3207_v2 = vld [vmem:[#allocation2] sm:$0x80] }
 0xeea   :  { %3234 = vmatpush1.bf16.msra.mxu0 %v5864_v18  ;;  %3275 = vmatpush1.bf16.msra.mxu1 %v5870_v7 }
 0xeeb   :  { %3235 = vmatprep.subr.bf16.mxu0 %v5876_v36  ;;  %3276 = vmatprep.subr.bf16.mxu1 %v5882_v10  ;;  %v3074_v18 = vunpack.c.l.bf16 %v3066_v58  ;;  %v3061_v10 = vld [vmem:[#allocation2 + $0x18] sm:$0x40]  ;;  %v3215_v58 = vrot.slane %v3207_v2, 4 }
 0xeee   :  { %3236 = vmatpush1.bf16.msra.mxu0 %v5888_v24  ;;  %3277 = vmatpush1.bf16.msra.mxu1 %v5894_v25  ;;  %v3075_v25 = vunpack.c.l.bf16 %v3067_v4  ;;  %v3216_v4 = vrot.slane %v3208_v40, 4 }
 0xeef   :  { %3237 = vmatprep.subr.bf16.mxu0 %v5900_v3  ;;  %3278 = vmatprep.subr.bf16.mxu1 %v5906_v26 }
 0xef2   :  { %3238 = vmatpush1.bf16.msra.mxu0 %v5912_v27  ;;  %3279 = vmatpush1.bf16.msra.mxu1 %v5918_v28 }
 0xef3   :  { %3239 = vmatprep.subr.bf16.mxu0 %v5924_v13  ;;  %3280 = vmatprep.subr.bf16.mxu1 %v5930_v31 }
 0xef6   :  { %3240 = vmatpush1.bf16.msra.mxu0 %v5936_v32  ;;  %3281 = vmatpush1.bf16.msra.mxu1 %v5942_v48  ;;  %v3069_v48 = vrot.slane %v3061_v10, 4  ;;  %v3210_v10 = vld [vmem:[#allocation2 + $0x18] sm:$0x80] }
 0xef7   :  { %3241 = vmatprep.subr.bf16.mxu0 %v5948_v47  ;;  %3282 = vmatprep.subr.bf16.mxu1 %v5954_v62  ;;  %v3060_v62 = vld [vmem:[#allocation2 + $0x10] sm:$0x40] }
 0xefa   :  { %3242 = vmatpush1.bf16.msra.mxu0 %v5960_v54  ;;  %3283 = vmatpush1.bf16.msra.mxu1 %v5966_v55 }
 0xefb   :  { %3243 = vmatprep.subr.bf16.mxu0 %v5972_v57  ;;  %3284 = vmatprep.subr.bf16.mxu1 %v5978_v53  ;;  %v3077_v57 = vunpack.c.l.bf16 %v3069_v48  ;;  %v3068_v53 = vrot.slane %v3060_v62, 4  ;;  %v3218_v48 = vrot.slane %v3210_v10, 4  ;;  %v3209_v62 = vld [vmem:[#allocation2 + $0x10] sm:$0x80] }
 0xefe   :  { %3244 = vmatpush1.bf16.msra.mxu0 %v5984_v63  ;;  %3285 = vmatpush1.bf16.msra.mxu1 %v5990_v60 }
 0xeff   :  { %3245 = vmatprep.subr.bf16.mxu0 %v5996_v33  ;;  %3286 = vmatprep.subr.bf16.mxu1 %v6002_v61  ;;  %v3076_v33 = vunpack.c.l.bf16 %v3068_v53  ;;  %v3217_v53 = vrot.slane %v3209_v62, 4 }
 0xf02   :  { %3246 = vmatpush1.bf16.msra.mxu0 %v6008_v1  ;;  %3287 = vmatpush1.bf16.msra.mxu1 %v6014_v9 }
 0xf03   :  { %3836 = vmatprep.subr.bf16.mxu0 %v4515_v0  ;;  %3856 = vmatprep.subr.bf16.mxu1 %v4515_v0 }
 0xfb8   :  { %v3116_v5 = vpop.f32.mrb[60].mxu0  ;;  %v3157_v34 = vpop.f32.mrb[60].mxu1 }
 0xfb9   :  { %v3168_v7 = vrot.slane %v3116_v5, 4  ;;  %v3118_v36 = vpop.f32.mrb[61].mxu0  ;;  %v3159_v24 = vpop.f32.mrb[61].mxu1  ;;  %v3170_v60 = vrot.slane %v3157_v34, 4 }
 0xfba   :  { %v3169_v3 = vrot.slane %v3118_v36, 4  ;;  %v3120_v26 = vpop.f32.mrb[62].mxu0  ;;  %v3161_v27 = vpop.f32.mrb[62].mxu1  ;;  %v3171_v55 = vrot.slane %v3159_v24, 4 }
 0xfbb   :  { %v3176_v28 = vadd.f32 %v3168_v7, %v3074_v18  ;;  %v3121_v13 = vpop.f32.mrb[63].mxu0  ;;  %v3162_v31 = vpop.f32.mrb[63].mxu1  ;;  %v3178_v1 = vadd.f32 %v3170_v60, %v3076_v33  ;;  %v3223_v18 = vunpack.c.l.bf16 %v3215_v58  ;;  %v3225_v33 = vunpack.c.l.bf16 %v3217_v53 }
 0xfbc   :  { %v3177_v32 = vadd.f32 %v3169_v3, %v3075_v25  ;;  %v3179_v63 = vadd.f32 %v3171_v55, %v3077_v57  ;;  %v3224_v25 = vunpack.c.l.bf16 %v3216_v4  ;;  %v3226_v57 = vunpack.c.l.bf16 %v3218_v48 }
 0xfbd   :  { %v3792_v47 = vmul.f32 -1.442695, %v3176_v28 }
 0xfbe   :  { %v3793_v54 = vmul.f32 -1.442695, %v3177_v32  ;;  %v3794_v61 = vmul.f32 -1.442695, %v3179_v63 }
 0xfbf   :  { %4392 = vpow2.f32 %v3792_v47 }
 0xfc0   :  { %4394 = vpow2.f32 %v3793_v54 }
 0xfc1   :  { %4396 = vpow2.f32 %v3794_v61 }
 0xfc2   :  { %4398 = vtanh.f32 %v3178_v1 }
 0xfc9   :  { %v4393_v9 = vpop.eup %4392 }
 0xfca   :  { %v4395_v45 = vpop.eup %4394  ;;  %v3183_v29 = vadd.f32 1.0, %v4393_v9 }
 0xfcb   :  { %v3189_v46 = vadd.f32 1.0, %v4395_v45  ;;  %v4397_v39 = vpop.eup %4396 }
 0xfcc   :  { %4400 = vrcp.f32 %v3183_v29  ;;  %v4399_v59 = vpop.eup %4398  ;;  %v3196_v30 = vadd.f32 1.0, %v4397_v39 }
 0xfcd   :  { %4402 = vrcp.f32 %v3189_v46 }
 0xfce   :  { %4404 = vrcp.f32 %v3196_v30 }
 0xfd6   :  { %v4401_v12 = vpop.eup %4400 }
 0xfd7   :  { %v4403_v19 = vpop.eup %4402  ;;  %v3203_v41 = vmul.f32 %v4401_v12, %v4399_v59 }
 0xfd8   :  { %v3202_v43 = vmul.f32 %v4403_v19, %v3200_v22  ;;  %v4405_v49 = vpop.eup %4404 }
 0xfda   :  { %v6056_v44 = vadd.f32 %v3203_v41, %v3202_v43 }
 0xfdc   :  { %4406 = vtanh.f32 %v6056_v44  ;;  %v3349_v22 = vrot.slane %v6056_v44, 6  ;;  %v4039_v44 = vld [vmem:[%s6160_s7 + $0x38] sm:$0xff]  }
 0xfe6   :  { %v4407_v42 = vpop.eup %4406 }
 0xfe7   :  { %v3206_v56 = vmul.f32 %v4407_v42, %v4405_v49 }
 0xfe9   :  { %v3227_v50 = vpack.c.bf16 %v3206_v56, %v3206_v56 }
 0xfeb   :  { %v3229_v8 = vrot.slane %v3227_v50, 2 }
 0xfed   :  { %3264 = vmatmul.mubr.bf16.vlgmr.msra.gmra.mrb[64].mxu0 %v3229_v8  ;;  %3305 = vmatmul.mubr.bf16.vlgmr.msra.gmra.mrb[64].mxu1 %v3229_v8 }
 0xfee   :  { %3837 = vmatpush3.bf16.msra.mxu0 %v4024_v51  ;;  %3852 = vmatprep.mubr.msk.bf16.mxu0 %vm4516_vm4, %v4515_v0 }
 0xfef   :  { %3838 = vmatprep.subr.bf16.mxu0 %v4515_v0  ;;  %3872 = vmatprep.mubr.msk.bf16.mxu1 %vm4516_vm4, %v4515_v0 }
 0xff0   :  { %3857 = vmatpush3.bf16.msra.mxu1 %v4032_v6 }
 0xff1   :  { %3858 = vmatprep.subr.bf16.mxu1 %v4515_v0 }
 0xff2   :  { %3839 = vmatpush3.bf16.msra.mxu0 %v4025_v52  ;;  %v4038_v52 = vld [vmem:[%s6160_s7 + $0x30] sm:$0xff]  }
 0xff3   :  { %3840 = vmatprep.subr.bf16.mxu0 %v4515_v0 }
 0xff4   :  { %3859 = vmatpush3.bf16.msra.mxu1 %v4033_v11 }
 0xff5   :  { %3860 = vmatprep.subr.bf16.mxu1 %v4515_v0 }
 0xff6   :  { %3841 = vmatpush3.bf16.msra.mxu0 %v4026_v14  ;;  %v3798_v14 = vld [vmem:[%s6159_s6] ss:$0 sm:$0xff] }
 0xff7   :  { %3842 = vmatprep.subr.bf16.mxu0 %v4515_v0 }
 0xff8   :  { %3861 = vmatpush3.bf16.msra.mxu1 %v4034_v20  ;;  %v3807_v20 = vld [vmem:[%s6161_s8] ss:$0 sm:$0xff] }
 0xff9   :  { %3862 = vmatprep.subr.bf16.mxu1 %v4515_v0 }
 0xffa   :  { %3843 = vmatpush3.bf16.msra.mxu0 %v4027_v37 }
 0xffb   :  { %3844 = vmatprep.subr.bf16.mxu0 %v4515_v0 }
 0xffc   :  { %3863 = vmatpush3.bf16.msra.mxu1 %v4035_v21 }
 0xffd   :  { %3864 = vmatprep.subr.bf16.mxu1 %v4515_v0 }
 0xffe   :  { %3845 = vmatpush3.bf16.msra.mxu0 %v4028_v15 }
 0xfff   :  { %3846 = vmatprep.subr.bf16.mxu0 %v4515_v0 }
0x1000   :  { %3865 = vmatpush3.bf16.msra.mxu1 %v4036_v35 }
0x1001   :  { %3866 = vmatprep.subr.bf16.mxu1 %v4515_v0 }
0x1002   :  { %3847 = vmatpush3.bf16.msra.mxu0 %v4029_v16 }
0x1003   :  { %3848 = vmatprep.subr.bf16.mxu0 %v4515_v0 }
0x1004   :  { %3867 = vmatpush3.bf16.msra.mxu1 %v4037_v38 }
0x1005   :  { %3868 = vmatprep.subr.bf16.mxu1 %v4515_v0 }
0x1006   :  { %3849 = vmatpush3.bf16.msra.mxu0 %v4030_v17 }
0x1007   :  { %3850 = vmatprep.subr.bf16.mxu0 %v4515_v0 }
0x1008   :  { %3869 = vmatpush3.bf16.msra.mxu1 %v4038_v52 }
0x1009   :  { %3870 = vmatprep.subr.bf16.mxu1 %v4515_v0 }
0x100a   :  { %3851 = vmatpush3.bf16.msra.mxu0 %v4031_v23 }
0x100c   :  { %3871 = vmatpush3.bf16.msra.mxu1 %v4039_v44 }
0x10c0   :  { %v3265_v5 = vpop.f32.mrb[64].mxu0  ;;  %v3306_v34 = vpop.f32.mrb[64].mxu1 }
0x10c1   :  { %v3317_v7 = vrot.slane %v3265_v5, 2  ;;  %v3267_v36 = vpop.f32.mrb[65].mxu0  ;;  %v3308_v24 = vpop.f32.mrb[65].mxu1  ;;  %v3319_v60 = vrot.slane %v3306_v34, 2 }
0x10c2   :  { %v3318_v3 = vrot.slane %v3267_v36, 2  ;;  %v3269_v26 = vpop.f32.mrb[66].mxu0  ;;  %v3310_v27 = vpop.f32.mrb[66].mxu1  ;;  %v3320_v55 = vrot.slane %v3308_v24, 2 }
0x10c3   :  { %v3325_v28 = vadd.f32 %v3317_v7, %v3223_v18  ;;  %v3270_v13 = vpop.f32.mrb[67].mxu0  ;;  %v3311_v31 = vpop.f32.mrb[67].mxu1  ;;  %v3327_v1 = vadd.f32 %v3319_v60, %v3225_v33  ;;  %v3817_v26 = vld [vmem:[%s6163_s10] ss:$0 sm:$0xff] }
0x10c4   :  { %v3326_v32 = vadd.f32 %v3318_v3, %v3224_v25  ;;  %v3328_v63 = vadd.f32 %v3320_v55, %v3226_v57  ;;  %v3816_v25 = vld [vmem:[%s6162_s9] ss:$0 sm:$0xff] }
0x10c5   :  { %v3795_v47 = vmul.f32 -1.442695, %v3325_v28 }
0x10c6   :  { %v3796_v54 = vmul.f32 -1.442695, %v3326_v32  ;;  %v3797_v61 = vmul.f32 -1.442695, %v3328_v63 }
0x10c7   :  { %4408 = vpow2.f32 %v3795_v47 }
0x10c8   :  { %4410 = vpow2.f32 %v3796_v54 }
0x10c9   :  { %4412 = vpow2.f32 %v3797_v61 }
0x10ca   :  { %4414 = vtanh.f32 %v3327_v1 }
0x10d1   :  { %v4409_v9 = vpop.eup %4408 }
0x10d2   :  { %v4411_v45 = vpop.eup %4410  ;;  %v3332_v29 = vadd.f32 1.0, %v4409_v9 }
0x10d3   :  { %v3338_v46 = vadd.f32 1.0, %v4411_v45  ;;  %v4413_v39 = vpop.eup %4412 }
0x10d4   :  { %4416 = vrcp.f32 %v3332_v29  ;;  %v4415_v59 = vpop.eup %4414  ;;  %v3345_v30 = vadd.f32 1.0, %v4413_v39 }
0x10d5   :  { %4418 = vrcp.f32 %v3338_v46 }
0x10d6   :  { %4420 = vrcp.f32 %v3345_v30 }
0x10de   :  { %v4417_v12 = vpop.eup %4416 }
0x10df   :  { %v4419_v19 = vpop.eup %4418  ;;  %v3352_v41 = vmul.f32 %v4417_v12, %v4415_v59 }
0x10e0   :  { %v3351_v43 = vmul.f32 %v4419_v19, %v3349_v22  ;;  %v4421_v42 = vpop.eup %4420 }
0x10e2   :  { %v3353_v49 = vadd.f32 %v3352_v41, %v3351_v43 }
0x10e4   :  { %4422 = vtanh.f32 %v3353_v49 }
0x10ee   :  { %v4423_v56 = vpop.eup %4422 }
0x10ef   :  { %v3355_v50 = vmul.f32 %v4423_v56, %v4421_v42 }
0x10f1   :  { %v3356_v8 = vpack.c.bf16 %v3355_v50, %v3355_v50 }
0x10f3   :  { %v3381_v51 = vrot.slane %v3356_v8, 3 }
0x10f5   :  { %3853 = vmatmul.mubr.bf16.vlgmr.msra.gmra.mrb[68].mxu0 %v3381_v51 }
0x11c8   :  { %v3465_v37 = vpop.f32.mrb[68].mxu0 }
0x11c9   :  { %v3466_v15 = vadd.f32 %v3798_v14, %v3465_v37  ;;  %v3854_v16 = vpop.f32.mrb[69].mxu0 }
0x11ca   :  { %v3468_v17 = vpop.f32.mrb[70].mxu0 }
0x11cb   :  { %v3471_v6 = vmax.f32 %v3466_v15, 0.0  ;;  %v3855_v11 = vpop.f32.mrb[71].mxu0 }
0x11cd   :  { %v3472_v23 = vpack.c.bf16 %v3471_v6, %v3471_v6 }
0x11cf   :  { %3873 = vmatmul.mubr.bf16.vlgmr.msra.gmra.mrb[68].mxu1 %v3472_v23 }
0x12a2   :  { %v3578_v21 = vpop.f32.mrb[68].mxu1 }
0x12a3   :  { %v3579_v0 = vadd.f32 %v3807_v20, %v3578_v21  ;;  %v3874_v35 = vpop.f32.mrb[69].mxu1 }
0x12a4   :  { %v3581_v38 = vpop.f32.mrb[70].mxu1 }
0x12a5   :  { %v3875_v2 = vpop.f32.mrb[71].mxu1  ;;  %v3585_v40 = vsel %vm3584_vm5, %v3579_v0, 0.0 }
0x12a6   :  { %3586 = vadd.xlane.f32.xlu0 %v3585_v40 }
0x1333   :  { %v3587_v58 = vpop.xlane.xlu0 %3586 }
0x1334   :  { %v3589_v4 = vmul.f32 0.03125, %v3587_v58 }
0x1336   :  { %v3590_v5 = vsub.f32 %v3579_v0, %v3589_v4 }
0x1338   :  { %v3591_v34 = vmul.f32 %v3590_v5, %v3590_v5 }
0x133a   :  { %v3592_v18 = vsel %vm3584_vm5, %v3591_v34, 0.0 }
0x133b   :  { %3593 = vadd.xlane.f32.xlu0 %v3592_v18 }
0x13c8   :  { %v3594_v7 = vpop.xlane.xlu0 %3593 }
0x13c9   :  { %v3595_v36 = vmul.f32 0.03125, %v3594_v7 }
0x13cb   :  { %v3596_v10 = vadd.f32 1e-05, %v3595_v36 }
0x13cd   :  { %4424 = vrsqrt.f32 %v3596_v10 }
0x13d7   :  { %v4425_v24 = vpop.eup %4424 }
0x13d8   :  { %v3598_v3 = vmul.f32 %v4425_v24, %v3590_v5 }
0x13da   :  { %v3606_v27 = vmul.f32 %v3816_v25, %v3598_v3 }
0x13dc   :  { %v3614_v28 = vadd.f32 %v3817_v26, %v3606_v27 }
0x13de   :  { %3615 = vst.msk [vmem:[#allocation4] sm:$0x3] %vm3584_vm5, %v3614_v28 }
0x13df   :  { %4501 = shalt.err (!%p4498_p4)
}
0x13e0   :  { %s4502_s27 = scalar_lea.hbm %s6164_s11, 32 }
0x13e1   :  { %p4503_p5 = scmp.ne.s32.totalorder %s6164_s11, %s4502_s27  ;;  %p4506_p6 = scmp.lt.u32.totalorder %s4502_s27, %s6164_s11 }
0x13e3   :  { %p4508_p7 = pnand %p4506_p6, %p4503_p5 }
0x13e5   :  { %4511 = shalt.err (!%p4508_p7)
}
0x13e6   :  { %3625 = dma.vmem_to_hbm [thread:$0]  %s3623_s24, 32, %s6164_s11, [#allocation5]  }
0x13e7   :  { %4512 = dma.done.wait [#allocation5], 32  }
0x13e8   :  { %4513 = vsyncadd [#allocation5], 4294967264 }
0x13e9   :  { %3629 = vsyncpa [#allocation5], 1 }

</bundles_post_ra>
